<compile_context>
chip_gen: v7x
topology: tpu7x:2x2x1
jax: 0.10.0
libtpu: 0.0.40
codegen_flags: <defaults>
</compile_context>

<pallas_src>
import functools
import math

import numpy as np
import jax
import jax.numpy as jnp
from jax import lax
from jax.experimental import pallas as pl
from jax.experimental.pallas import tpu as pltpu

NEG_SLOPE = 0.01
BN_EPS = 1e-5
BN_SCALE = 1.0 / math.sqrt(1.0 + BN_EPS)   # eval-mode BN (mean=0, var=1, gamma=1, beta=0)
MATMUL_DTYPE = jnp.bfloat16                # MXU operand dtype; accumulation stays f32


def _leaky(x):
    return jnp.where(x >= 0, x, NEG_SLOPE * x)


def _mm(a, b):
    """MXU matmul: bf16 operands, f32 accumulation (epilogue stays f32)."""
    return jnp.dot(a.astype(MATMUL_DTYPE), b.astype(MATMUL_DTYPE),
                   preferred_element_type=jnp.float32)


# ---------------------------------------------------------------------------
# Pallas kernels
# ---------------------------------------------------------------------------

def _graph_nmp(x, w1, b1, w2, b2, groups, stride):
    """Complete-graph node2edge -> Mlp_JpTrans -> edge2node_mean -> residual.

    Rows of `x` are (group, batch)-ordered: row = g*stride + b.  Edges are
    processed per receiver/sender offset d, so the sender rows are a plain row
    rotation by d*stride (static slice + concat, no one-hot matmul, no gather)
    and edge2node_mean is a running sum over d (each node receives exactly one
    edge per offset).  M stays at groups*stride for every MXU op.
    """
    incoming = jnp.zeros_like(x)
    for d in range(1, groups):            # V-1 (node) / T2-1 (speed) unrolled steps
        off = d * stride
        send = jnp.concatenate([x[off:], x[:off]], axis=0)
        diff = x - send                                   # receivers - senders
        # fc1 on cat([recv, diff]) as one K-stacked matmul (recv == x itself)
        h = _leaky(_mm(jnp.concatenate([x, diff], axis=-1), w1) + b1)
        # fc2 on cat([h, recv, diff]) as one K-stacked matmul, then BN + leaky
        y = _leaky((_mm(jnp.concatenate([h, x, diff], axis=-1), w2) + b2) * BN_SCALE)
        incoming = incoming + y
    return incoming * (1.0 / groups) + x                  # edge2node_mean + skip


def _fused_nmp_kernel(p1_ref, p2_ref,
                      wc1, cb1, wc2, cb2,
                      m1_w1, m1_b1, m1_w2, m1_b2,
                      s1_w1, s1_b1, s1_w2, s1_b2,
                      m2_w1, m2_b1, m2_w2, m2_b2,
                      s2_w1, s2_b1, s2_w2, s2_b2,
                      node_out, speed_out, *, batch, n_node, n_time):
    # ---- time_conv + BatchNorm2d(eval), emitting the x_1 / x_2 raw views ----
    x1 = _mm(p1_ref[...], wc1[...]) + cb1[...]            # (V*B,  C1p) f32
    x2 = _mm(p2_ref[...], wc2[...]) + cb2[...]            # (T2*B, C2p) f32

    # ---- mlp1 / mlp1_speed: fc1 -> leaky -> fc2(cat(h,x)) [K-stacked] -> BN -> leaky ----
    h = _leaky(_mm(x1, m1_w1[...]) + m1_b1[...])
    xn = _leaky((_mm(jnp.concatenate([h, x1], axis=-1), m1_w2[...]) + m1_b2[...]) * BN_SCALE)
    hs = _leaky(_mm(x2, s1_w1[...]) + s1_b1[...])
    xs = _leaky((_mm(jnp.concatenate([hs, x2], axis=-1), s1_w2[...]) + s1_b2[...]) * BN_SCALE)

    # ---- graph message passing + residual (node / speed branches) ----
    xn = _graph_nmp(xn, m2_w1[...], m2_b1[...], m2_w2[...], m2_b2[...], n_node, batch)
    xs = _graph_nmp(xs, s2_w1[...], s2_b1[...], s2_w2[...], s2_b2[...], n_time, batch)

    node_out[...] = xn.astype(node_out.dtype)             # bf16 intermediates
    speed_out[...] = xs.astype(speed_out.dtype)


def _mlp4_kernel(xs_ref, xn_ref, w1, b1, w2, b2, o_ref):
    # mlp4_speed with torch.cat((x_speed, x_node), -1) folded into pre-stacked weights.
    xs = xs_ref[...]
    xn = xn_ref[...]
    cat1 = jnp.concatenate([xs, xn], axis=-1)                      # [speed | node]
    h = _leaky(_mm(cat1, w1[...]) + b1[...])
    cat2 = jnp.concatenate([h.astype(cat1.dtype), cat1], axis=-1)  # [h | speed | node]
    o_ref[...] = _leaky((_mm(cat2, w2[...]) + b2[...]) * BN_SCALE)


# ---------------------------------------------------------------------------
# Parameter construction (deterministic, mirrors module __init__ shapes)
# ---------------------------------------------------------------------------

def make_mlp(k1, k2, n_in, n_hid, n_out):
    std1 = math.sqrt(2.0 / (n_in + n_hid))                 # xavier_normal fc1
    w1 = std1 * jax.random.normal(k1, (n_in, n_hid), jnp.float32)
    std2 = math.sqrt(2.0 / (n_hid + n_in + n_out))         # xavier_normal fc2
    w2 = std2 * jax.random.normal(k2, (n_hid + n_in, n_out), jnp.float32)
    return {"w1": w1, "b1": jnp.full((1, n_hid), 0.1, jnp.float32),
            "w2": w2, "b2": jnp.full((1, n_out), 0.1, jnp.float32)}


def init_params(key, *, t, n_part1, n_part2, t_kernel):
    n_down = n_part1 // 2
    ks = jax.random.split(key, 11)
    params = {
        "conv_w": 0.1 * jax.random.normal(ks[0], (n_down, n_part1, t_kernel, 1), jnp.float32),
        "conv_b": jnp.full((1, n_down), 0.05, jnp.float32),
        "mlp1": make_mlp(ks[1], ks[2], n_part2[0], n_part2[1], n_part2[1]),
        "mlp2": make_mlp(ks[3], ks[4], n_part2[1] * 2, n_part2[1], n_part2[1]),
        "mlp1_speed": make_mlp(ks[5], ks[6], n_down * 3, 126, 126),
        "mlp2_speed": make_mlp(ks[7], ks[8], 252, 126, 126),
    }
    speed_dim = {40: 840, 20: 420, 10: 210}[t]
    params["mlp4_speed"] = make_mlp(ks[9], ks[10], 128 + speed_dim, 128, 128)
    return params


def build_rel(num_nodes):
    edges = [(i, j) for i in range(num_nodes) for j in range(num_nodes) if i != j]
    rec = np.zeros((len(edges), num_nodes), np.float32)
    send = np.zeros((len(edges), num_nodes), np.float32)
    for e, (i, j) in enumerate(edges):
        rec[e, i] = 1.0
        send[e, j] = 1.0
    return jnp.asarray(rec), jnp.asarray(send)


# ---------------------------------------------------------------------------
# Kernel-ready parameter preparation (done once, outside the jitted forward)
# ---------------------------------------------------------------------------

def _round_up(n, m):
    return ((n + m - 1) // m) * m


def _pad_rows(a, n):
    return jnp.pad(a, ((0, n - a.shape[0]), (0, 0)))


def _pad_cols(a, n):
    return jnp.pad(a, ((0, 0), (0, n - a.shape[1])))


def _bf16(a):
    return a.astype(MATMUL_DTYPE)


def _prep_conv(conv_w, conv_b, n_blocks):
    """Block-diagonal conv weights producing one raw view directly; BatchNorm2d
    eval scale pre-folded; output columns zero-padded to a multiple of 128."""
    c_out, d, k, _ = conv_w.shape
    wmat = conv_w.reshape(c_out, d * k).T * BN_SCALE        # (D*K, C)
    w = jnp.kron(jnp.eye(n_blocks, dtype=jnp.float32), wmat)
    b = jnp.tile(conv_b * BN_SCALE, (1, n_blocks))
    cp = _round_up(n_blocks * c_out, 128)
    return _bf16(_pad_cols(w, cp)), _pad_cols(b, cp)


def _prep_mlp_simple(p, in_pad):
    """Mlp_JpTrans with fc2 stacked over cat(h, x); hidden/out padded to 128."""
    n_in, n_hid = p["w1"].shape
    n_out = p["w2"].shape[1]
    hp = _round_up(n_hid, 128)
    op = _round_up(n_out, 128)
    w1 = _pad_cols(_pad_rows(p["w1"], in_pad), hp)
    b1 = _pad_cols(p["b1"], hp)
    w2 = jnp.concatenate([_pad_cols(_pad_rows(p["w2"][:n_hid], hp), op),
                          _pad_cols(_pad_rows(p["w2"][n_hid:], in_pad), op)], axis=0)
    b2 = _pad_cols(p["b2"], op)
    return _bf16(w1), b1, _bf16(w2), b2


def _prep_mlp_edge(p):
    """Edge Mlp_JpTrans (n_in = 2c): fc1 stacked over [recv|diff], fc2 over
    [h|recv|diff]; channel padded 126 -> 128 where needed."""
    c = p["b2"].shape[-1]
    cp = _round_up(c, 128)
    pad_rc = lambda w: _pad_cols(_pad_rows(w, cp), cp)
    w1 = jnp.concatenate([pad_rc(p["w1"][:c]), pad_rc(p["w1"][c:])], axis=0)
    b1 = _pad_cols(p["b1"], cp)
    w2 = jnp.concatenate([pad_rc(p["w2"][:c]), pad_rc(p["w2"][c:2 * c]),
                          pad_rc(p["w2"][2 * c:])], axis=0)
    b2 = _pad_cols(p["b2"], cp)
    return _bf16(w1), b1, _bf16(w2), b2


def _prep_mlp4(p, n_sp, sp_pad):
    """Final Mlp_JpTrans: fc1/fc2 stacked over cat(x_speed[pad 256], x_node)."""
    n_hid = p["b1"].shape[-1]
    w1 = jnp.concatenate([_pad_rows(p["w1"][:n_sp], sp_pad), p["w1"][n_sp:]], axis=0)
    w2 = jnp.concatenate([p["w2"][:n_hid],
                          _pad_rows(p["w2"][n_hid:n_hid + n_sp], sp_pad),
                          p["w2"][n_hid + n_sp:]], axis=0)
    return _bf16(w1), p["b1"], _bf16(w2), p["b2"]


def _assert_complete_graph(rec, send):
    rec = np.asarray(rec)
    send = np.asarray(send)
    v = rec.shape[1]
    pairs = {(int(r.argmax()), int(s.argmax())) for r, s in zip(rec, send)}
    expected = {(i, j) for i in range(v) for j in range(v) if i != j}
    assert rec.shape[0] == len(expected) and pairs == expected, \
        "kernel assumes the fully-connected rel_rec/rel_send S2AttInform is used with"


def prepare_kernel_params(params, rel_rec, rel_send, relrec_speed, relsend_speed,
                          *, T, V, t_kernel, t_stride, t_padding):
    _assert_complete_graph(rel_rec, rel_send)
    _assert_complete_graph(relrec_speed, relsend_speed)
    T2 = T // 2
    c_out = params["conv_w"].shape[0]
    assert rel_rec.shape[1] == V and relrec_speed.shape[1] == T2
    assert params["mlp1"]["w1"].shape[0] == T2 * c_out
    assert params["mlp1_speed"]["w1"].shape[0] == V * c_out
    assert params["mlp1"]["b2"].shape[-1] % 128 == 0   # module uses 128 node channels

    kp = {}
    kp["wc1"], kp["cb1"] = _prep_conv(params["conv_w"], params["conv_b"], T2)
    kp["wc2"], kp["cb2"] = _prep_conv(params["conv_w"], params["conv_b"], V)
    c1p, c2p = kp["wc1"].shape[1], kp["wc2"].shape[1]
    kp["m1_w1"], kp["m1_b1"], kp["m1_w2"], kp["m1_b2"] = _prep_mlp_simple(params["mlp1"], c1p)
    kp["s1_w1"], kp["s1_b1"], kp["s1_w2"], kp["s1_b2"] = _prep_mlp_simple(params["mlp1_speed"], c2p)
    kp["m2_w1"], kp["m2_b1"], kp["m2_w2"], kp["m2_b2"] = _prep_mlp_edge(params["mlp2"])
    kp["s2_w1"], kp["s2_b1"], kp["s2_w2"], kp["s2_b2"] = _prep_mlp_edge(params["mlp2_speed"])
    c_speed = params["mlp1_speed"]["b2"].shape[-1]          # 126
    n_sp = (c_speed // V) * T2                              # 210 at T=10
    kp["f_w1"], kp["f_b1"], kp["f_w2"], kp["f_b2"] = _prep_mlp4(
        params["mlp4_speed"], n_sp, _round_up(n_sp, 128))
    return kp


_A_KEYS = ("wc1", "cb1", "wc2", "cb2",
           "m1_w1", "m1_b1", "m1_w2", "m1_b2",
           "s1_w1", "s1_b1", "s1_w2", "s1_b2",
           "m2_w1", "m2_b1", "m2_w2", "m2_b2",
           "s2_w1", "s2_b1", "s2_w2", "s2_b2")


def _pick_batching(n):
    """B batch elements per grid step.  B is a multiple of 16 so every block
    row-count and in-kernel row rotation is sublane/tile aligned (also for bf16
    outputs); keep >=2 grid steps when there is enough work so a v7x megacore
    uses both TensorCores (v5e/v6e have one TC and are unaffected)."""
    npad = _round_up(max(n, 1), 16)
    b = 32 if npad % 32 == 0 else 16
    if npad // b < 2 and (npad // 2) % 16 == 0:
        b = npad // 2
    return b, npad


# ---------------------------------------------------------------------------
# S2AttInform forward (layer1=False, nmp=True)
# ---------------------------------------------------------------------------

def s2att_forward(kp, x, *, T, t_kernel, t_stride, t_padding, speed_channels=126):
    N, D, Tdim, V = x.shape
    K, S, P = t_kernel, t_stride, t_padding
    DK = D * K
    T2 = T // 2
    Tp = (Tdim + 2 * P - K) // S + 1
    assert Tp == T2, "module assumes time_conv halves the temporal dimension"

    B, Npad = _pick_batching(N)
    G = Npad // B
    if Npad != N:
        x = jnp.pad(x, ((0, Npad - N), (0, 0), (0, 0), (0, 0)))

    # ---- im2col patch extraction (XLA glue; conv matmul itself is in-kernel) ----
    # TODO(synk): fold this strided extraction into Kernel A at production T/N.
    xp = jnp.pad(x, ((0, 0), (0, 0), (P, P), (0, 0)))
    cols = jnp.stack([xp[:, :, k:k + S * (T2 - 1) + 1:S, :] for k in range(K)], axis=2)
    patches = jnp.transpose(cols, (0, 3, 4, 1, 2)).reshape(Npad, T2, V, DK)
    patches = patches.astype(MATMUL_DTYPE)

    # rows ordered (grid_block, group, batch_within_block): the in-kernel graph
    # shift becomes a plain row rotation by d*B and no reshape is needed in-kernel
    p1 = patches.reshape(G, B, V, T2 * DK).transpose(0, 2, 1, 3).reshape(G * V * B, T2 * DK)
    p2 = patches.reshape(G, B, T2, V * DK).transpose(0, 2, 1, 3).reshape(G * T2 * B, V * DK)

    c_node_p = kp["m1_b2"].shape[-1]       # 128 (node channel)
    c_speed_p = kp["s1_b2"].shape[-1]      # 128 (padded speed channel)
    n_out = kp["f_b2"].shape[-1]           # 128
    sp_pad = kp["f_w1"].shape[0] - c_node_p                # 256
    c_speed = speed_channels                               # 126
    n_sp = (c_speed // V) * T2                             # 210 at T=10
    node_rows, speed_rows = V * B, T2 * B

    def _rows_spec(rows, cols):
        return pl.BlockSpec((rows, cols), lambda i: (i, 0))

    def _const_spec(w):
        return pl.BlockSpec(tuple(w.shape), lambda i: (0, 0))

    # ---- Kernel A: conv + mlp1/mlp1_speed + graph NMP + residuals ----
    a_w = [kp[k] for k in _A_KEYS]
    node_out, speed_out = pl.pallas_call(
        functools.partial(_fused_nmp_kernel, batch=B, n_node=V, n_time=T2),
        out_shape=(jax.ShapeDtypeStruct((G * node_rows, c_node_p), MATMUL_DTYPE),
                   jax.ShapeDtypeStruct((G * speed_rows, c_speed_p), MATMUL_DTYPE)),
        grid=(G,),
        in_specs=[_rows_spec(node_rows, T2 * DK), _rows_spec(speed_rows, V * DK)]
                 + [_const_spec(w) for w in a_w],
        out_specs=(_rows_spec(node_rows, c_node_p), _rows_spec(speed_rows, c_speed_p)),
        compiler_params=pltpu.CompilerParams(dimension_semantics=("parallel",)),
    )(p1, p2, *a_w)

    # ---- speed-branch interleave (tiny bf16 buffer, stays in XLA) ----
    xs = speed_out.reshape(G, T2, B, c_speed_p)[..., :c_speed]
    xs = xs.reshape(G, T2, B, c_speed // V, V)
    xs = jnp.transpose(xs, (0, 4, 2, 3, 1)).reshape(G, V, B, n_sp)
    xs = jnp.pad(xs, ((0, 0), (0, 0), (0, 0), (0, sp_pad - n_sp)))
    xs = xs.reshape(G * node_rows, sp_pad)

    # ---- Kernel B: mlp4_speed with the concat folded in ----
    out = pl.pallas_call(
        _mlp4_kernel,
        out_shape=jax.ShapeDtypeStruct((G * node_rows, n_out), jnp.float32),
        grid=(G,),
        in_specs=[_rows_spec(node_rows, sp_pad), _rows_spec(node_rows, c_node_p),
                  _const_spec(kp["f_w1"]), _const_spec(kp["f_b1"]),
                  _const_spec(kp["f_w2"]), _const_spec(kp["f_b2"])],
        out_specs=_rows_spec(node_rows, n_out),
        compiler_params=pltpu.CompilerParams(dimension_semantics=("parallel",)),
    )(xs, node_out, kp["f_w1"], kp["f_b1"], kp["f_w2"], kp["f_b2"])

    out = out.reshape(G, V, B, n_out).transpose(0, 2, 1, 3).reshape(Npad, V, n_out)
    return out[:N]


# ---------------------------------------------------------------------------
# Pure-JAX reference (eval-mode BatchNorm / identity Dropout), for validation
# ---------------------------------------------------------------------------

def _mlp_ref(p, x):
    h = _leaky(x @ p["w1"] + p["b1"])
    y = (jnp.concatenate([h, x], axis=-1) @ p["w2"] + p["b2"]) * BN_SCALE
    return _leaky(y)


def s2att_reference(params, x, rel_rec, rel_send, relrec_s, relsend_s,
                    *, T, t_stride, t_padding):
    N, D, Tdim, V = x.shape
    T2 = T // 2
    conv = lax.conv_general_dilated(
        x, params["conv_w"], (t_stride, 1), [(t_padding, t_padding), (0, 0)],
        dimension_numbers=("NCHW", "OIHW", "NCHW"))
    conv = (conv + params["conv_b"].reshape(1, -1, 1, 1)) * BN_SCALE
    x_ = jnp.transpose(conv, (0, 2, 3, 1))                 # (N, T2, V, C)
    x1 = x_.reshape(N, V, -1)
    x2 = x_.reshape(N, T2, -1)
    xn = _mlp_ref(params["mlp1"], x1)
    xs = _mlp_ref(params["mlp1_speed"], x2)

    def n2e(h, rr, rs):
        recv = jnp.einsum("ev,nvc->nec", rr, h)
        send = jnp.einsum("ev,nvc->nec", rs, h)
        return jnp.concatenate([recv, recv - send], axis=-1)

    def e2n(e, rr):
        inc = jnp.einsum("ev,nec->nvc", rr, e)
        return inc / inc.shape[1]

    xe = _mlp_ref(params["mlp2"], n2e(xn, rel_rec, rel_send))
    xes = _mlp_ref(params["mlp2_speed"], n2e(xs, relrec_s, relsend_s))
    xn = e2n(xe, rel_rec) + xn
    xs = e2n(xes, relrec_s) + xs
    xs = xs.reshape(N, T2, -1, V)
    xs = jnp.transpose(xs, (0, 3, 2, 1)).reshape(N, V, -1)
    return _mlp_ref(params["mlp4_speed"], jnp.concatenate([xs, xn], axis=-1))


# ---------------------------------------------------------------------------

if __name__ == "__main__":
    # Config consistent with the module (t=10 branch): V must be 3 so mlp1_speed's
    # input dim (n_part1_down * 3) matches V * n_part1_down, and n_part2[1] must be
    # 128 to match mlp4_speed's hard-coded 128 + 210.
    T, V, N = 10, 3, 2
    n_part1 = 8
    n_down = n_part1 // 2
    t_kernel, t_stride, t_padding = 3, 2, 1              # gives T' = T // 2 = 5
    n_part2 = ((T // 2) * n_down, 128)                   # (20, 128)

    key = jax.random.PRNGKey(0)
    kx, kparam = jax.random.split(key)
    x = jax.random.normal(kx, (N, n_part1, T, V), jnp.float32)   # NCHW: (N, D, T, V)
    params = init_params(kparam, t=T, n_part1=n_part1, n_part2=n_part2, t_kernel=t_kernel)

    rel_rec, rel_send = build_rel(V)                 # (6, 3)
    relrec_speed, relsend_speed = build_rel(T // 2)  # (20, 5)

    # one-time weight preparation (pad / K-stack / bf16-cast), outside the jitted forward
    kparams = prepare_kernel_params(
        params, rel_rec, rel_send, relrec_speed, relsend_speed,
        T=T, V=V, t_kernel=t_kernel, t_stride=t_stride, t_padding=t_padding)

    fwd = jax.jit(functools.partial(
        s2att_forward, T=T, t_kernel=t_kernel, t_stride=t_stride, t_padding=t_padding))
    out = fwd(kparams, x)
    jax.block_until_ready(out)
    assert out.shape == (N, V, 128) and out.dtype == jnp.float32

    # validate against the pure-JAX f32 reference (kernel uses bf16 MXU operands)
    ref = s2att_reference(params, x, rel_rec, rel_send, relrec_speed, relsend_speed,
                          T=T, t_stride=t_stride, t_padding=t_padding)
    err = float(jnp.max(jnp.abs(out - ref)))
    scale = float(jnp.maximum(jnp.max(jnp.abs(ref)), 1.0))
    assert err <= 6e-2 * scale, f"kernel/reference mismatch: max_err={err:.4f} scale={scale:.3f}"
    print("KERNEL_OK")
</pallas_src>

<mosaic_0001>
module attributes {stable_mosaic.version = 11 : i64} {
  func.func @_fused_nmp_kernel(%arg0: i32, %arg1: memref<48x120xbf16, #tpu.memory_space<vmem>>, %arg2: memref<80x72xbf16, #tpu.memory_space<vmem>>, %arg3: memref<120x128xbf16, #tpu.memory_space<vmem>>, %arg4: memref<1x128xf32, #tpu.memory_space<vmem>>, %arg5: memref<72x128xbf16, #tpu.memory_space<vmem>>, %arg6: memref<1x128xf32, #tpu.memory_space<vmem>>, %arg7: memref<128x128xbf16, #tpu.memory_space<vmem>>, %arg8: memref<1x128xf32, #tpu.memory_space<vmem>>, %arg9: memref<256x128xbf16, #tpu.memory_space<vmem>>, %arg10: memref<1x128xf32, #tpu.memory_space<vmem>>, %arg11: memref<128x128xbf16, #tpu.memory_space<vmem>>, %arg12: memref<1x128xf32, #tpu.memory_space<vmem>>, %arg13: memref<256x128xbf16, #tpu.memory_space<vmem>>, %arg14: memref<1x128xf32, #tpu.memory_space<vmem>>, %arg15: memref<256x128xbf16, #tpu.memory_space<vmem>>, %arg16: memref<1x128xf32, #tpu.memory_space<vmem>>, %arg17: memref<384x128xbf16, #tpu.memory_space<vmem>>, %arg18: memref<1x128xf32, #tpu.memory_space<vmem>>, %arg19: memref<256x128xbf16, #tpu.memory_space<vmem>>, %arg20: memref<1x128xf32, #tpu.memory_space<vmem>>, %arg21: memref<384x128xbf16, #tpu.memory_space<vmem>>, %arg22: memref<1x128xf32, #tpu.memory_space<vmem>>, %arg23: memref<48x128xbf16, #tpu.memory_space<vmem>>, %arg24: memref<80x128xbf16, #tpu.memory_space<vmem>>) attributes {dimension_semantics = [#tpu.dimension_semantics<parallel>], iteration_bounds = array<i64: 1>, scalar_prefetch = 0 : i64, scratch_operands = 0 : i64, tpu.core_type = #tpu.core_type<tc>, window_params = [{transform_indices = @transform_0, window_bounds = array<i64: 48, 120>}, {transform_indices = @transform_1, window_bounds = array<i64: 80, 72>}, {pipeline_mode = #tpu.pipeline_mode<synchronous>, transform_indices = @transform_2, window_bounds = array<i64: 120, 128>}, {pipeline_mode = #tpu.pipeline_mode<synchronous>, transform_indices = @transform_3, window_bounds = array<i64: 1, 128>}, {pipeline_mode = #tpu.pipeline_mode<synchronous>, transform_indices = @transform_4, window_bounds = array<i64: 72, 128>}, {pipeline_mode = #tpu.pipeline_mode<synchronous>, transform_indices = @transform_5, window_bounds = array<i64: 1, 128>}, {pipeline_mode = #tpu.pipeline_mode<synchronous>, transform_indices = @transform_6, window_bounds = array<i64: 128, 128>}, {pipeline_mode = #tpu.pipeline_mode<synchronous>, transform_indices = @transform_7, window_bounds = array<i64: 1, 128>}, {pipeline_mode = #tpu.pipeline_mode<synchronous>, transform_indices = @transform_8, window_bounds = array<i64: 256, 128>}, {pipeline_mode = #tpu.pipeline_mode<synchronous>, transform_indices = @transform_9, window_bounds = array<i64: 1, 128>}, {pipeline_mode = #tpu.pipeline_mode<synchronous>, transform_indices = @transform_10, window_bounds = array<i64: 128, 128>}, {pipeline_mode = #tpu.pipeline_mode<synchronous>, transform_indices = @transform_11, window_bounds = array<i64: 1, 128>}, {pipeline_mode = #tpu.pipeline_mode<synchronous>, transform_indices = @transform_12, window_bounds = array<i64: 256, 128>}, {pipeline_mode = #tpu.pipeline_mode<synchronous>, transform_indices = @transform_13, window_bounds = array<i64: 1, 128>}, {pipeline_mode = #tpu.pipeline_mode<synchronous>, transform_indices = @transform_14, window_bounds = array<i64: 256, 128>}, {pipeline_mode = #tpu.pipeline_mode<synchronous>, transform_indices = @transform_15, window_bounds = array<i64: 1, 128>}, {pipeline_mode = #tpu.pipeline_mode<synchronous>, transform_indices = @transform_16, window_bounds = array<i64: 384, 128>}, {pipeline_mode = #tpu.pipeline_mode<synchronous>, transform_indices = @transform_17, window_bounds = array<i64: 1, 128>}, {pipeline_mode = #tpu.pipeline_mode<synchronous>, transform_indices = @transform_18, window_bounds = array<i64: 256, 128>}, {pipeline_mode = #tpu.pipeline_mode<synchronous>, transform_indices = @transform_19, window_bounds = array<i64: 1, 128>}, {pipeline_mode = #tpu.pipeline_mode<synchronous>, transform_indices = @transform_20, window_bounds = array<i64: 384, 128>}, {pipeline_mode = #tpu.pipeline_mode<synchronous>, transform_indices = @transform_21, window_bounds = array<i64: 1, 128>}, {transform_indices = @transform_22, window_bounds = array<i64: 48, 128>}, {transform_indices = @transform_23, window_bounds = array<i64: 80, 128>}]} {
    %c0 = arith.constant 0 : index
    %c0_0 = arith.constant 0 : index
    %0 = vector.load %arg1[%c0, %c0_0] : memref<48x120xbf16, #tpu.memory_space<vmem>>, vector<48x120xbf16>
    %c0_1 = arith.constant 0 : index
    %c0_2 = arith.constant 0 : index
    %1 = vector.load %arg3[%c0_1, %c0_2] : memref<120x128xbf16, #tpu.memory_space<vmem>>, vector<120x128xbf16>
    %cst = arith.constant dense<0.000000e+00> : vector<48x128xf32>
    %2 = tpu.matmul %0, %1, %cst {dimension_numbers = #tpu.dot_dimension_numbers<[1], [0], [0], [1], [0, 0, 1, 1], [], []>} : vector<48x120xbf16>, vector<120x128xbf16>, vector<48x128xf32> -> vector<48x128xf32>
    %c0_3 = arith.constant 0 : index
    %c0_4 = arith.constant 0 : index
    %3 = vector.load %arg4[%c0_3, %c0_4] : memref<1x128xf32, #tpu.memory_space<vmem>>, vector<1x128xf32>
    %4 = vector.broadcast %3 : vector<1x128xf32> to vector<48x128xf32>
    %5 = arith.addf %2, %4 : vector<48x128xf32>
    %c0_5 = arith.constant 0 : index
    %c0_6 = arith.constant 0 : index
    %6 = vector.load %arg2[%c0_5, %c0_6] : memref<80x72xbf16, #tpu.memory_space<vmem>>, vector<80x72xbf16>
    %c0_7 = arith.constant 0 : index
    %c0_8 = arith.constant 0 : index
    %7 = vector.load %arg5[%c0_7, %c0_8] : memref<72x128xbf16, #tpu.memory_space<vmem>>, vector<72x128xbf16>
    %cst_9 = arith.constant dense<0.000000e+00> : vector<80x128xf32>
    %8 = tpu.matmul %6, %7, %cst_9 {dimension_numbers = #tpu.dot_dimension_numbers<[1], [0], [0], [1], [0, 0, 1, 1], [], []>} : vector<80x72xbf16>, vector<72x128xbf16>, vector<80x128xf32> -> vector<80x128xf32>
    %c0_10 = arith.constant 0 : index
    %c0_11 = arith.constant 0 : index
    %9 = vector.load %arg6[%c0_10, %c0_11] : memref<1x128xf32, #tpu.memory_space<vmem>>, vector<1x128xf32>
    %10 = vector.broadcast %9 : vector<1x128xf32> to vector<80x128xf32>
    %11 = arith.addf %8, %10 : vector<80x128xf32>
    %c0_12 = arith.constant 0 : index
    %c0_13 = arith.constant 0 : index
    %12 = vector.load %arg7[%c0_12, %c0_13] : memref<128x128xbf16, #tpu.memory_space<vmem>>, vector<128x128xbf16>
    %13 = arith.truncf %5 : vector<48x128xf32> to vector<48x128xbf16>
    %cst_14 = arith.constant dense<0.000000e+00> : vector<48x128xf32>
    %14 = tpu.matmul %13, %12, %cst_14 {dimension_numbers = #tpu.dot_dimension_numbers<[1], [0], [0], [1], [0, 0, 1, 1], [], []>} : vector<48x128xbf16>, vector<128x128xbf16>, vector<48x128xf32> -> vector<48x128xf32>
    %c0_15 = arith.constant 0 : index
    %c0_16 = arith.constant 0 : index
    %15 = vector.load %arg8[%c0_15, %c0_16] : memref<1x128xf32, #tpu.memory_space<vmem>>, vector<1x128xf32>
    %16 = vector.broadcast %15 : vector<1x128xf32> to vector<48x128xf32>
    %17 = arith.addf %14, %16 : vector<48x128xf32>
    %cst_17 = arith.constant 0.000000e+00 : f32
    %18 = vector.broadcast %cst_17 : f32 to vector<48x128xf32>
    %19 = arith.cmpf oge, %17, %18 : vector<48x128xf32>
    %cst_18 = arith.constant 0.00999999977 : f32
    %20 = vector.broadcast %cst_18 : f32 to vector<48x128xf32>
    %21 = arith.mulf %20, %17 : vector<48x128xf32>
    %22 = arith.select %19, %17, %21 : vector<48x128xi1>, vector<48x128xf32>
    %23 = tpu.concatenate %22, %5 in 1 : vector<48x128xf32>, vector<48x128xf32> -> vector<48x256xf32>
    %c0_19 = arith.constant 0 : index
    %c0_20 = arith.constant 0 : index
    %24 = vector.load %arg9[%c0_19, %c0_20] : memref<256x128xbf16, #tpu.memory_space<vmem>>, vector<256x128xbf16>
    %25 = arith.truncf %23 : vector<48x256xf32> to vector<48x256xbf16>
    %cst_21 = arith.constant dense<0.000000e+00> : vector<48x128xf32>
    %26 = tpu.matmul %25, %24, %cst_21 {dimension_numbers = #tpu.dot_dimension_numbers<[1], [0], [0], [1], [0, 0, 1, 1], [], []>} : vector<48x256xbf16>, vector<256x128xbf16>, vector<48x128xf32> -> vector<48x128xf32>
    %c0_22 = arith.constant 0 : index
    %c0_23 = arith.constant 0 : index
    %27 = vector.load %arg10[%c0_22, %c0_23] : memref<1x128xf32, #tpu.memory_space<vmem>>, vector<1x128xf32>
    %28 = vector.broadcast %27 : vector<1x128xf32> to vector<48x128xf32>
    %29 = arith.addf %26, %28 : vector<48x128xf32>
    %cst_24 = arith.constant 0.999994993 : f32
    %30 = vector.broadcast %cst_24 : f32 to vector<48x128xf32>
    %31 = arith.mulf %29, %30 : vector<48x128xf32>
    %cst_25 = arith.constant 0.000000e+00 : f32
    %32 = vector.broadcast %cst_25 : f32 to vector<48x128xf32>
    %33 = arith.cmpf oge, %31, %32 : vector<48x128xf32>
    %cst_26 = arith.constant 0.00999999977 : f32
    %34 = vector.broadcast %cst_26 : f32 to vector<48x128xf32>
    %35 = arith.mulf %34, %31 : vector<48x128xf32>
    %36 = arith.select %33, %31, %35 : vector<48x128xi1>, vector<48x128xf32>
    %c0_27 = arith.constant 0 : index
    %c0_28 = arith.constant 0 : index
    %37 = vector.load %arg11[%c0_27, %c0_28] : memref<128x128xbf16, #tpu.memory_space<vmem>>, vector<128x128xbf16>
    %38 = arith.truncf %11 : vector<80x128xf32> to vector<80x128xbf16>
    %cst_29 = arith.constant dense<0.000000e+00> : vector<80x128xf32>
    %39 = tpu.matmul %38, %37, %cst_29 {dimension_numbers = #tpu.dot_dimension_numbers<[1], [0], [0], [1], [0, 0, 1, 1], [], []>} : vector<80x128xbf16>, vector<128x128xbf16>, vector<80x128xf32> -> vector<80x128xf32>
    %c0_30 = arith.constant 0 : index
    %c0_31 = arith.constant 0 : index
    %40 = vector.load %arg12[%c0_30, %c0_31] : memref<1x128xf32, #tpu.memory_space<vmem>>, vector<1x128xf32>
    %41 = vector.broadcast %40 : vector<1x128xf32> to vector<80x128xf32>
    %42 = arith.addf %39, %41 : vector<80x128xf32>
    %cst_32 = arith.constant 0.000000e+00 : f32
    %43 = vector.broadcast %cst_32 : f32 to vector<80x128xf32>
    %44 = arith.cmpf oge, %42, %43 : vector<80x128xf32>
    %cst_33 = arith.constant 0.00999999977 : f32
    %45 = vector.broadcast %cst_33 : f32 to vector<80x128xf32>
    %46 = arith.mulf %45, %42 : vector<80x128xf32>
    %47 = arith.select %44, %42, %46 : vector<80x128xi1>, vector<80x128xf32>
    %48 = tpu.concatenate %47, %11 in 1 : vector<80x128xf32>, vector<80x128xf32> -> vector<80x256xf32>
    %c0_34 = arith.constant 0 : index
    %c0_35 = arith.constant 0 : index
    %49 = vector.load %arg13[%c0_34, %c0_35] : memref<256x128xbf16, #tpu.memory_space<vmem>>, vector<256x128xbf16>
    %50 = arith.truncf %48 : vector<80x256xf32> to vector<80x256xbf16>
    %cst_36 = arith.constant dense<0.000000e+00> : vector<80x128xf32>
    %51 = tpu.matmul %50, %49, %cst_36 {dimension_numbers = #tpu.dot_dimension_numbers<[1], [0], [0], [1], [0, 0, 1, 1], [], []>} : vector<80x256xbf16>, vector<256x128xbf16>, vector<80x128xf32> -> vector<80x128xf32>
    %c0_37 = arith.constant 0 : index
    %c0_38 = arith.constant 0 : index
    %52 = vector.load %arg14[%c0_37, %c0_38] : memref<1x128xf32, #tpu.memory_space<vmem>>, vector<1x128xf32>
    %53 = vector.broadcast %52 : vector<1x128xf32> to vector<80x128xf32>
    %54 = arith.addf %51, %53 : vector<80x128xf32>
    %cst_39 = arith.constant 0.999994993 : f32
    %55 = vector.broadcast %cst_39 : f32 to vector<80x128xf32>
    %56 = arith.mulf %54, %55 : vector<80x128xf32>
    %cst_40 = arith.constant 0.000000e+00 : f32
    %57 = vector.broadcast %cst_40 : f32 to vector<80x128xf32>
    %58 = arith.cmpf oge, %56, %57 : vector<80x128xf32>
    %cst_41 = arith.constant 0.00999999977 : f32
    %59 = vector.broadcast %cst_41 : f32 to vector<80x128xf32>
    %60 = arith.mulf %59, %56 : vector<80x128xf32>
    %61 = arith.select %58, %56, %60 : vector<80x128xi1>, vector<80x128xf32>
    %c0_42 = arith.constant 0 : index
    %c0_43 = arith.constant 0 : index
    %62 = vector.load %arg15[%c0_42, %c0_43] : memref<256x128xbf16, #tpu.memory_space<vmem>>, vector<256x128xbf16>
    %c0_44 = arith.constant 0 : index
    %c0_45 = arith.constant 0 : index
    %63 = vector.load %arg16[%c0_44, %c0_45] : memref<1x128xf32, #tpu.memory_space<vmem>>, vector<1x128xf32>
    %c0_46 = arith.constant 0 : index
    %c0_47 = arith.constant 0 : index
    %64 = vector.load %arg17[%c0_46, %c0_47] : memref<384x128xbf16, #tpu.memory_space<vmem>>, vector<384x128xbf16>
    %c0_48 = arith.constant 0 : index
    %c0_49 = arith.constant 0 : index
    %65 = vector.load %arg18[%c0_48, %c0_49] : memref<1x128xf32, #tpu.memory_space<vmem>>, vector<1x128xf32>
    %cst_50 = arith.constant 0.000000e+00 : f32
    %66 = vector.broadcast %cst_50 : f32 to vector<48x128xf32>
    %67 = vector.extract_strided_slice %36 {offsets = [16, 0], sizes = [32, 128], strides = [1, 1]} : vector<48x128xf32> to vector<32x128xf32>
    %68 = vector.extract_strided_slice %36 {offsets = [0, 0], sizes = [16, 128], strides = [1, 1]} : vector<48x128xf32> to vector<16x128xf32>
    %69 = tpu.concatenate %67, %68 in 0 : vector<32x128xf32>, vector<16x128xf32> -> vector<48x128xf32>
    %70 = arith.subf %36, %69 : vector<48x128xf32>
    %71 = tpu.concatenate %36, %70 in 1 : vector<48x128xf32>, vector<48x128xf32> -> vector<48x256xf32>
    %72 = arith.truncf %71 : vector<48x256xf32> to vector<48x256xbf16>
    %cst_51 = arith.constant dense<0.000000e+00> : vector<48x128xf32>
    %73 = tpu.matmul %72, %62, %cst_51 {dimension_numbers = #tpu.dot_dimension_numbers<[1], [0], [0], [1], [0, 0, 1, 1], [], []>} : vector<48x256xbf16>, vector<256x128xbf16>, vector<48x128xf32> -> vector<48x128xf32>
    %74 = vector.broadcast %63 : vector<1x128xf32> to vector<48x128xf32>
    %75 = arith.addf %73, %74 : vector<48x128xf32>
    %cst_52 = arith.constant 0.000000e+00 : f32
    %76 = vector.broadcast %cst_52 : f32 to vector<48x128xf32>
    %77 = arith.cmpf oge, %75, %76 : vector<48x128xf32>
    %cst_53 = arith.constant 0.00999999977 : f32
    %78 = vector.broadcast %cst_53 : f32 to vector<48x128xf32>
    %79 = arith.mulf %78, %75 : vector<48x128xf32>
    %80 = arith.select %77, %75, %79 : vector<48x128xi1>, vector<48x128xf32>
    %81 = tpu.concatenate %80, %36, %70 in 1 : vector<48x128xf32>, vector<48x128xf32>, vector<48x128xf32> -> vector<48x384xf32>
    %82 = arith.truncf %81 : vector<48x384xf32> to vector<48x384xbf16>
    %cst_54 = arith.constant dense<0.000000e+00> : vector<48x128xf32>
    %83 = tpu.matmul %82, %64, %cst_54 {dimension_numbers = #tpu.dot_dimension_numbers<[1], [0], [0], [1], [0, 0, 1, 1], [], []>} : vector<48x384xbf16>, vector<384x128xbf16>, vector<48x128xf32> -> vector<48x128xf32>
    %84 = vector.broadcast %65 : vector<1x128xf32> to vector<48x128xf32>
    %85 = arith.addf %83, %84 : vector<48x128xf32>
    %cst_55 = arith.constant 0.999994993 : f32
    %86 = vector.broadcast %cst_55 : f32 to vector<48x128xf32>
    %87 = arith.mulf %85, %86 : vector<48x128xf32>
    %cst_56 = arith.constant 0.000000e+00 : f32
    %88 = vector.broadcast %cst_56 : f32 to vector<48x128xf32>
    %89 = arith.cmpf oge, %87, %88 : vector<48x128xf32>
    %cst_57 = arith.constant 0.00999999977 : f32
    %90 = vector.broadcast %cst_57 : f32 to vector<48x128xf32>
    %91 = arith.mulf %90, %87 : vector<48x128xf32>
    %92 = arith.select %89, %87, %91 : vector<48x128xi1>, vector<48x128xf32>
    %93 = arith.addf %66, %92 : vector<48x128xf32>
    %94 = vector.extract_strided_slice %36 {offsets = [32, 0], sizes = [16, 128], strides = [1, 1]} : vector<48x128xf32> to vector<16x128xf32>
    %95 = vector.extract_strided_slice %36 {offsets = [0, 0], sizes = [32, 128], strides = [1, 1]} : vector<48x128xf32> to vector<32x128xf32>
    %96 = tpu.concatenate %94, %95 in 0 : vector<16x128xf32>, vector<32x128xf32> -> vector<48x128xf32>
    %97 = arith.subf %36, %96 : vector<48x128xf32>
    %98 = tpu.concatenate %36, %97 in 1 : vector<48x128xf32>, vector<48x128xf32> -> vector<48x256xf32>
    %99 = arith.truncf %98 : vector<48x256xf32> to vector<48x256xbf16>
    %cst_58 = arith.constant dense<0.000000e+00> : vector<48x128xf32>
    %100 = tpu.matmul %99, %62, %cst_58 {dimension_numbers = #tpu.dot_dimension_numbers<[1], [0], [0], [1], [0, 0, 1, 1], [], []>} : vector<48x256xbf16>, vector<256x128xbf16>, vector<48x128xf32> -> vector<48x128xf32>
    %101 = vector.broadcast %63 : vector<1x128xf32> to vector<48x128xf32>
    %102 = arith.addf %100, %101 : vector<48x128xf32>
    %cst_59 = arith.constant 0.000000e+00 : f32
    %103 = vector.broadcast %cst_59 : f32 to vector<48x128xf32>
    %104 = arith.cmpf oge, %102, %103 : vector<48x128xf32>
    %cst_60 = arith.constant 0.00999999977 : f32
    %105 = vector.broadcast %cst_60 : f32 to vector<48x128xf32>
    %106 = arith.mulf %105, %102 : vector<48x128xf32>
    %107 = arith.select %104, %102, %106 : vector<48x128xi1>, vector<48x128xf32>
    %108 = tpu.concatenate %107, %36, %97 in 1 : vector<48x128xf32>, vector<48x128xf32>, vector<48x128xf32> -> vector<48x384xf32>
    %109 = arith.truncf %108 : vector<48x384xf32> to vector<48x384xbf16>
    %cst_61 = arith.constant dense<0.000000e+00> : vector<48x128xf32>
    %110 = tpu.matmul %109, %64, %cst_61 {dimension_numbers = #tpu.dot_dimension_numbers<[1], [0], [0], [1], [0, 0, 1, 1], [], []>} : vector<48x384xbf16>, vector<384x128xbf16>, vector<48x128xf32> -> vector<48x128xf32>
    %111 = vector.broadcast %65 : vector<1x128xf32> to vector<48x128xf32>
    %112 = arith.addf %110, %111 : vector<48x128xf32>
    %cst_62 = arith.constant 0.999994993 : f32
    %113 = vector.broadcast %cst_62 : f32 to vector<48x128xf32>
    %114 = arith.mulf %112, %113 : vector<48x128xf32>
    %cst_63 = arith.constant 0.000000e+00 : f32
    %115 = vector.broadcast %cst_63 : f32 to vector<48x128xf32>
    %116 = arith.cmpf oge, %114, %115 : vector<48x128xf32>
    %cst_64 = arith.constant 0.00999999977 : f32
    %117 = vector.broadcast %cst_64 : f32 to vector<48x128xf32>
    %118 = arith.mulf %117, %114 : vector<48x128xf32>
    %119 = arith.select %116, %114, %118 : vector<48x128xi1>, vector<48x128xf32>
    %120 = arith.addf %93, %119 : vector<48x128xf32>
    %cst_65 = arith.constant 0.333333343 : f32
    %121 = vector.broadcast %cst_65 : f32 to vector<48x128xf32>
    %122 = arith.mulf %120, %121 : vector<48x128xf32>
    %123 = arith.addf %122, %36 : vector<48x128xf32>
    %c0_66 = arith.constant 0 : index
    %c0_67 = arith.constant 0 : index
    %124 = vector.load %arg19[%c0_66, %c0_67] : memref<256x128xbf16, #tpu.memory_space<vmem>>, vector<256x128xbf16>
    %c0_68 = arith.constant 0 : index
    %c0_69 = arith.constant 0 : index
    %125 = vector.load %arg20[%c0_68, %c0_69] : memref<1x128xf32, #tpu.memory_space<vmem>>, vector<1x128xf32>
    %c0_70 = arith.constant 0 : index
    %c0_71 = arith.constant 0 : index
    %126 = vector.load %arg21[%c0_70, %c0_71] : memref<384x128xbf16, #tpu.memory_space<vmem>>, vector<384x128xbf16>
    %c0_72 = arith.constant 0 : index
    %c0_73 = arith.constant 0 : index
    %127 = vector.load %arg22[%c0_72, %c0_73] : memref<1x128xf32, #tpu.memory_space<vmem>>, vector<1x128xf32>
    %cst_74 = arith.constant 0.000000e+00 : f32
    %128 = vector.broadcast %cst_74 : f32 to vector<80x128xf32>
    %129 = vector.extract_strided_slice %61 {offsets = [16, 0], sizes = [64, 128], strides = [1, 1]} : vector<80x128xf32> to vector<64x128xf32>
    %130 = vector.extract_strided_slice %61 {offsets = [0, 0], sizes = [16, 128], strides = [1, 1]} : vector<80x128xf32> to vector<16x128xf32>
    %131 = tpu.concatenate %129, %130 in 0 : vector<64x128xf32>, vector<16x128xf32> -> vector<80x128xf32>
    %132 = arith.subf %61, %131 : vector<80x128xf32>
    %133 = tpu.concatenate %61, %132 in 1 : vector<80x128xf32>, vector<80x128xf32> -> vector<80x256xf32>
    %134 = arith.truncf %133 : vector<80x256xf32> to vector<80x256xbf16>
    %cst_75 = arith.constant dense<0.000000e+00> : vector<80x128xf32>
    %135 = tpu.matmul %134, %124, %cst_75 {dimension_numbers = #tpu.dot_dimension_numbers<[1], [0], [0], [1], [0, 0, 1, 1], [], []>} : vector<80x256xbf16>, vector<256x128xbf16>, vector<80x128xf32> -> vector<80x128xf32>
    %136 = vector.broadcast %125 : vector<1x128xf32> to vector<80x128xf32>
    %137 = arith.addf %135, %136 : vector<80x128xf32>
    %cst_76 = arith.constant 0.000000e+00 : f32
    %138 = vector.broadcast %cst_76 : f32 to vector<80x128xf32>
    %139 = arith.cmpf oge, %137, %138 : vector<80x128xf32>
    %cst_77 = arith.constant 0.00999999977 : f32
    %140 = vector.broadcast %cst_77 : f32 to vector<80x128xf32>
    %141 = arith.mulf %140, %137 : vector<80x128xf32>
    %142 = arith.select %139, %137, %141 : vector<80x128xi1>, vector<80x128xf32>
    %143 = tpu.concatenate %142, %61, %132 in 1 : vector<80x128xf32>, vector<80x128xf32>, vector<80x128xf32> -> vector<80x384xf32>
    %144 = arith.truncf %143 : vector<80x384xf32> to vector<80x384xbf16>
    %cst_78 = arith.constant dense<0.000000e+00> : vector<80x128xf32>
    %145 = tpu.matmul %144, %126, %cst_78 {dimension_numbers = #tpu.dot_dimension_numbers<[1], [0], [0], [1], [0, 0, 1, 1], [], []>} : vector<80x384xbf16>, vector<384x128xbf16>, vector<80x128xf32> -> vector<80x128xf32>
    %146 = vector.broadcast %127 : vector<1x128xf32> to vector<80x128xf32>
    %147 = arith.addf %145, %146 : vector<80x128xf32>
    %cst_79 = arith.constant 0.999994993 : f32
    %148 = vector.broadcast %cst_79 : f32 to vector<80x128xf32>
    %149 = arith.mulf %147, %148 : vector<80x128xf32>
    %cst_80 = arith.constant 0.000000e+00 : f32
    %150 = vector.broadcast %cst_80 : f32 to vector<80x128xf32>
    %151 = arith.cmpf oge, %149, %150 : vector<80x128xf32>
    %cst_81 = arith.constant 0.00999999977 : f32
    %152 = vector.broadcast %cst_81 : f32 to vector<80x128xf32>
    %153 = arith.mulf %152, %149 : vector<80x128xf32>
    %154 = arith.select %151, %149, %153 : vector<80x128xi1>, vector<80x128xf32>
    %155 = arith.addf %128, %154 : vector<80x128xf32>
    %156 = vector.extract_strided_slice %61 {offsets = [32, 0], sizes = [48, 128], strides = [1, 1]} : vector<80x128xf32> to vector<48x128xf32>
    %157 = vector.extract_strided_slice %61 {offsets = [0, 0], sizes = [32, 128], strides = [1, 1]} : vector<80x128xf32> to vector<32x128xf32>
    %158 = tpu.concatenate %156, %157 in 0 : vector<48x128xf32>, vector<32x128xf32> -> vector<80x128xf32>
    %159 = arith.subf %61, %158 : vector<80x128xf32>
    %160 = tpu.concatenate %61, %159 in 1 : vector<80x128xf32>, vector<80x128xf32> -> vector<80x256xf32>
    %161 = arith.truncf %160 : vector<80x256xf32> to vector<80x256xbf16>
    %cst_82 = arith.constant dense<0.000000e+00> : vector<80x128xf32>
    %162 = tpu.matmul %161, %124, %cst_82 {dimension_numbers = #tpu.dot_dimension_numbers<[1], [0], [0], [1], [0, 0, 1, 1], [], []>} : vector<80x256xbf16>, vector<256x128xbf16>, vector<80x128xf32> -> vector<80x128xf32>
    %163 = vector.broadcast %125 : vector<1x128xf32> to vector<80x128xf32>
    %164 = arith.addf %162, %163 : vector<80x128xf32>
    %cst_83 = arith.constant 0.000000e+00 : f32
    %165 = vector.broadcast %cst_83 : f32 to vector<80x128xf32>
    %166 = arith.cmpf oge, %164, %165 : vector<80x128xf32>
    %cst_84 = arith.constant 0.00999999977 : f32
    %167 = vector.broadcast %cst_84 : f32 to vector<80x128xf32>
    %168 = arith.mulf %167, %164 : vector<80x128xf32>
    %169 = arith.select %166, %164, %168 : vector<80x128xi1>, vector<80x128xf32>
    %170 = tpu.concatenate %169, %61, %159 in 1 : vector<80x128xf32>, vector<80x128xf32>, vector<80x128xf32> -> vector<80x384xf32>
    %171 = arith.truncf %170 : vector<80x384xf32> to vector<80x384xbf16>
    %cst_85 = arith.constant dense<0.000000e+00> : vector<80x128xf32>
    %172 = tpu.matmul %171, %126, %cst_85 {dimension_numbers = #tpu.dot_dimension_numbers<[1], [0], [0], [1], [0, 0, 1, 1], [], []>} : vector<80x384xbf16>, vector<384x128xbf16>, vector<80x128xf32> -> vector<80x128xf32>
    %173 = vector.broadcast %127 : vector<1x128xf32> to vector<80x128xf32>
    %174 = arith.addf %172, %173 : vector<80x128xf32>
    %cst_86 = arith.constant 0.999994993 : f32
    %175 = vector.broadcast %cst_86 : f32 to vector<80x128xf32>
    %176 = arith.mulf %174, %175 : vector<80x128xf32>
    %cst_87 = arith.constant 0.000000e+00 : f32
    %177 = vector.broadcast %cst_87 : f32 to vector<80x128xf32>
    %178 = arith.cmpf oge, %176, %177 : vector<80x128xf32>
    %cst_88 = arith.constant 0.00999999977 : f32
    %179 = vector.broadcast %cst_88 : f32 to vector<80x128xf32>
    %180 = arith.mulf %179, %176 : vector<80x128xf32>
    %181 = arith.select %178, %176, %180 : vector<80x128xi1>, vector<80x128xf32>
    %182 = arith.addf %155, %181 : vector<80x128xf32>
    %183 = vector.extract_strided_slice %61 {offsets = [48, 0], sizes = [32, 128], strides = [1, 1]} : vector<80x128xf32> to vector<32x128xf32>
    %184 = vector.extract_strided_slice %61 {offsets = [0, 0], sizes = [48, 128], strides = [1, 1]} : vector<80x128xf32> to vector<48x128xf32>
    %185 = tpu.concatenate %183, %184 in 0 : vector<32x128xf32>, vector<48x128xf32> -> vector<80x128xf32>
    %186 = arith.subf %61, %185 : vector<80x128xf32>
    %187 = tpu.concatenate %61, %186 in 1 : vector<80x128xf32>, vector<80x128xf32> -> vector<80x256xf32>
    %188 = arith.truncf %187 : vector<80x256xf32> to vector<80x256xbf16>
    %cst_89 = arith.constant dense<0.000000e+00> : vector<80x128xf32>
    %189 = tpu.matmul %188, %124, %cst_89 {dimension_numbers = #tpu.dot_dimension_numbers<[1], [0], [0], [1], [0, 0, 1, 1], [], []>} : vector<80x256xbf16>, vector<256x128xbf16>, vector<80x128xf32> -> vector<80x128xf32>
    %190 = vector.broadcast %125 : vector<1x128xf32> to vector<80x128xf32>
    %191 = arith.addf %189, %190 : vector<80x128xf32>
    %cst_90 = arith.constant 0.000000e+00 : f32
    %192 = vector.broadcast %cst_90 : f32 to vector<80x128xf32>
    %193 = arith.cmpf oge, %191, %192 : vector<80x128xf32>
    %cst_91 = arith.constant 0.00999999977 : f32
    %194 = vector.broadcast %cst_91 : f32 to vector<80x128xf32>
    %195 = arith.mulf %194, %191 : vector<80x128xf32>
    %196 = arith.select %193, %191, %195 : vector<80x128xi1>, vector<80x128xf32>
    %197 = tpu.concatenate %196, %61, %186 in 1 : vector<80x128xf32>, vector<80x128xf32>, vector<80x128xf32> -> vector<80x384xf32>
    %198 = arith.truncf %197 : vector<80x384xf32> to vector<80x384xbf16>
    %cst_92 = arith.constant dense<0.000000e+00> : vector<80x128xf32>
    %199 = tpu.matmul %198, %126, %cst_92 {dimension_numbers = #tpu.dot_dimension_numbers<[1], [0], [0], [1], [0, 0, 1, 1], [], []>} : vector<80x384xbf16>, vector<384x128xbf16>, vector<80x128xf32> -> vector<80x128xf32>
    %200 = vector.broadcast %127 : vector<1x128xf32> to vector<80x128xf32>
    %201 = arith.addf %199, %200 : vector<80x128xf32>
    %cst_93 = arith.constant 0.999994993 : f32
    %202 = vector.broadcast %cst_93 : f32 to vector<80x128xf32>
    %203 = arith.mulf %201, %202 : vector<80x128xf32>
    %cst_94 = arith.constant 0.000000e+00 : f32
    %204 = vector.broadcast %cst_94 : f32 to vector<80x128xf32>
    %205 = arith.cmpf oge, %203, %204 : vector<80x128xf32>
    %cst_95 = arith.constant 0.00999999977 : f32
    %206 = vector.broadcast %cst_95 : f32 to vector<80x128xf32>
    %207 = arith.mulf %206, %203 : vector<80x128xf32>
    %208 = arith.select %205, %203, %207 : vector<80x128xi1>, vector<80x128xf32>
    %209 = arith.addf %182, %208 : vector<80x128xf32>
    %210 = vector.extract_strided_slice %61 {offsets = [64, 0], sizes = [16, 128], strides = [1, 1]} : vector<80x128xf32> to vector<16x128xf32>
    %211 = vector.extract_strided_slice %61 {offsets = [0, 0], sizes = [64, 128], strides = [1, 1]} : vector<80x128xf32> to vector<64x128xf32>
    %212 = tpu.concatenate %210, %211 in 0 : vector<16x128xf32>, vector<64x128xf32> -> vector<80x128xf32>
    %213 = arith.subf %61, %212 : vector<80x128xf32>
    %214 = tpu.concatenate %61, %213 in 1 : vector<80x128xf32>, vector<80x128xf32> -> vector<80x256xf32>
    %215 = arith.truncf %214 : vector<80x256xf32> to vector<80x256xbf16>
    %cst_96 = arith.constant dense<0.000000e+00> : vector<80x128xf32>
    %216 = tpu.matmul %215, %124, %cst_96 {dimension_numbers = #tpu.dot_dimension_numbers<[1], [0], [0], [1], [0, 0, 1, 1], [], []>} : vector<80x256xbf16>, vector<256x128xbf16>, vector<80x128xf32> -> vector<80x128xf32>
    %217 = vector.broadcast %125 : vector<1x128xf32> to vector<80x128xf32>
    %218 = arith.addf %216, %217 : vector<80x128xf32>
    %cst_97 = arith.constant 0.000000e+00 : f32
    %219 = vector.broadcast %cst_97 : f32 to vector<80x128xf32>
    %220 = arith.cmpf oge, %218, %219 : vector<80x128xf32>
    %cst_98 = arith.constant 0.00999999977 : f32
    %221 = vector.broadcast %cst_98 : f32 to vector<80x128xf32>
    %222 = arith.mulf %221, %218 : vector<80x128xf32>
    %223 = arith.select %220, %218, %222 : vector<80x128xi1>, vector<80x128xf32>
    %224 = tpu.concatenate %223, %61, %213 in 1 : vector<80x128xf32>, vector<80x128xf32>, vector<80x128xf32> -> vector<80x384xf32>
    %225 = arith.truncf %224 : vector<80x384xf32> to vector<80x384xbf16>
    %cst_99 = arith.constant dense<0.000000e+00> : vector<80x128xf32>
    %226 = tpu.matmul %225, %126, %cst_99 {dimension_numbers = #tpu.dot_dimension_numbers<[1], [0], [0], [1], [0, 0, 1, 1], [], []>} : vector<80x384xbf16>, vector<384x128xbf16>, vector<80x128xf32> -> vector<80x128xf32>
    %227 = vector.broadcast %127 : vector<1x128xf32> to vector<80x128xf32>
    %228 = arith.addf %226, %227 : vector<80x128xf32>
    %cst_100 = arith.constant 0.999994993 : f32
    %229 = vector.broadcast %cst_100 : f32 to vector<80x128xf32>
    %230 = arith.mulf %228, %229 : vector<80x128xf32>
    %cst_101 = arith.constant 0.000000e+00 : f32
    %231 = vector.broadcast %cst_101 : f32 to vector<80x128xf32>
    %232 = arith.cmpf oge, %230, %231 : vector<80x128xf32>
    %cst_102 = arith.constant 0.00999999977 : f32
    %233 = vector.broadcast %cst_102 : f32 to vector<80x128xf32>
    %234 = arith.mulf %233, %230 : vector<80x128xf32>
    %235 = arith.select %232, %230, %234 : vector<80x128xi1>, vector<80x128xf32>
    %236 = arith.addf %209, %235 : vector<80x128xf32>
    %cst_103 = arith.constant 2.000000e-01 : f32
    %237 = vector.broadcast %cst_103 : f32 to vector<80x128xf32>
    %238 = arith.mulf %236, %237 : vector<80x128xf32>
    %239 = arith.addf %238, %61 : vector<80x128xf32>
    %240 = arith.truncf %123 : vector<48x128xf32> to vector<48x128xbf16>
    %c0_104 = arith.constant 0 : index
    %c0_105 = arith.constant 0 : index
    %241 = vector.load %arg23[%c0_104, %c0_105] : memref<48x128xbf16, #tpu.memory_space<vmem>>, vector<48x128xbf16>
    tpu.vector_store %arg23[%c0_104, %c0_105], %240 {strides = array<i32>} : memref<48x128xbf16, #tpu.memory_space<vmem>>, vector<48x128xbf16>,
    %242 = arith.truncf %239 : vector<80x128xf32> to vector<80x128xbf16>
    %c0_106 = arith.constant 0 : index
    %c0_107 = arith.constant 0 : index
    %243 = vector.load %arg24[%c0_106, %c0_107] : memref<80x128xbf16, #tpu.memory_space<vmem>>, vector<80x128xbf16>
    tpu.vector_store %arg24[%c0_106, %c0_107], %242 {strides = array<i32>} : memref<80x128xbf16, #tpu.memory_space<vmem>>, vector<80x128xbf16>,
    return
  }
  func.func @transform_0(%arg0: i32) -> (i32, i32) {
    %c0_i32 = arith.constant 0 : i32
    %c0_i32_0 = arith.constant 0 : i32
    return %arg0, %c0_i32 : i32, i32
  }
  func.func @transform_1(%arg0: i32) -> (i32, i32) {
    %c0_i32 = arith.constant 0 : i32
    %c0_i32_0 = arith.constant 0 : i32
    return %arg0, %c0_i32 : i32, i32
  }
  func.func @transform_2(%arg0: i32) -> (i32, i32) {
    %c0_i32 = arith.constant 0 : i32
    %c0_i32_0 = arith.constant 0 : i32
    %c0_i32_1 = arith.constant 0 : i32
    return %c0_i32, %c0_i32_0 : i32, i32
  }
  func.func @transform_3(%arg0: i32) -> (i32, i32) {
    %c0_i32 = arith.constant 0 : i32
    %c0_i32_0 = arith.constant 0 : i32
    %c0_i32_1 = arith.constant 0 : i32
    return %c0_i32, %c0_i32_0 : i32, i32
  }
  func.func @transform_4(%arg0: i32) -> (i32, i32) {
    %c0_i32 = arith.constant 0 : i32
    %c0_i32_0 = arith.constant 0 : i32
    %c0_i32_1 = arith.constant 0 : i32
    return %c0_i32, %c0_i32_0 : i32, i32
  }
  func.func @transform_5(%arg0: i32) -> (i32, i32) {
    %c0_i32 = arith.constant 0 : i32
    %c0_i32_0 = arith.constant 0 : i32
    %c0_i32_1 = arith.constant 0 : i32
    return %c0_i32, %c0_i32_0 : i32, i32
  }
  func.func @transform_6(%arg0: i32) -> (i32, i32) {
    %c0_i32 = arith.constant 0 : i32
    %c0_i32_0 = arith.constant 0 : i32
    %c0_i32_1 = arith.constant 0 : i32
    return %c0_i32, %c0_i32_0 : i32, i32
  }
  func.func @transform_7(%arg0: i32) -> (i32, i32) {
    %c0_i32 = arith.constant 0 : i32
    %c0_i32_0 = arith.constant 0 : i32
    %c0_i32_1 = arith.constant 0 : i32
    return %c0_i32, %c0_i32_0 : i32, i32
  }
  func.func @transform_8(%arg0: i32) -> (i32, i32) {
    %c0_i32 = arith.constant 0 : i32
    %c0_i32_0 = arith.constant 0 : i32
    %c0_i32_1 = arith.constant 0 : i32
    return %c0_i32, %c0_i32_0 : i32, i32
  }
  func.func @transform_9(%arg0: i32) -> (i32, i32) {
    %c0_i32 = arith.constant 0 : i32
    %c0_i32_0 = arith.constant 0 : i32
    %c0_i32_1 = arith.constant 0 : i32
    return %c0_i32, %c0_i32_0 : i32, i32
  }
  func.func @transform_10(%arg0: i32) -> (i32, i32) {
    %c0_i32 = arith.constant 0 : i32
    %c0_i32_0 = arith.constant 0 : i32
    %c0_i32_1 = arith.constant 0 : i32
    return %c0_i32, %c0_i32_0 : i32, i32
  }
  func.func @transform_11(%arg0: i32) -> (i32, i32) {
    %c0_i32 = arith.constant 0 : i32
    %c0_i32_0 = arith.constant 0 : i32
    %c0_i32_1 = arith.constant 0 : i32
    return %c0_i32, %c0_i32_0 : i32, i32
  }
  func.func @transform_12(%arg0: i32) -> (i32, i32) {
    %c0_i32 = arith.constant 0 : i32
    %c0_i32_0 = arith.constant 0 : i32
    %c0_i32_1 = arith.constant 0 : i32
    return %c0_i32, %c0_i32_0 : i32, i32
  }
  func.func @transform_13(%arg0: i32) -> (i32, i32) {
    %c0_i32 = arith.constant 0 : i32
    %c0_i32_0 = arith.constant 0 : i32
    %c0_i32_1 = arith.constant 0 : i32
    return %c0_i32, %c0_i32_0 : i32, i32
  }
  func.func @transform_14(%arg0: i32) -> (i32, i32) {
    %c0_i32 = arith.constant 0 : i32
    %c0_i32_0 = arith.constant 0 : i32
    %c0_i32_1 = arith.constant 0 : i32
    return %c0_i32, %c0_i32_0 : i32, i32
  }
  func.func @transform_15(%arg0: i32) -> (i32, i32) {
    %c0_i32 = arith.constant 0 : i32
    %c0_i32_0 = arith.constant 0 : i32
    %c0_i32_1 = arith.constant 0 : i32
    return %c0_i32, %c0_i32_0 : i32, i32
  }
  func.func @transform_16(%arg0: i32) -> (i32, i32) {
    %c0_i32 = arith.constant 0 : i32
    %c0_i32_0 = arith.constant 0 : i32
    %c0_i32_1 = arith.constant 0 : i32
    return %c0_i32, %c0_i32_0 : i32, i32
  }
  func.func @transform_17(%arg0: i32) -> (i32, i32) {
    %c0_i32 = arith.constant 0 : i32
    %c0_i32_0 = arith.constant 0 : i32
    %c0_i32_1 = arith.constant 0 : i32
    return %c0_i32, %c0_i32_0 : i32, i32
  }
  func.func @transform_18(%arg0: i32) -> (i32, i32) {
    %c0_i32 = arith.constant 0 : i32
    %c0_i32_0 = arith.constant 0 : i32
    %c0_i32_1 = arith.constant 0 : i32
    return %c0_i32, %c0_i32_0 : i32, i32
  }
  func.func @transform_19(%arg0: i32) -> (i32, i32) {
    %c0_i32 = arith.constant 0 : i32
    %c0_i32_0 = arith.constant 0 : i32
    %c0_i32_1 = arith.constant 0 : i32
    return %c0_i32, %c0_i32_0 : i32, i32
  }
  func.func @transform_20(%arg0: i32) -> (i32, i32) {
    %c0_i32 = arith.constant 0 : i32
    %c0_i32_0 = arith.constant 0 : i32
    %c0_i32_1 = arith.constant 0 : i32
    return %c0_i32, %c0_i32_0 : i32, i32
  }
  func.func @transform_21(%arg0: i32) -> (i32, i32) {
    %c0_i32 = arith.constant 0 : i32
    %c0_i32_0 = arith.constant 0 : i32
    %c0_i32_1 = arith.constant 0 : i32
    return %c0_i32, %c0_i32_0 : i32, i32
  }
  func.func @transform_22(%arg0: i32) -> (i32, i32) {
    %c0_i32 = arith.constant 0 : i32
    %c0_i32_0 = arith.constant 0 : i32
    return %arg0, %c0_i32 : i32, i32
  }
  func.func @transform_23(%arg0: i32) -> (i32, i32) {
    %c0_i32 = arith.constant 0 : i32
    %c0_i32_0 = arith.constant 0 : i32
    return %arg0, %c0_i32 : i32, i32
  }
}

module attributes {stable_mosaic.version = 11 : i64} {
  func.func @_mlp4_kernel(%arg0: i32, %arg1: memref<48x256xbf16, #tpu.memory_space<vmem>>, %arg2: memref<48x128xbf16, #tpu.memory_space<vmem>>, %arg3: memref<384x128xbf16, #tpu.memory_space<vmem>>, %arg4: memref<1x128xf32, #tpu.memory_space<vmem>>, %arg5: memref<512x128xbf16, #tpu.memory_space<vmem>>, %arg6: memref<1x128xf32, #tpu.memory_space<vmem>>, %arg7: memref<48x128xf32, #tpu.memory_space<vmem>>) attributes {dimension_semantics = [#tpu.dimension_semantics<parallel>], iteration_bounds = array<i64: 1>, scalar_prefetch = 0 : i64, scratch_operands = 0 : i64, tpu.core_type = #tpu.core_type<tc>, window_params = [{transform_indices = @transform_0, window_bounds = array<i64: 48, 256>}, {transform_indices = @transform_1, window_bounds = array<i64: 48, 128>}, {pipeline_mode = #tpu.pipeline_mode<synchronous>, transform_indices = @transform_2, window_bounds = array<i64: 384, 128>}, {pipeline_mode = #tpu.pipeline_mode<synchronous>, transform_indices = @transform_3, window_bounds = array<i64: 1, 128>}, {pipeline_mode = #tpu.pipeline_mode<synchronous>, transform_indices = @transform_4, window_bounds = array<i64: 512, 128>}, {pipeline_mode = #tpu.pipeline_mode<synchronous>, transform_indices = @transform_5, window_bounds = array<i64: 1, 128>}, {transform_indices = @transform_6, window_bounds = array<i64: 48, 128>}]} {
    %c0 = arith.constant 0 : index
    %c0_0 = arith.constant 0 : index
    %0 = vector.load %arg1[%c0, %c0_0] : memref<48x256xbf16, #tpu.memory_space<vmem>>, vector<48x256xbf16>
    %c0_1 = arith.constant 0 : index
    %c0_2 = arith.constant 0 : index
    %1 = vector.load %arg2[%c0_1, %c0_2] : memref<48x128xbf16, #tpu.memory_space<vmem>>, vector<48x128xbf16>
    %2 = tpu.concatenate %0, %1 in 1 : vector<48x256xbf16>, vector<48x128xbf16> -> vector<48x384xbf16>
    %c0_3 = arith.constant 0 : index
    %c0_4 = arith.constant 0 : index
    %3 = vector.load %arg3[%c0_3, %c0_4] : memref<384x128xbf16, #tpu.memory_space<vmem>>, vector<384x128xbf16>
    %cst = arith.constant dense<0.000000e+00> : vector<48x128xf32>
    %4 = tpu.matmul %2, %3, %cst {dimension_numbers = #tpu.dot_dimension_numbers<[1], [0], [0], [1], [0, 0, 1, 1], [], []>} : vector<48x384xbf16>, vector<384x128xbf16>, vector<48x128xf32> -> vector<48x128xf32>
    %c0_5 = arith.constant 0 : index
    %c0_6 = arith.constant 0 : index
    %5 = vector.load %arg4[%c0_5, %c0_6] : memref<1x128xf32, #tpu.memory_space<vmem>>, vector<1x128xf32>
    %6 = vector.broadcast %5 : vector<1x128xf32> to vector<48x128xf32>
    %7 = arith.addf %4, %6 : vector<48x128xf32>
    %cst_7 = arith.constant 0.000000e+00 : f32
    %8 = vector.broadcast %cst_7 : f32 to vector<48x128xf32>
    %9 = arith.cmpf oge, %7, %8 : vector<48x128xf32>
    %cst_8 = arith.constant 0.00999999977 : f32
    %10 = vector.broadcast %cst_8 : f32 to vector<48x128xf32>
    %11 = arith.mulf %10, %7 : vector<48x128xf32>
    %12 = arith.select %9, %7, %11 : vector<48x128xi1>, vector<48x128xf32>
    %13 = arith.truncf %12 : vector<48x128xf32> to vector<48x128xbf16>
    %14 = tpu.concatenate %13, %2 in 1 : vector<48x128xbf16>, vector<48x384xbf16> -> vector<48x512xbf16>
    %c0_9 = arith.constant 0 : index
    %c0_10 = arith.constant 0 : index
    %15 = vector.load %arg5[%c0_9, %c0_10] : memref<512x128xbf16, #tpu.memory_space<vmem>>, vector<512x128xbf16>
    %cst_11 = arith.constant dense<0.000000e+00> : vector<48x128xf32>
    %16 = tpu.matmul %14, %15, %cst_11 {dimension_numbers = #tpu.dot_dimension_numbers<[1], [0], [0], [1], [0, 0, 1, 1], [], []>} : vector<48x512xbf16>, vector<512x128xbf16>, vector<48x128xf32> -> vector<48x128xf32>
    %c0_12 = arith.constant 0 : index
    %c0_13 = arith.constant 0 : index
    %17 = vector.load %arg6[%c0_12, %c0_13] : memref<1x128xf32, #tpu.memory_space<vmem>>, vector<1x128xf32>
    %18 = vector.broadcast %17 : vector<1x128xf32> to vector<48x128xf32>
    %19 = arith.addf %16, %18 : vector<48x128xf32>
    %cst_14 = arith.constant 0.999994993 : f32
    %20 = vector.broadcast %cst_14 : f32 to vector<48x128xf32>
    %21 = arith.mulf %19, %20 : vector<48x128xf32>
    %cst_15 = arith.constant 0.000000e+00 : f32
    %22 = vector.broadcast %cst_15 : f32 to vector<48x128xf32>
    %23 = arith.cmpf oge, %21, %22 : vector<48x128xf32>
    %cst_16 = arith.constant 0.00999999977 : f32
    %24 = vector.broadcast %cst_16 : f32 to vector<48x128xf32>
    %25 = arith.mulf %24, %21 : vector<48x128xf32>
    %26 = arith.select %23, %21, %25 : vector<48x128xi1>, vector<48x128xf32>
    %c0_17 = arith.constant 0 : index
    %c0_18 = arith.constant 0 : index
    %27 = vector.load %arg7[%c0_17, %c0_18] : memref<48x128xf32, #tpu.memory_space<vmem>>, vector<48x128xf32>
    tpu.vector_store %arg7[%c0_17, %c0_18], %26 {strides = array<i32>} : memref<48x128xf32, #tpu.memory_space<vmem>>, vector<48x128xf32>,
    return
  }
  func.func @transform_0(%arg0: i32) -> (i32, i32) {
    %c0_i32 = arith.constant 0 : i32
    %c0_i32_0 = arith.constant 0 : i32
    return %arg0, %c0_i32 : i32, i32
  }
  func.func @transform_1(%arg0: i32) -> (i32, i32) {
    %c0_i32 = arith.constant 0 : i32
    %c0_i32_0 = arith.constant 0 : i32
    return %arg0, %c0_i32 : i32, i32
  }
  func.func @transform_2(%arg0: i32) -> (i32, i32) {
    %c0_i32 = arith.constant 0 : i32
    %c0_i32_0 = arith.constant 0 : i32
    %c0_i32_1 = arith.constant 0 : i32
    return %c0_i32, %c0_i32_0 : i32, i32
  }
  func.func @transform_3(%arg0: i32) -> (i32, i32) {
    %c0_i32 = arith.constant 0 : i32
    %c0_i32_0 = arith.constant 0 : i32
    %c0_i32_1 = arith.constant 0 : i32
    return %c0_i32, %c0_i32_0 : i32, i32
  }
  func.func @transform_4(%arg0: i32) -> (i32, i32) {
    %c0_i32 = arith.constant 0 : i32
    %c0_i32_0 = arith.constant 0 : i32
    %c0_i32_1 = arith.constant 0 : i32
    return %c0_i32, %c0_i32_0 : i32, i32
  }
  func.func @transform_5(%arg0: i32) -> (i32, i32) {
    %c0_i32 = arith.constant 0 : i32
    %c0_i32_0 = arith.constant 0 : i32
    %c0_i32_1 = arith.constant 0 : i32
    return %c0_i32, %c0_i32_0 : i32, i32
  }
  func.func @transform_6(%arg0: i32) -> (i32, i32) {
    %c0_i32 = arith.constant 0 : i32
    %c0_i32_0 = arith.constant 0 : i32
    return %arg0, %c0_i32 : i32, i32
  }
}

</mosaic_0001>

<bundles_post_ra>
// kernel: s2att_forward.3
= control target key start
LH: loop header
LB: loop body
LE: loop exit
PB: predicated region body
PF: predicated region fallthrough
CT: control target
= control target key end

     0   :  { %v1107_v1 = vmov 0.0   ;;  %vm1108_vm0 = vmmov 0   ;;  %s1401_s2 = inlined_call_operand.vmem [shape: bf16[384,128], index: 2, kind: input, shape index: {}]   ;;  %s1402_s0 = inlined_call_operand.vmem [shape: bf16[48,256], index: 0, kind: input, shape index: {}]   ;;  %s1403_s1 = inlined_call_operand.vmem [shape: bf16[48,128], index: 1, kind: input, shape index: {}]   ;;  %s1404_s4 = inlined_call_operand.vmem [shape: bf16[512,128], index: 4, kind: input, shape index: {}]   ;;  %s1405_s3 = inlined_call_operand.vmem [shape: f32[1,128], index: 3, kind: input, shape index: {}]   ;;  %s1406_s5 = inlined_call_operand.vmem [shape: f32[1,128], index: 5, kind: input, shape index: {}]   ;;  %s1407_s6 = inlined_call_operand.vmem [shape: f32[48,128], index: 6, kind: output, shape index: {}]  }
   0x1   :  { %v1039_v0 = vld [vmem:[%s1401_s2 + $0x40] sm:$0xff]   ;;  %1009 = vmatprep.subr.bf16.mxu1 %v1107_v1  ;;  %1025 = vmatprep.mubr.msk.bf16.mxu1 %vm1108_vm0, %v1107_v1  ;;  %v1042_v4 = vld [vmem:[%s1401_s2 + $0x48] sm:$0xff]   ;;  %v1045_v7 = vld [vmem:[%s1401_s2 + $0x50] sm:$0xff]  }
   0x2   :  { %v1040_v2 = vld [vmem:[%s1401_s2] sm:$0xff]   ;;  %896 = vmatprep.subr.bf16.mxu0 %v1039_v0  ;;  %v1043_v5 = vld [vmem:[%s1401_s2 + $0x8] sm:$0xff]   ;;  %v1046_v8 = vld [vmem:[%s1401_s2 + $0x10] sm:$0xff]  }
   0x3   :  { %v1041_v3 = vld [vmem:[%s1401_s2 + $0x80] sm:$0xff]   ;;  %897 = vmatpush3.bf16.msra.mxu0 %v1040_v2  ;;  %v1044_v6 = vld [vmem:[%s1401_s2 + $0x88] sm:$0xff]   ;;  %v1047_v9 = vld [vmem:[%s1401_s2 + $0x90] sm:$0xff]  }
   0x4   :  { %1010 = vmatpush3.bf16.msra.mxu1 %v1041_v3  ;;  %898 = vmatprep.subr.bf16.mxu0 %v1042_v4  ;;  %v1048_v10 = vld [vmem:[%s1401_s2 + $0x58] sm:$0xff]   ;;  %v1051_v13 = vld [vmem:[%s1401_s2 + $0x60] sm:$0xff]   ;;  %v1054_v16 = vld [vmem:[%s1401_s2 + $0x68] sm:$0xff]  }
   0x5   :  { %1011 = vmatprep.subr.bf16.mxu1 %v1107_v1  ;;  %v1049_v11 = vld [vmem:[%s1401_s2 + $0x18] sm:$0xff]   ;;  %v1052_v14 = vld [vmem:[%s1401_s2 + $0x20] sm:$0xff]   ;;  %v1055_v17 = vld [vmem:[%s1401_s2 + $0x28] sm:$0xff]  }
   0x6   :  { %v1050_v12 = vld [vmem:[%s1401_s2 + $0x98] sm:$0xff]   ;;  %v1053_v15 = vld [vmem:[%s1401_s2 + $0xa0] sm:$0xff]   ;;  %v1056_v18 = vld [vmem:[%s1401_s2 + $0xa8] sm:$0xff]  }
   0x7   :  { %899 = vmatpush3.bf16.msra.mxu0 %v1043_v5  ;;  %v1057_v19 = vld [vmem:[%s1401_s2 + $0x70] sm:$0xff]   ;;  %v1060_v22 = vld [vmem:[%s1401_s2 + $0x78] sm:$0xff]   ;;  %v1221_v23 = vld [vmem:[%s1402_s0 + $0x4] ss:$8 sps:$4 sm:$0xff]  }
   0x8   :  { %1012 = vmatpush3.bf16.msra.mxu1 %v1044_v6  ;;  %900 = vmatprep.subr.bf16.mxu0 %v1045_v7  ;;  %v1058_v20 = vld [vmem:[%s1401_s2 + $0x30] sm:$0xff]   ;;  %v1061_v24 = vld [vmem:[%s1401_s2 + $0x38] sm:$0xff]   ;;  %v1062_v26 = vld [vmem:[%s1402_s0] ss:$8 sps:$4 sm:$0xff]  }
   0x9   :  { %1013 = vmatprep.subr.bf16.mxu1 %v1107_v1  ;;  %v1059_v21 = vld [vmem:[%s1401_s2 + $0xb0] sm:$0xff]   ;;  %315 = vmatprep.mubr.bf16.mxu0 %v1221_v23  ;;  %v1065_v25 = vld [vmem:[%s1401_s2 + $0xb8] sm:$0xff]   ;;  %v1066_v27 = vld [vmem:[%s1403_s1] sm:$0xff]  }
   0xa   :  { %v1241_v28 = vld [vmem:[%s1402_s0 + $0x14] ss:$8 sps:$4 sm:$0xff]   ;;  %v1075_v29 = vld [vmem:[%s1404_s4 + $0xc0] sm:$0xff]   ;;  %v1079_v33 = vld [vmem:[%s1404_s4 + $0xc8] sm:$0xff]  }
   0xb   :  { %901 = vmatpush3.bf16.msra.mxu0 %v1046_v8  ;;  %v1076_v30 = vld [vmem:[%s1404_s4 + $0x40] sm:$0xff]   ;;  %v1262_v34 = vld [vmem:[%s1402_s0 + $0x10] ss:$8 sps:$4 sm:$0xff]   ;;  %v1080_v35 = vld [vmem:[%s1404_s4 + $0x48] sm:$0xff]  }
   0xc   :  { %1014 = vmatpush3.bf16.msra.mxu1 %v1047_v9  ;;  %902 = vmatprep.subr.bf16.mxu0 %v1048_v10  ;;  %v1077_v31 = vld [vmem:[%s1404_s4 + $0x80] sm:$0xff]   ;;  %v1272_v36 = vld [vmem:[%s1403_s1 + $0x8] sm:$0xff]   ;;  %v1083_v40 = vld [vmem:[%s1404_s4 + $0xd0] sm:$0xff]  }
   0xd   :  { %1015 = vmatprep.subr.bf16.mxu1 %v1107_v1  ;;  %v1078_v32 = vld [vmem:[%s1404_s4] sm:$0xff]   ;;  %v1081_v38 = vld [vmem:[%s1404_s4 + $0x88] sm:$0xff]   ;;  %v1084_v41 = vld [vmem:[%s1404_s4 + $0x50] sm:$0xff]  }
   0xe   :  { %v1277_v37 = vld [vmem:[%s1402_s0 + $0x24] ss:$8 sps:$4 sm:$0xff]   ;;  %v1085_v42 = vld [vmem:[%s1404_s4 + $0x90] sm:$0xff]   ;;  %v1087_v44 = vld [vmem:[%s1404_s4 + $0xd8] sm:$0xff]  }
   0xf   :  { %903 = vmatpush3.bf16.msra.mxu0 %v1049_v11  ;;  %v1082_v39 = vld [vmem:[%s1404_s4 + $0x8] sm:$0xff]   ;;  %v1086_v43 = vld [vmem:[%s1404_s4 + $0x10] sm:$0xff]   ;;  %v1088_v46 = vld [vmem:[%s1404_s4 + $0x58] sm:$0xff]  }
  0x10   :  { %1016 = vmatpush3.bf16.msra.mxu1 %v1050_v12  ;;  %904 = vmatprep.subr.bf16.mxu0 %v1051_v13  ;;  %v1306_v45 = vld [vmem:[%s1402_s0 + $0x20] ss:$8 sps:$4 sm:$0xff]   ;;  %v1074_v47 = vld [vmem:[%s1403_s1 + $0x10] sm:$0xff]   ;;  %v1089_v48 = vld [vmem:[%s1404_s4 + $0x98] sm:$0xff]  }
  0x11   :  { %1017 = vmatprep.subr.bf16.mxu1 %v1107_v1  ;;  %v1090_v49 = vld [vmem:[%s1404_s4 + $0x18] sm:$0xff]   ;;  %v1091_v50 = vld [vmem:[%s1404_s4 + $0xe0] sm:$0xff]   ;;  %v1095_v54 = vld [vmem:[%s1404_s4 + $0xe8] sm:$0xff]  }
  0x12   :  { %v1092_v51 = vld [vmem:[%s1404_s4 + $0x60] sm:$0xff]   ;;  %v1096_v55 = vld [vmem:[%s1404_s4 + $0x68] sm:$0xff]   ;;  %v1099_v58 = vld [vmem:[%s1404_s4 + $0xf0] sm:$0xff]  }
  0x13   :  { %905 = vmatpush3.bf16.msra.mxu0 %v1052_v14  ;;  %v1093_v52 = vld [vmem:[%s1404_s4 + $0xa0] sm:$0xff]   ;;  %v1097_v56 = vld [vmem:[%s1404_s4 + $0xa8] sm:$0xff]   ;;  %v1100_v59 = vld [vmem:[%s1404_s4 + $0x70] sm:$0xff]  }
  0x14   :  { %1018 = vmatpush3.bf16.msra.mxu1 %v1053_v15  ;;  %906 = vmatprep.subr.bf16.mxu0 %v1054_v16  ;;  %v1094_v53 = vld [vmem:[%s1404_s4 + $0x20] sm:$0xff]   ;;  %v1098_v57 = vld [vmem:[%s1404_s4 + $0x28] sm:$0xff]   ;;  %v1101_v60 = vld [vmem:[%s1404_s4 + $0xb0] sm:$0xff]  }
  0x15   :  { %1019 = vmatprep.subr.bf16.mxu1 %v1107_v1  ;;  %v1102_v61 = vld [vmem:[%s1404_s4 + $0x30] sm:$0xff]   ;;  %v1103_v62 = vld [vmem:[%s1404_s4 + $0xf8] sm:$0xff]   ;;  %v838_v4 = vld [vmem:[%s1405_s3] ss:$0 sm:$0xff] }
  0x16   :  { %v1104_v63 = vld [vmem:[%s1404_s4 + $0x78] sm:$0xff]  }
  0x17   :  { %907 = vmatpush3.bf16.msra.mxu0 %v1055_v17  ;;  %v1105_v0 = vld [vmem:[%s1404_s4 + $0xb8] sm:$0xff]  }
  0x18   :  { %1020 = vmatpush3.bf16.msra.mxu1 %v1056_v18  ;;  %908 = vmatprep.subr.bf16.mxu0 %v1057_v19 }
  0x19   :  { %1021 = vmatprep.subr.bf16.mxu1 %v1107_v1 }
  0x1b   :  { %909 = vmatpush3.bf16.msra.mxu0 %v1058_v20 }
  0x1c   :  { %1022 = vmatpush3.bf16.msra.mxu1 %v1059_v21  ;;  %910 = vmatprep.subr.bf16.mxu0 %v1060_v22 }
  0x1d   :  { %1023 = vmatprep.subr.bf16.mxu1 %v1107_v1 }
  0x1f   :  { %911 = vmatpush3.bf16.msra.mxu0 %v1061_v24 }
  0x20   :  { %1024 = vmatpush3.bf16.msra.mxu1 %v1065_v25  ;;  %941 = vmatprep.subr.bf16.mxu0 %v1076_v30 }
  0x21   :  { %975 = vmatprep.subr.bf16.mxu1 %v1075_v29 }
  0x22   :  { %316 = vmatmul.mubr.bf16.vlgmr.msra.gmra.mrb[0].mxu0 %v1062_v26 }
  0x23   :  { %1026 = vmatmul.mubr.bf16.vlgmr.msra.gmra.mrb[0].mxu1 %v1066_v27  ;;  %323 = vmatprep.mubr.bf16.mxu0 %v1241_v28 }
  0x24   :  { %1029 = vmatprep.mubr.msk.bf16.mxu1 %vm1108_vm0, %v1107_v1  ;;  %976 = vmatpush3.bf16.msra.mxu1 %v1077_v31 }
  0x25   :  { %942 = vmatpush3.bf16.msra.mxu0 %v1078_v32  ;;  %977 = vmatprep.subr.bf16.mxu1 %v1079_v33 }
  0x26   :  { %943 = vmatprep.subr.bf16.mxu0 %v1080_v35 }
  0x28   :  { %978 = vmatpush3.bf16.msra.mxu1 %v1081_v38 }
  0x29   :  { %944 = vmatpush3.bf16.msra.mxu0 %v1082_v39  ;;  %979 = vmatprep.subr.bf16.mxu1 %v1083_v40 }
  0x2a   :  { %324 = vmatmul.mubr.bf16.gmra.mrb[4].mxu0 %v1262_v34  ;;  %945 = vmatprep.subr.bf16.mxu0 %v1084_v41 }
  0x2b   :  { %1030 = vmatmul.mubr.bf16.gmra.mrb[4].mxu1 %v1272_v36  ;;  %331 = vmatprep.mubr.bf16.mxu0 %v1277_v37 }
  0x2c   :  { %1033 = vmatprep.mubr.msk.bf16.mxu1 %vm1108_vm0, %v1107_v1  ;;  %980 = vmatpush3.bf16.msra.mxu1 %v1085_v42  ;;  %v1106_v1 = vld [vmem:[%s1404_s4 + $0x38] sm:$0xff]  }
  0x2d   :  { %946 = vmatpush3.bf16.msra.mxu0 %v1086_v43  ;;  %981 = vmatprep.subr.bf16.mxu1 %v1087_v44 }
  0x2e   :  { %947 = vmatprep.subr.bf16.mxu0 %v1088_v46 }
  0x30   :  { %982 = vmatpush3.bf16.msra.mxu1 %v1089_v48 }
  0x31   :  { %948 = vmatpush3.bf16.msra.mxu0 %v1090_v49  ;;  %983 = vmatprep.subr.bf16.mxu1 %v1091_v50 }
  0x32   :  { %332 = vmatmul.mubr.bf16.gmra.mrb[8].mxu0 %v1306_v45  ;;  %949 = vmatprep.subr.bf16.mxu0 %v1092_v51 }
  0x33   :  { %1034 = vmatmul.mubr.bf16.gmra.mrb[8].mxu1 %v1074_v47  ;;  %713 = vmatprep.mubr.bf16.mxu0 %v1062_v26 }
  0x34   :  { %984 = vmatpush3.bf16.msra.mxu1 %v1093_v52  ;;  %770 = vmatprep.mubr.bf16.mxu1 %v1066_v27 }
  0x35   :  { %950 = vmatpush3.bf16.msra.mxu0 %v1094_v53  ;;  %985 = vmatprep.subr.bf16.mxu1 %v1095_v54 }
  0x36   :  { %951 = vmatprep.subr.bf16.mxu0 %v1096_v55 }
  0x38   :  { %986 = vmatpush3.bf16.msra.mxu1 %v1097_v56 }
  0x39   :  { %952 = vmatpush3.bf16.msra.mxu0 %v1098_v57  ;;  %987 = vmatprep.subr.bf16.mxu1 %v1099_v58 }
  0x3a   :  { %953 = vmatprep.subr.bf16.mxu0 %v1100_v59 }
  0x3c   :  { %988 = vmatpush3.bf16.msra.mxu1 %v1101_v60 }
  0x3d   :  { %954 = vmatpush3.bf16.msra.mxu0 %v1102_v61  ;;  %989 = vmatprep.subr.bf16.mxu1 %v1103_v62 }
  0x3e   :  { %955 = vmatprep.subr.bf16.mxu0 %v1104_v63 }
  0x40   :  { %990 = vmatpush3.bf16.msra.mxu1 %v1105_v0 }
  0x41   :  { %956 = vmatpush3.bf16.msra.mxu0 %v1106_v1 }
  0x43   :  { %771 = vmatmul.mubr.bf16.vlgmr.msra.gmra.mrb[12].mxu1 %v1221_v23 }
  0x44   :  { %778 = vmatprep.mubr.bf16.mxu1 %v1272_v36 }
  0x4b   :  { %779 = vmatmul.mubr.bf16.gmra.mrb[16].mxu1 %v1241_v28 }
  0x4c   :  { %786 = vmatprep.mubr.bf16.mxu1 %v1074_v47 }
  0x53   :  { %787 = vmatmul.mubr.bf16.gmra.mrb[20].mxu1 %v1277_v37 }
  0xf5   :  { %v912_v2 = vpop.f32.mrb[0].mxu0 }
  0xf6   :  { %v913_v3 = vpop.f32.mrb[1].mxu0  ;;  %v374_v5 = vpop.f32.mrb[0].mxu1 }
  0xf7   :  { %v914_v6 = vadd.f32 %v913_v3, %v912_v2  ;;  %v915_v7 = vpop.f32.mrb[2].mxu0  ;;  %v1027_v8 = vpop.f32.mrb[1].mxu1 }
  0xf8   :  { %v916_v9 = vpop.f32.mrb[3].mxu0  ;;  %v377_v10 = vpop.f32.mrb[2].mxu1 }
  0xf9   :  { %v318_v11 = vadd.f32 %v914_v6, %v838_v4  ;;  %v917_v12 = vadd.f32 %v916_v9, %v915_v7  ;;  %v1028_v13 = vpop.f32.mrb[3].mxu1 }
  0xfb   :  { %v375_v14 = vadd.f32 %v374_v5, %v318_v11  ;;  %v321_v15 = vadd.f32 %v917_v12, %v838_v4 }
  0xfd   :  { %v403_v16 = vmul.f32 0.01, %v375_v14  ;;  %v378_v17 = vadd.f32 %v377_v10, %v321_v15  ;;  %v918_v18 = vpop.f32.mrb[4].mxu0  ;;  %vm397_vm1 = vcmp.ge.f32.partialorder %v375_v14, 0.0  ;;  %v863_v15 = vld [vmem:[%s1406_s5] ss:$0 sm:$0xff] }
  0xfe   :  { %v919_v19 = vpop.f32.mrb[5].mxu0  ;;  %v382_v20 = vpop.f32.mrb[4].mxu1 }
  0xff   :  { %vm398_vm2 = vcmp.ge.f32.partialorder %v378_v17, 0.0  ;;  %v404_v21 = vmul.f32 0.01, %v378_v17  ;;  %v920_v22 = vadd.f32 %v919_v19, %v918_v18  ;;  %v921_v23 = vpop.f32.mrb[6].mxu0  ;;  %v1031_v24 = vpop.f32.mrb[5].mxu1  ;;  %v409_v27 = vsel %vm397_vm1, %v375_v14, %v403_v16 }
 0x100   :  { %v922_v25 = vpop.f32.mrb[7].mxu0  ;;  %v385_v26 = vpop.f32.mrb[6].mxu1 }
 0x101   :  { %v410_v28 = vsel %vm398_vm2, %v378_v17, %v404_v21  ;;  %v326_v29 = vadd.f32 %v920_v22, %v838_v4  ;;  %v923_v30 = vadd.f32 %v922_v25, %v921_v23  ;;  %v1032_v31 = vpop.f32.mrb[7].mxu1 }
 0x102   :  { %v415_v32 = vpack.c.bf16 %v410_v28, %v409_v27 }
 0x103   :  { %v383_v33 = vadd.f32 %v382_v20, %v326_v29  ;;  %v329_v35 = vadd.f32 %v923_v30, %v838_v4 }
 0x104   :  { %714 = vmatmul.mubr.bf16.vlgmr.msra.gmra.mrb[12].mxu0 %v415_v32 }
 0x105   :  { %v405_v36 = vmul.f32 0.01, %v383_v33  ;;  %v386_v37 = vadd.f32 %v385_v26, %v329_v35  ;;  %v924_v38 = vpop.f32.mrb[8].mxu0  ;;  %721 = vmatprep.mubr.bf16.mxu0 %v1262_v34  ;;  %vm399_vm3 = vcmp.ge.f32.partialorder %v383_v33, 0.0 }
 0x106   :  { %v925_v39 = vpop.f32.mrb[9].mxu0  ;;  %v390_v40 = vpop.f32.mrb[8].mxu1 }
 0x107   :  { %vm400_vm4 = vcmp.ge.f32.partialorder %v386_v37, 0.0  ;;  %v406_v41 = vmul.f32 0.01, %v386_v37  ;;  %v926_v42 = vadd.f32 %v925_v39, %v924_v38  ;;  %v927_v43 = vpop.f32.mrb[10].mxu0  ;;  %v1035_v44 = vpop.f32.mrb[9].mxu1  ;;  %v411_v51 = vsel %vm399_vm3, %v383_v33, %v405_v36 }
 0x108   :  { %v928_v46 = vpop.f32.mrb[11].mxu0  ;;  %v393_v47 = vpop.f32.mrb[10].mxu1 }
 0x109   :  { %v334_v48 = vadd.f32 %v926_v42, %v838_v4  ;;  %v929_v49 = vadd.f32 %v928_v46, %v927_v43  ;;  %v1036_v50 = vpop.f32.mrb[11].mxu1  ;;  %v412_v52 = vsel %vm400_vm4, %v386_v37, %v406_v41 }
 0x10a   :  { %v416_v53 = vpack.c.bf16 %v412_v52, %v411_v51 }
 0x10b   :  { %v391_v54 = vadd.f32 %v390_v40, %v334_v48  ;;  %v337_v55 = vadd.f32 %v929_v49, %v838_v4 }
 0x10c   :  { %722 = vmatmul.mubr.bf16.gmra.mrb[16].mxu0 %v416_v53 }
 0x10d   :  { %v407_v34 = vmul.f32 0.01, %v391_v54  ;;  %v394_v56 = vadd.f32 %v393_v47, %v337_v55  ;;  %729 = vmatprep.mubr.bf16.mxu0 %v1306_v45  ;;  %vm401_vm5 = vcmp.ge.f32.partialorder %v391_v54, 0.0 }
 0x10f   :  { %vm402_vm6 = vcmp.ge.f32.partialorder %v394_v56, 0.0  ;;  %v408_v57 = vmul.f32 0.01, %v394_v56  ;;  %v413_v58 = vsel %vm401_vm5, %v391_v54, %v407_v34 }
 0x111   :  { %v414_v59 = vsel %vm402_vm6, %v394_v56, %v408_v57 }
 0x112   :  { %v417_v60 = vpack.c.bf16 %v414_v59, %v413_v58 }
 0x114   :  { %730 = vmatmul.mubr.bf16.gmra.mrb[20].mxu0 %v417_v60 }
 0x116   :  { %v991_v61 = vpop.f32.mrb[12].mxu1 }
 0x117   :  { %v992_v62 = vpop.f32.mrb[13].mxu1 }
 0x118   :  { %v993_v63 = vadd.f32 %v992_v62, %v991_v61  ;;  %v994_v0 = vpop.f32.mrb[14].mxu1 }
 0x119   :  { %v995_v1 = vpop.f32.mrb[15].mxu1 }
 0x11a   :  { %v996_v2 = vadd.f32 %v995_v1, %v994_v0 }
 0x11e   :  { %v997_v3 = vpop.f32.mrb[16].mxu1 }
 0x11f   :  { %v998_v4 = vpop.f32.mrb[17].mxu1 }
 0x120   :  { %v1000_v5 = vpop.f32.mrb[18].mxu1  ;;  %v999_v7 = vadd.f32 %v998_v4, %v997_v3 }
 0x121   :  { %v1001_v6 = vpop.f32.mrb[19].mxu1 }
 0x122   :  { %v1002_v8 = vadd.f32 %v1001_v6, %v1000_v5 }
 0x126   :  { %v1003_v45 = vpop.f32.mrb[20].mxu1 }
 0x127   :  { %v1004_v9 = vpop.f32.mrb[21].mxu1 }
 0x128   :  { %v1006_v10 = vpop.f32.mrb[22].mxu1  ;;  %v1005_v12 = vadd.f32 %v1004_v9, %v1003_v45 }
 0x129   :  { %v1007_v11 = vpop.f32.mrb[23].mxu1 }
 0x12a   :  { %v1008_v13 = vadd.f32 %v1007_v11, %v1006_v10 }
 0x1d7   :  { %v957_v14 = vpop.f32.mrb[12].mxu0 }
 0x1d8   :  { %v958_v16 = vpop.f32.mrb[13].mxu0 }
 0x1d9   :  { %v959_v17 = vadd.f32 %v958_v16, %v957_v14  ;;  %v960_v18 = vpop.f32.mrb[14].mxu0 }
 0x1da   :  { %v961_v19 = vpop.f32.mrb[15].mxu0 }
 0x1db   :  { %v716_v20 = vadd.f32 %v959_v17, %v863_v15  ;;  %v962_v21 = vadd.f32 %v961_v19, %v960_v18 }
 0x1dd   :  { %v773_v22 = vadd.f32 %v993_v63, %v716_v20  ;;  %v719_v23 = vadd.f32 %v962_v21, %v863_v15 }
 0x1df   :  { %v795_v24 = vmul.f32 0.999995, %v773_v22  ;;  %v776_v25 = vadd.f32 %v996_v2, %v719_v23  ;;  %v963_v26 = vpop.f32.mrb[16].mxu0 }
 0x1e0   :  { %v964_v27 = vpop.f32.mrb[17].mxu0 }
 0x1e1   :  { %vm801_vm7 = vcmp.ge.f32.partialorder %v795_v24, 0.0  ;;  %v807_v28 = vmul.f32 0.01, %v795_v24  ;;  %v796_v29 = vmul.f32 0.999995, %v776_v25  ;;  %v965_v30 = vadd.f32 %v964_v27, %v963_v26  ;;  %v966_v31 = vpop.f32.mrb[18].mxu0 }
 0x1e2   :  { %v967_v32 = vpop.f32.mrb[19].mxu0 }
 0x1e3   :  { %v813_v33 = vsel %vm801_vm7, %v795_v24, %v807_v28  ;;  %vm802_vm8 = vcmp.ge.f32.partialorder %v796_v29, 0.0  ;;  %v808_v35 = vmul.f32 0.01, %v796_v29  ;;  %v724_v36 = vadd.f32 %v965_v30, %v863_v15 }
 0x1e4   :  { %819 = vst [vmem:[%s1407_s6] sm:$0xff] %v813_v33  ;;  %v968_v37 = vadd.f32 %v967_v32, %v966_v31 }
 0x1e5   :  { %v814_v38 = vsel %vm802_vm8, %v796_v29, %v808_v35  ;;  %v781_v39 = vadd.f32 %v999_v7, %v724_v36 }
 0x1e6   :  { %820 = vst [vmem:[%s1407_s6 + $0x8] sm:$0xff] %v814_v38  ;;  %v727_v40 = vadd.f32 %v968_v37, %v863_v15 }
 0x1e7   :  { %v797_v41 = vmul.f32 0.999995, %v781_v39  ;;  %v969_v42 = vpop.f32.mrb[20].mxu0 }
 0x1e8   :  { %v784_v43 = vadd.f32 %v1002_v8, %v727_v40  ;;  %v970_v44 = vpop.f32.mrb[21].mxu0 }
 0x1e9   :  { %vm803_vm9 = vcmp.ge.f32.partialorder %v797_v41, 0.0  ;;  %v809_v46 = vmul.f32 0.01, %v797_v41  ;;  %v971_v47 = vadd.f32 %v970_v44, %v969_v42  ;;  %v972_v48 = vpop.f32.mrb[22].mxu0 }
 0x1ea   :  { %v798_v49 = vmul.f32 0.999995, %v784_v43  ;;  %v973_v50 = vpop.f32.mrb[23].mxu0 }
 0x1eb   :  { %v815_v51 = vsel %vm803_vm9, %v797_v41, %v809_v46  ;;  %v732_v52 = vadd.f32 %v971_v47, %v863_v15  ;;  %v974_v53 = vadd.f32 %v973_v50, %v972_v48 }
 0x1ec   :  { %821 = vst [vmem:[%s1407_s6 + $0x10] sm:$0xff] %v815_v51  ;;  %vm804_vm10 = vcmp.ge.f32.partialorder %v798_v49, 0.0  ;;  %v810_v54 = vmul.f32 0.01, %v798_v49 }
 0x1ed   :  { %v789_v55 = vadd.f32 %v1005_v12, %v732_v52  ;;  %v735_v34 = vadd.f32 %v974_v53, %v863_v15 }
 0x1ee   :  { %v816_v56 = vsel %vm804_vm10, %v798_v49, %v810_v54 }
 0x1ef   :  { %822 = vst [vmem:[%s1407_s6 + $0x18] sm:$0xff] %v816_v56  ;;  %v799_v57 = vmul.f32 0.999995, %v789_v55  ;;  %v792_v58 = vadd.f32 %v1008_v13, %v735_v34 }
 0x1f1   :  { %vm805_vm11 = vcmp.ge.f32.partialorder %v799_v57, 0.0  ;;  %v811_v59 = vmul.f32 0.01, %v799_v57  ;;  %v800_v60 = vmul.f32 0.999995, %v792_v58 }
 0x1f3   :  { %v817_v61 = vsel %vm805_vm11, %v799_v57, %v811_v59  ;;  %vm806_vm12 = vcmp.ge.f32.partialorder %v800_v60, 0.0  ;;  %v812_v62 = vmul.f32 0.01, %v800_v60 }
 0x1f4   :  { %823 = vst [vmem:[%s1407_s6 + $0x20] sm:$0xff] %v817_v61 }
 0x1f5   :  { %v818_v63 = vsel %vm806_vm12, %v800_v60, %v812_v62 }
 0x1f6   :  { %824 = vst [vmem:[%s1407_s6 + $0x28] sm:$0xff] %v818_v63 }

// kernel: s2att_forward.2
= control target key start
LH: loop header
LB: loop body
LE: loop exit
PB: predicated region body
PF: predicated region fallthrough
CT: control target
= control target key end

     0   :  { %v7288_v0 = vmov 0.0   ;;  %vm5201_vm0 = vmmov 0   ;;  %vm172_vm1 = vcmask 1043456   ;;  %vm311_vm2 = vcmask 588800   ;;  %s7255_s2 = inlined_call_operand.vmem [shape: bf16[120,128], index: 2, kind: input, shape index: {}]   ;;  %s7256_s0 = inlined_call_operand.vmem [shape: bf16[48,120], index: 0, kind: input, shape index: {}]   ;;  %s7257_s4 = inlined_call_operand.vmem [shape: bf16[72,128], index: 4, kind: input, shape index: {}]   ;;  %s7258_s1 = inlined_call_operand.vmem [shape: bf16[80,72], index: 1, kind: input, shape index: {}]   ;;  %s7259_s6 = inlined_call_operand.vmem [shape: bf16[128,128], index: 6, kind: input, shape index: {}]   ;;  %s7260_s10 = inlined_call_operand.vmem [shape: bf16[128,128], index: 10, kind: input, shape index: {}]   ;;  %s7261_s8 = inlined_call_operand.vmem [shape: bf16[256,128], index: 8, kind: input, shape index: {}]   ;;  %s7262_s5 = inlined_call_operand.vmem [shape: f32[1,128], index: 5, kind: input, shape index: {}]   ;;  %s7263_s3 = inlined_call_operand.vmem [shape: f32[1,128], index: 3, kind: input, shape index: {}]   ;;  %s7264_s12 = inlined_call_operand.vmem [shape: bf16[256,128], index: 12, kind: input, shape index: {}]   ;;  %s7265_s14 = inlined_call_operand.vmem [shape: bf16[256,128], index: 14, kind: input, shape index: {}]   ;;  %s7266_s7 = inlined_call_operand.vmem [shape: f32[1,128], index: 7, kind: input, shape index: {}]   ;;  %s7267_s11 = inlined_call_operand.vmem [shape: f32[1,128], index: 11, kind: input, shape index: {}]   ;;  %s7268_s16 = inlined_call_operand.vmem [shape: bf16[384,128], index: 16, kind: input, shape index: {}]   ;;  %s7269_s9 = inlined_call_operand.vmem [shape: f32[1,128], index: 9, kind: input, shape index: {}]   ;;  %s7270_s13 = inlined_call_operand.vmem [shape: f32[1,128], index: 13, kind: input, shape index: {}]   ;;  %s7271_s15 = inlined_call_operand.vmem [shape: f32[1,128], index: 15, kind: input, shape index: {}]   ;;  %s7272_s18 = inlined_call_operand.vmem [shape: bf16[256,128], index: 18, kind: input, shape index: {}]   ;;  %s7273_s20 = inlined_call_operand.vmem [shape: bf16[384,128], index: 20, kind: input, shape index: {}]   ;;  %s7274_s17 = inlined_call_operand.vmem [shape: f32[1,128], index: 17, kind: input, shape index: {}]   ;;  %s7275_s22 = inlined_call_operand.vmem [shape: bf16[48,128], index: 22, kind: output, shape index: {0}]   ;;  %s7276_s19 = inlined_call_operand.vmem [shape: f32[1,128], index: 19, kind: input, shape index: {}]   ;;  %s7277_s21 = inlined_call_operand.vmem [shape: f32[1,128], index: 21, kind: input, shape index: {}]   ;;  %s7278_s23 = inlined_call_operand.vmem [shape: bf16[80,128], index: 23, kind: output, shape index: {1}]  }
   0x1   :  { %7341 = sst [smem:[#allocation35_spill]] %s7255_s2  ;;  %4685 = vmatprep.subr.bf16.mxu0 %v7288_v0  ;;  %4701 = vmatprep.mubr.msk.bf16.mxu0 %vm5201_vm0, %v7288_v0  ;;  %vm162_vm3 = vcmask 982016   ;;  %v3737_v48 = vld [vmem:[%s7263_s3] ss:$0 sm:$0xff] }
   0x2   :  { %7342 = sst [smem:[#allocation36_spill]] %s7256_s0  ;;  %s7349_s24 = sld [smem:[#allocation35_spill]]  ;;  %4713 = vmatprep.subr.bf16.mxu1 %v7288_v0  ;;  %4723 = vmatprep.mubr.msk.bf16.mxu1 %vm5201_vm0, %v7288_v0 }
   0x3   :  { %7343 = sst [smem:[#allocation37_spill]] %s7257_s4  ;;  %s7353_s4 = sld [smem:[#allocation36_spill]] }
   0x4   :  { %7344 = sst [smem:[#allocation38_spill]] %s7258_s1  ;;  %s7350_s28 = sld [smem:[#allocation37_spill]] }
   0x5   :  { %7345 = sst [smem:[#allocation39_spill]] %s7259_s6  ;;  %s7351_s30 = sld [smem:[#allocation38_spill]] }
   0x6   :  { %7346 = sst [smem:[#allocation40_spill]] %s7260_s10  ;;  %s7352_s0 = sld [smem:[#allocation39_spill]] }
   0x7   :  { %7347 = sst [smem:[#allocation41_spill]] %s7261_s8  ;;  %s7356_s2 = sld [smem:[#allocation40_spill]] }
   0x8   :  { %7348 = sst [smem:[#allocation42_spill]] %s7262_s5  ;;  %v5009_v1 = vld [vmem:[%s7349_s24] sm:$0xff]   ;;  %v5010_v2 = vld [vmem:[%s7349_s24 + $0x8] sm:$0xff]   ;;  %v5011_v3 = vld [vmem:[%s7349_s24 + $0x10] sm:$0xff]   ;;  %s7354_s29 = sld [smem:[#allocation41_spill]] }
   0x9   :  { %4686 = vmatpush3.bf16.msra.mxu0 %v5009_v1  ;;  %v5012_v4 = vld [vmem:[%s7349_s24 + $0x18] sm:$0xff]   ;;  %v5013_v7 = vld [vmem:[%s7349_s24 + $0x20] sm:$0xff]   ;;  %v5014_v9 = vld [vmem:[%s7349_s24 + $0x28] sm:$0xff]   ;;  %s7355_s26 = sld [smem:[#allocation42_spill]] }
   0xa   :  { %4687 = vmatprep.subr.bf16.mxu0 %v7288_v0  ;;  %v5019_v5 = vld [vmem:[%s7350_s28] sm:$0xff]   ;;  %v5021_v6 = vld [vmem:[%s7350_s28 + $0x8] sm:$0xff]   ;;  %v5022_v8 = vld [vmem:[%s7350_s28 + $0x10] sm:$0xff]  }
   0xb   :  { %4714 = vmatpush3.bf16.msra.mxu1 %v5019_v5  ;;  %v5023_v10 = vld [vmem:[%s7350_s28 + $0x18] sm:$0xff]   ;;  %v5024_v11 = vld [vmem:[%s7350_s28 + $0x20] ss:$0 sps:$4 sm:$0xff]   ;;  %v5015_v12 = vld [vmem:[%s7349_s24 + $0x30] sm:$0xff]  }
   0xc   :  { %4715 = vmatprep.subr.bf16.mxu1 %v7288_v0  ;;  %v5016_v13 = vld [vmem:[%s7349_s24 + $0x38] ss:$0 sps:$4 sm:$0xff]   ;;  %v328_v14 = vsel %vm172_vm1, %v5024_v11, 0  ;;  %v5025_v16 = vld [vmem:[%s7351_s30] sm:$0xff]   ;;  %v5031_v19 = vld [vmem:[%s7352_s0 + $0x8] sm:$0xff]  }
   0xd   :  { %4688 = vmatpush3.bf16.msra.mxu0 %v5010_v2  ;;  %v174_v15 = vsel %vm172_vm1, %v5016_v13, 0  ;;  %v5030_v17 = vld [vmem:[%s7352_s0] sm:$0xff]   ;;  %v5026_v20 = vld [vmem:[%s7351_s30 + $0x8] sm:$0xff]   ;;  %v5032_v21 = vld [vmem:[%s7352_s0 + $0x10] sm:$0xff]  }
   0xe   :  { %4689 = vmatprep.subr.bf16.mxu0 %v7288_v0  ;;  %v5017_v18 = vld [vmem:[%s7353_s4] sm:$0xff]   ;;  %v5018_v22 = vld [vmem:[%s7353_s4 + $0x8] sm:$0xff]   ;;  %v5033_v23 = vld [vmem:[%s7352_s0 + $0x18] sm:$0xff]  }
   0xf   :  { %4716 = vmatpush3.bf16.msra.mxu1 %v5021_v6  ;;  %v5027_v24 = vld [vmem:[%s7351_s30 + $0x10] sm:$0xff]   ;;  %v5034_v25 = vld [vmem:[%s7352_s0 + $0x20] sm:$0xff]   ;;  %v5035_v27 = vld [vmem:[%s7352_s0 + $0x28] sm:$0xff]  }
  0x10   :  { %4717 = vmatprep.subr.bf16.mxu1 %v7288_v0  ;;  %v5020_v26 = vld [vmem:[%s7353_s4 + $0x10] sm:$0xff]   ;;  %v5028_v28 = vld [vmem:[%s7351_s30 + $0x18] sm:$0xff]   ;;  %v5029_v30 = vld [vmem:[%s7351_s30 + $0x20] sm:$0xff]  }
  0x11   :  { %4690 = vmatpush3.bf16.msra.mxu0 %v5011_v3  ;;  %v5036_v29 = vld [vmem:[%s7352_s0 + $0x30] sm:$0xff]   ;;  %v5037_v31 = vld [vmem:[%s7352_s0 + $0x38] sm:$0xff]   ;;  %v5046_v32 = vld [vmem:[%s7354_s29 + $0x40] sm:$0xff]  }
  0x12   :  { %4691 = vmatprep.subr.bf16.mxu0 %v7288_v0  ;;  %v5047_v33 = vld [vmem:[%s7354_s29] sm:$0xff]   ;;  %v5048_v34 = vld [vmem:[%s7354_s29 + $0x48] sm:$0xff]   ;;  %v5050_v36 = vld [vmem:[%s7354_s29 + $0x50] sm:$0xff]  }
  0x13   :  { %4718 = vmatpush3.bf16.msra.mxu1 %v5022_v8  ;;  %v5049_v35 = vld [vmem:[%s7354_s29 + $0x8] sm:$0xff]   ;;  %v5051_v37 = vld [vmem:[%s7354_s29 + $0x10] sm:$0xff]   ;;  %v5052_v38 = vld [vmem:[%s7354_s29 + $0x58] sm:$0xff]  }
  0x14   :  { %4719 = vmatprep.subr.bf16.mxu1 %v7288_v0  ;;  %v5053_v39 = vld [vmem:[%s7354_s29 + $0x18] sm:$0xff]   ;;  %v5054_v40 = vld [vmem:[%s7354_s29 + $0x60] sm:$0xff]   ;;  %v5056_v42 = vld [vmem:[%s7354_s29 + $0x68] sm:$0xff]  }
  0x15   :  { %4692 = vmatpush3.bf16.msra.mxu0 %v5012_v4  ;;  %v5055_v41 = vld [vmem:[%s7354_s29 + $0x20] sm:$0xff]   ;;  %v5057_v43 = vld [vmem:[%s7354_s29 + $0x28] sm:$0xff]  }
  0x16   :  { %4693 = vmatprep.subr.bf16.mxu0 %v7288_v0  ;;  %v5496_v44 = vld [vmem:[%s7355_s26] ss:$0 sm:$0xff]  ;;  %v5039_v2 = vld [vmem:[%s7356_s2 + $0x8] sm:$0xff]  }
  0x17   :  { %4720 = vmatpush3.bf16.msra.mxu1 %v5023_v10  ;;  %v5038_v59 = vld [vmem:[%s7356_s2] sm:$0xff]  }
  0x18   :  { %4721 = vmatprep.subr.bf16.mxu1 %v7288_v0 }
  0x19   :  { %4694 = vmatpush3.bf16.msra.mxu0 %v5013_v7 }
  0x1a   :  { %4695 = vmatprep.subr.bf16.mxu0 %v7288_v0 }
  0x1b   :  { %4722 = vmatpush3.bf16.msra.mxu1 %v328_v14 }
  0x1c   :  { %4743 = vmatprep.subr.bf16.mxu1 %v7288_v0 }
  0x1d   :  { %4696 = vmatpush3.bf16.msra.mxu0 %v5014_v9 }
  0x1e   :  { %4697 = vmatprep.subr.bf16.mxu0 %v7288_v0  ;;  %4724 = vmatmul.mubr.msk.bf16.vlgmr.msra.gmra.mrb[0].mxu1 %vm311_vm2, %v5025_v16 }
  0x1f   :  { %4727 = vmatprep.mubr.msk.bf16.mxu1 %vm5201_vm0, %v7288_v0  ;;  %4744 = vmatpush3.bf16.msra.mxu1 %v5030_v17 }
  0x20   :  { %4745 = vmatprep.subr.bf16.mxu1 %v7288_v0 }
  0x21   :  { %4698 = vmatpush3.bf16.msra.mxu0 %v5015_v12  ;;  %v5040_v12 = vld [vmem:[%s7356_s2 + $0x10] sm:$0xff]  }
  0x22   :  { %4699 = vmatprep.subr.bf16.mxu0 %v7288_v0 }
  0x23   :  { %4746 = vmatpush3.bf16.msra.mxu1 %v5031_v19 }
  0x24   :  { %4747 = vmatprep.subr.bf16.mxu1 %v7288_v0 }
  0x25   :  { %4700 = vmatpush3.bf16.msra.mxu0 %v174_v15 }
  0x26   :  { %4728 = vmatmul.mubr.msk.bf16.gmra.mrb[4].mxu1 %vm311_vm2, %v5026_v20  ;;  %4014 = vmatprep.subr.bf16.mxu0 %v5046_v32 }
  0x27   :  { %4731 = vmatprep.mubr.msk.bf16.mxu1 %vm5201_vm0, %v7288_v0  ;;  %4748 = vmatpush3.bf16.msra.mxu1 %v5032_v21 }
  0x28   :  { %4702 = vmatmul.mubr.msk.bf16.vlgmr.msra.gmra.mrb[0].mxu0 %vm162_vm3, %v5017_v18  ;;  %4749 = vmatprep.subr.bf16.mxu1 %v7288_v0  ;;  %v5041_v18 = vld [vmem:[%s7356_s2 + $0x18] sm:$0xff]  }
  0x29   :  { %4705 = vmatprep.mubr.msk.bf16.mxu0 %vm5201_vm0, %v7288_v0  ;;  %4015 = vmatpush3.bf16.msra.mxu0 %v5047_v33  ;;  %v5043_v33 = vld [vmem:[%s7356_s2 + $0x28] sm:$0xff]  }
  0x2a   :  { %4016 = vmatprep.subr.bf16.mxu0 %v5048_v34 }
  0x2b   :  { %4750 = vmatpush3.bf16.msra.mxu1 %v5033_v23 }
  0x2c   :  { %4751 = vmatprep.subr.bf16.mxu1 %v7288_v0 }
  0x2d   :  { %4017 = vmatpush3.bf16.msra.mxu0 %v5049_v35 }
  0x2e   :  { %4732 = vmatmul.mubr.msk.bf16.gmra.mrb[8].mxu1 %vm311_vm2, %v5027_v24  ;;  %4018 = vmatprep.subr.bf16.mxu0 %v5050_v36 }
  0x2f   :  { %4735 = vmatprep.mubr.msk.bf16.mxu1 %vm5201_vm0, %v7288_v0  ;;  %4752 = vmatpush3.bf16.msra.mxu1 %v5034_v25 }
  0x30   :  { %4706 = vmatmul.mubr.msk.bf16.gmra.mrb[4].mxu0 %vm162_vm3, %v5018_v22  ;;  %4753 = vmatprep.subr.bf16.mxu1 %v7288_v0 }
  0x31   :  { %4709 = vmatprep.mubr.msk.bf16.mxu0 %vm5201_vm0, %v7288_v0  ;;  %4019 = vmatpush3.bf16.msra.mxu0 %v5051_v37 }
  0x32   :  { %4020 = vmatprep.subr.bf16.mxu0 %v5052_v38  ;;  %v5044_v38 = vld [vmem:[%s7356_s2 + $0x30] sm:$0xff]  }
  0x33   :  { %4754 = vmatpush3.bf16.msra.mxu1 %v5035_v27 }
  0x34   :  { %4755 = vmatprep.subr.bf16.mxu1 %v7288_v0 }
  0x35   :  { %4021 = vmatpush3.bf16.msra.mxu0 %v5053_v39 }
  0x36   :  { %4736 = vmatmul.mubr.msk.bf16.gmra.mrb[12].mxu1 %vm311_vm2, %v5028_v28  ;;  %4022 = vmatprep.subr.bf16.mxu0 %v5054_v40  ;;  %v5042_v28 = vld [vmem:[%s7356_s2 + $0x20] sm:$0xff]  }
  0x37   :  { %4739 = vmatprep.mubr.msk.bf16.mxu1 %vm5201_vm0, %v7288_v0  ;;  %4756 = vmatpush3.bf16.msra.mxu1 %v5036_v29 }
  0x38   :  { %4710 = vmatmul.mubr.msk.bf16.gmra.mrb[8].mxu0 %vm162_vm3, %v5020_v26  ;;  %4757 = vmatprep.subr.bf16.mxu1 %v7288_v0 }
  0x39   :  { %4023 = vmatpush3.bf16.msra.mxu0 %v5055_v41 }
  0x3a   :  { %4024 = vmatprep.subr.bf16.mxu0 %v5056_v42  ;;  %v5045_v42 = vld [vmem:[%s7356_s2 + $0x38] sm:$0xff]  }
  0x3b   :  { %4758 = vmatpush3.bf16.msra.mxu1 %v5037_v31 }
  0x3c   :  { %4771 = vmatprep.subr.bf16.mxu1 %v7288_v0 }
  0x3d   :  { %4025 = vmatpush3.bf16.msra.mxu0 %v5057_v43 }
  0x3e   :  { %4740 = vmatmul.mubr.msk.bf16.gmra.mrb[16].mxu1 %vm311_vm2, %v5029_v30 }
  0x3f   :  { %4759 = vmatprep.mubr.msk.bf16.mxu1 %vm5201_vm0, %v7288_v0 }
  0xf1   :  { %v364_v45 = vpop.f32.mrb[0].mxu1 }
  0xf2   :  { %v365_v46 = vadd.f32 %v5496_v44, %v364_v45  ;;  %v4725_v47 = vpop.f32.mrb[1].mxu1 }
  0xf3   :  { %v367_v50 = vpop.f32.mrb[2].mxu1 }
  0xf4   :  { %v368_v52 = vadd.f32 %v5496_v44, %v367_v50  ;;  %v4726_v53 = vpop.f32.mrb[3].mxu1  ;;  %v5061_v50 = vld [vmem:[%s7354_s29 + $0x38] sm:$0xff]  }
  0xf5   :  { %v5600_v53 = vld [vmem:[%s7265_s14] sm:$0xff]  }
  0xf6   :  { %v5503_v58 = vpack.c.bf16 %v368_v52, %v365_v46  ;;  %v5595_v52 = vld [vmem:[%s7265_s14 + $0x40] sm:$0xff]  }
  0xf9   :  { %v372_v61 = vpop.f32.mrb[4].mxu1 }
  0xfa   :  { %v373_v62 = vadd.f32 %v5496_v44, %v372_v61  ;;  %v4729_v63 = vpop.f32.mrb[5].mxu1 }
  0xfb   :  { %v210_v49 = vpop.f32.mrb[0].mxu0  ;;  %v375_v3 = vpop.f32.mrb[6].mxu1 }
  0xfc   :  { %v4703_v51 = vpop.f32.mrb[1].mxu0  ;;  %v211_v55 = vadd.f32 %v3737_v48, %v210_v49  ;;  %v376_v5 = vadd.f32 %v5496_v44, %v375_v3  ;;  %v4730_v6 = vpop.f32.mrb[7].mxu1  ;;  %v5060_v49 = vld [vmem:[%s7354_s29 + $0x78] sm:$0xff]  }
  0xfd   :  { %v213_v54 = vpop.f32.mrb[2].mxu0  ;;  %v5062_v51 = vld [vmem:[%s7264_s12 + $0x40] sm:$0xff]  }
  0xfe   :  { %v214_v56 = vadd.f32 %v3737_v48, %v213_v54  ;;  %v4704_v57 = vpop.f32.mrb[3].mxu0  ;;  %v5516_v11 = vpack.c.bf16 %v376_v5, %v373_v62  ;;  %v5606_v54 = vld [vmem:[%s7265_s14 + $0x48] sm:$0xff]  }
  0xff   :  { %v5623_v57 = vld [vmem:[%s7265_s14 + $0x10] sm:$0xff]  }
 0x100   :  { %v419_v60 = vpack.c.bf16 %v214_v56, %v211_v55  ;;  %v5612_v55 = vld [vmem:[%s7265_s14 + $0x8] sm:$0xff]   ;;  %v5618_v56 = vld [vmem:[%s7265_s14 + $0x50] sm:$0xff]  }
 0x101   :  { %v380_v14 = vpop.f32.mrb[8].mxu1 }
 0x102   :  { %4760 = vmatmul.mubr.bf16.vlgmr.msra.gmra.mrb[20].mxu1 %v419_v60  ;;  %722 = vmatprep.mubr.bf16.mxu0 %v419_v60  ;;  %v381_v15 = vadd.f32 %v5496_v44, %v380_v14  ;;  %v4733_v16 = vpop.f32.mrb[9].mxu1 }
 0x103   :  { %4772 = vmatpush3.bf16.msra.mxu1 %v5038_v59  ;;  %v218_v1 = vpop.f32.mrb[4].mxu0  ;;  %4763 = vmatprep.mubr.msk.bf16.mxu1 %vm5201_vm0, %v7288_v0  ;;  %v383_v19 = vpop.f32.mrb[10].mxu1  ;;  %v3768_v59 = vld [vmem:[%s7266_s7] ss:$0 sm:$0xff] }
 0x104   :  { %v4707_v4 = vpop.f32.mrb[5].mxu0  ;;  %4773 = vmatprep.subr.bf16.mxu1 %v7288_v0  ;;  %v219_v8 = vadd.f32 %v3737_v48, %v218_v1  ;;  %v384_v22 = vadd.f32 %v5496_v44, %v383_v19  ;;  %v4734_v23 = vpop.f32.mrb[11].mxu1  ;;  %v5065_v19 = vld [vmem:[%s7264_s12 + $0x8] sm:$0xff]  }
 0x105   :  { %v221_v7 = vpop.f32.mrb[6].mxu0 }
 0x106   :  { %v222_v9 = vadd.f32 %v3737_v48, %v221_v7  ;;  %v4708_v10 = vpop.f32.mrb[7].mxu0  ;;  %v5533_v27 = vpack.c.bf16 %v384_v22, %v381_v15  ;;  %v5063_v7 = vld [vmem:[%s7264_s12] sm:$0xff]  }
 0x107   :  { %4774 = vmatpush3.bf16.msra.mxu1 %v5039_v2  ;;  %v5064_v10 = vld [vmem:[%s7264_s12 + $0x48] sm:$0xff]  }
 0x108   :  { %v5521_v13 = vpack.c.bf16 %v222_v9, %v219_v8  ;;  %4775 = vmatprep.subr.bf16.mxu1 %v7288_v0 }
 0x109   :  { %v388_v30 = vpop.f32.mrb[12].mxu1 }
 0x10a   :  { %4764 = vmatmul.mubr.bf16.gmra.mrb[24].mxu1 %v5521_v13  ;;  %v389_v31 = vadd.f32 %v5496_v44, %v388_v30  ;;  %v4737_v32 = vpop.f32.mrb[13].mxu1 }
 0x10b   :  { %4776 = vmatpush3.bf16.msra.mxu1 %v5040_v12  ;;  %v226_v17 = vpop.f32.mrb[8].mxu0  ;;  %4767 = vmatprep.mubr.msk.bf16.mxu1 %vm5201_vm0, %v7288_v0  ;;  %v391_v34 = vpop.f32.mrb[14].mxu1 }
 0x10c   :  { %v227_v20 = vadd.f32 %v3737_v48, %v226_v17  ;;  %v4711_v21 = vpop.f32.mrb[9].mxu0  ;;  %4777 = vmatprep.subr.bf16.mxu1 %v7288_v0  ;;  %v392_v35 = vadd.f32 %v5496_v44, %v391_v34  ;;  %v4738_v36 = vpop.f32.mrb[15].mxu1 }
 0x10d   :  { %v229_v24 = vpop.f32.mrb[10].mxu0  ;;  %v5070_v36 = vld [vmem:[%s7264_s12 + $0x60] sm:$0xff]  }
 0x10e   :  { %v230_v25 = vadd.f32 %v3737_v48, %v229_v24  ;;  %v4712_v26 = vpop.f32.mrb[11].mxu0  ;;  %v5550_v37 = vpack.c.bf16 %v392_v35, %v389_v31  ;;  %v5059_v48 = vld [vmem:[%s7354_s29 + $0x30] sm:$0xff]   ;;  %v5069_v35 = vld [vmem:[%s7264_s12 + $0x18] sm:$0xff]  }
 0x10f   :  { %4778 = vmatpush3.bf16.msra.mxu1 %v5041_v18  ;;  %v5067_v24 = vld [vmem:[%s7264_s12 + $0x10] sm:$0xff]   ;;  %v5068_v26 = vld [vmem:[%s7264_s12 + $0x58] sm:$0xff]  }
 0x110   :  { %v5538_v29 = vpack.c.bf16 %v230_v25, %v227_v20  ;;  %4779 = vmatprep.subr.bf16.mxu1 %v7288_v0  ;;  %v5066_v20 = vld [vmem:[%s7264_s12 + $0x50] sm:$0xff]  }
 0x111   :  { %v396_v39 = vpop.f32.mrb[16].mxu1 }
 0x112   :  { %4768 = vmatmul.mubr.bf16.gmra.mrb[28].mxu1 %v5538_v29  ;;  %v397_v40 = vadd.f32 %v5496_v44, %v396_v39  ;;  %v4741_v41 = vpop.f32.mrb[17].mxu1 }
 0x113   :  { %4780 = vmatpush3.bf16.msra.mxu1 %v5042_v28  ;;  %4787 = vmatprep.mubr.msk.bf16.mxu1 %vm5201_vm0, %v7288_v0  ;;  %v399_v43 = vpop.f32.mrb[18].mxu1  ;;  %v5071_v41 = vld [vmem:[%s7264_s12 + $0x20] sm:$0xff]  }
 0x114   :  { %4781 = vmatprep.subr.bf16.mxu1 %v7288_v0  ;;  %v400_v45 = vadd.f32 %v5496_v44, %v399_v43  ;;  %v4742_v46 = vpop.f32.mrb[19].mxu1  ;;  %v5058_v44 = vld [vmem:[%s7354_s29 + $0x70] sm:$0xff]   ;;  %v5073_v43 = vld [vmem:[%s7264_s12 + $0x28] sm:$0xff]  }
 0x115   :  { %4026 = vmatprep.subr.bf16.mxu0 %v5058_v44  ;;  %v5673_v46 = vld [vmem:[%s7267_s11] ss:$0 sm:$0xff]  ;;  %v5075_v44 = vld [vmem:[%s7264_s12 + $0x30] sm:$0xff]  }
 0x116   :  { %v5562_v47 = vpack.c.bf16 %v400_v45, %v397_v40  ;;  %4027 = vmatpush3.bf16.msra.mxu0 %v5059_v48  ;;  %v5074_v45 = vld [vmem:[%s7264_s12 + $0x70] sm:$0xff]   ;;  %v5076_v48 = vld [vmem:[%s7264_s12 + $0x78] sm:$0xff]  }
 0x117   :  { %4782 = vmatpush3.bf16.msra.mxu1 %v5043_v33  ;;  %4028 = vmatprep.subr.bf16.mxu0 %v5060_v49 }
 0x118   :  { %4783 = vmatprep.subr.bf16.mxu1 %v7288_v0 }
 0x11a   :  { %4029 = vmatpush3.bf16.msra.mxu0 %v5061_v50 }
 0x11b   :  { %4784 = vmatpush3.bf16.msra.mxu1 %v5044_v38  ;;  %4061 = vmatprep.subr.bf16.mxu0 %v5062_v51 }
 0x11c   :  { %4785 = vmatprep.subr.bf16.mxu1 %v7288_v0 }
 0x11f   :  { %4786 = vmatpush3.bf16.msra.mxu1 %v5045_v42  ;;  %v5072_v42 = vld [vmem:[%s7264_s12 + $0x68] sm:$0xff]  }
 0x120   :  { %4107 = vmatprep.subr.bf16.mxu1 %v5595_v52 }
 0x122   :  { %4788 = vmatmul.mubr.bf16.vlgmr.msra.gmra.mrb[32].mxu1 %v5503_v58 }
 0x123   :  { %4791 = vmatprep.mubr.msk.bf16.mxu1 %vm5201_vm0, %v7288_v0  ;;  %4108 = vmatpush3.bf16.msra.mxu1 %v5600_v53 }
 0x124   :  { %4109 = vmatprep.subr.bf16.mxu1 %v5606_v54 }
 0x127   :  { %4110 = vmatpush3.bf16.msra.mxu1 %v5612_v55 }
 0x128   :  { %4111 = vmatprep.subr.bf16.mxu1 %v5618_v56 }
 0x12a   :  { %4792 = vmatmul.mubr.bf16.gmra.mrb[36].mxu1 %v5516_v11 }
 0x12b   :  { %4795 = vmatprep.mubr.msk.bf16.mxu1 %vm5201_vm0, %v7288_v0  ;;  %4112 = vmatpush3.bf16.msra.mxu1 %v5623_v57 }
 0x132   :  { %4796 = vmatmul.mubr.bf16.gmra.mrb[40].mxu1 %v5533_v27 }
 0x133   :  { %4799 = vmatprep.mubr.msk.bf16.mxu1 %vm5201_vm0, %v7288_v0 }
 0x13a   :  { %4800 = vmatmul.mubr.bf16.gmra.mrb[44].mxu1 %v5550_v37 }
 0x13b   :  { %4803 = vmatprep.mubr.msk.bf16.mxu1 %vm5201_vm0, %v7288_v0 }
 0x142   :  { %4804 = vmatmul.mubr.bf16.gmra.mrb[48].mxu1 %v5562_v47 }
 0x1d5   :  { %v511_v60 = vpop.f32.mrb[20].mxu1 }
 0x1d6   :  { %v512_v61 = vadd.f32 %v3768_v59, %v511_v60  ;;  %v4761_v62 = vpop.f32.mrb[21].mxu1 }
 0x1d7   :  { %v514_v63 = vpop.f32.mrb[22].mxu1  ;;  %v5077_v62 = vld [vmem:[%s7264_s12 + $0x38] sm:$0xff]  }
 0x1d8   :  { %v540_v1 = vmul.f32 0.01, %v512_v61  ;;  %v515_v2 = vadd.f32 %v3768_v59, %v514_v63  ;;  %v4762_v3 = vpop.f32.mrb[23].mxu1  ;;  %vm534_vm4 = vcmp.ge.f32.partialorder %v512_v61, 0.0 }
 0x1da   :  { %vm535_vm5 = vcmp.ge.f32.partialorder %v515_v2, 0.0  ;;  %v541_v4 = vmul.f32 0.01, %v515_v2  ;;  %v546_v5 = vsel %vm534_vm4, %v512_v61, %v540_v1 }
 0x1dc   :  { %v547_v6 = vsel %vm535_vm5, %v515_v2, %v541_v4 }
 0x1dd   :  { %v584_v8 = vpack.c.bf16 %v547_v6, %v546_v5  ;;  %v519_v9 = vpop.f32.mrb[24].mxu1 }
 0x1de   :  { %v520_v12 = vadd.f32 %v3768_v59, %v519_v9  ;;  %v4765_v14 = vpop.f32.mrb[25].mxu1 }
 0x1df   :  { %v522_v15 = vpop.f32.mrb[26].mxu1  ;;  %723 = vmatmul.mubr.bf16.vlgmr.msra.gmra.mrb[12].mxu0 %v584_v8 }
 0x1e0   :  { %v542_v16 = vmul.f32 0.01, %v520_v12  ;;  %v523_v17 = vadd.f32 %v3768_v59, %v522_v15  ;;  %4062 = vmatpush3.bf16.msra.mxu0 %v5063_v7  ;;  %v4766_v18 = vpop.f32.mrb[27].mxu1  ;;  %730 = vmatprep.mubr.bf16.mxu0 %v5521_v13  ;;  %vm536_vm6 = vcmp.ge.f32.partialorder %v520_v12, 0.0 }
 0x1e1   :  { %4063 = vmatprep.subr.bf16.mxu0 %v5064_v10 }
 0x1e2   :  { %vm537_vm7 = vcmp.ge.f32.partialorder %v523_v17, 0.0  ;;  %v543_v21 = vmul.f32 0.01, %v523_v17  ;;  %v548_v22 = vsel %vm536_vm6, %v520_v12, %v542_v16 }
 0x1e4   :  { %4064 = vmatpush3.bf16.msra.mxu0 %v5065_v19  ;;  %v549_v23 = vsel %vm537_vm7, %v523_v17, %v543_v21 }
 0x1e5   :  { %v527_v13 = vpop.f32.mrb[28].mxu1  ;;  %4065 = vmatprep.subr.bf16.mxu0 %v5066_v20  ;;  %v585_v25 = vpack.c.bf16 %v549_v23, %v548_v22 }
 0x1e6   :  { %v528_v28 = vadd.f32 %v3768_v59, %v527_v13  ;;  %v4769_v30 = vpop.f32.mrb[29].mxu1 }
 0x1e7   :  { %v530_v31 = vpop.f32.mrb[30].mxu1  ;;  %731 = vmatmul.mubr.bf16.gmra.mrb[16].mxu0 %v585_v25 }
 0x1e8   :  { %vm538_vm8 = vcmp.ge.f32.partialorder %v528_v28, 0.0  ;;  %v544_v32 = vmul.f32 0.01, %v528_v28  ;;  %v531_v33 = vadd.f32 %v3768_v59, %v530_v31  ;;  %4066 = vmatpush3.bf16.msra.mxu0 %v5067_v24  ;;  %738 = vmatprep.mubr.bf16.mxu0 %v5538_v29  ;;  %v4770_v34 = vpop.f32.mrb[31].mxu1 }
 0x1e9   :  { %4067 = vmatprep.subr.bf16.mxu0 %v5068_v26 }
 0x1ea   :  { %vm539_vm9 = vcmp.ge.f32.partialorder %v531_v33, 0.0  ;;  %v545_v38 = vmul.f32 0.01, %v531_v33  ;;  %v550_v39 = vsel %vm538_vm8, %v528_v28, %v544_v32 }
 0x1ec   :  { %4068 = vmatpush3.bf16.msra.mxu0 %v5069_v35  ;;  %v551_v40 = vsel %vm539_vm9, %v531_v33, %v545_v38 }
 0x1ed   :  { %4069 = vmatprep.subr.bf16.mxu0 %v5070_v36  ;;  %v586_v29 = vpack.c.bf16 %v551_v40, %v550_v39 }
 0x1ef   :  { %739 = vmatmul.mubr.bf16.gmra.mrb[20].mxu0 %v586_v29 }
 0x1f0   :  { %4070 = vmatpush3.bf16.msra.mxu0 %v5071_v41  ;;  %1122 = vmatprep.mubr.bf16.mxu0 %v5503_v58 }
 0x1f1   :  { %4071 = vmatprep.subr.bf16.mxu0 %v5072_v42 }
 0x1f4   :  { %4072 = vmatpush3.bf16.msra.mxu0 %v5073_v43 }
 0x1f5   :  { %v881_v58 = vpop.f32.mrb[32].mxu1  ;;  %4073 = vmatprep.subr.bf16.mxu0 %v5074_v45 }
 0x1f6   :  { %v882_v49 = vadd.f32 %v5673_v46, %v881_v58  ;;  %v4789_v50 = vpop.f32.mrb[33].mxu1 }
 0x1f7   :  { %v884_v51 = vpop.f32.mrb[34].mxu1  ;;  %v5718_v50 = vld [vmem:[%s7265_s14 + $0x20] sm:$0xff]  }
 0x1f8   :  { %vm920_vm10 = vcmp.ge.f32.partialorder %v882_v49, 0.0  ;;  %v930_v59 = vmul.f32 0.01, %v882_v49  ;;  %v885_v60 = vadd.f32 %v5673_v46, %v884_v51  ;;  %4074 = vmatpush3.bf16.msra.mxu0 %v5075_v44  ;;  %v4790_v61 = vpop.f32.mrb[35].mxu1  ;;  %v5725_v51 = vld [vmem:[%s7265_s14 + $0x68] sm:$0xff]  }
 0x1f9   :  { %4075 = vmatprep.subr.bf16.mxu0 %v5076_v48  ;;  %v5742_v61 = vld [vmem:[%s7265_s14 + $0x30] sm:$0xff]  }
 0x1fa   :  { %v940_v63 = vsel %vm920_vm10, %v882_v49, %v930_v59  ;;  %vm921_vm11 = vcmp.ge.f32.partialorder %v885_v60, 0.0  ;;  %v931_v1 = vmul.f32 0.01, %v885_v60  ;;  %v5701_v49 = vld [vmem:[%s7265_s14 + $0x58] sm:$0xff]   ;;  %v5730_v59 = vld [vmem:[%s7265_s14 + $0x28] sm:$0xff]  }
 0x1fb   :  { %4113 = vmatprep.subr.bf16.mxu1 %v5701_v49 }
 0x1fc   :  { %v941_v2 = vsel %vm921_vm11, %v885_v60, %v931_v1  ;;  %4076 = vmatpush3.bf16.msra.mxu0 %v5077_v62  ;;  %v5737_v60 = vld [vmem:[%s7265_s14 + $0x70] sm:$0xff]   ;;  %v5749_v62 = vld [vmem:[%s7265_s14 + $0x78] sm:$0xff]   ;;  %v5762_v1 = vld [vmem:[%s7268_s16 + $0x40] sm:$0xff]  }
 0x1fd   :  { %v982_v3 = vpack.c.bf16 %v941_v2, %v940_v63  ;;  %v889_v4 = vpop.f32.mrb[36].mxu1  ;;  %v5754_v63 = vld [vmem:[%s7265_s14 + $0x38] sm:$0xff]   ;;  %v5767_v2 = vld [vmem:[%s7268_s16] sm:$0xff]   ;;  %4141 = vmatprep.subr.bf16.mxu0 %v5762_v1 }
 0x1fe   :  { %v890_v5 = vadd.f32 %v5673_v46, %v889_v4  ;;  %v4793_v6 = vpop.f32.mrb[37].mxu1  ;;  %v5779_v4 = vld [vmem:[%s7268_s16 + $0x8] sm:$0xff]  }
 0x1ff   :  { %v892_v7 = vpop.f32.mrb[38].mxu1  ;;  %1123 = vmatmul.mubr.bf16.vlgmr.msra.gmra.mrb[24].mxu0 %v982_v3  ;;  %v5772_v3 = vld [vmem:[%s7268_s16 + $0x48] sm:$0xff]   ;;  %v5791_v6 = vld [vmem:[%s7268_s16 + $0x10] sm:$0xff]  }
 0x200   :  { %vm922_vm12 = vcmp.ge.f32.partialorder %v890_v5, 0.0  ;;  %v932_v8 = vmul.f32 0.01, %v890_v5  ;;  %v893_v9 = vadd.f32 %v5673_v46, %v892_v7  ;;  %1130 = vmatprep.mubr.bf16.mxu0 %v5516_v11  ;;  %v4794_v10 = vpop.f32.mrb[39].mxu1  ;;  %4142 = vmatpush3.bf16.msra.mxu0 %v5767_v2  ;;  %v5797_v7 = vld [vmem:[%s7268_s16 + $0x58] sm:$0xff]  }
 0x201   :  { %4143 = vmatprep.subr.bf16.mxu0 %v5772_v3  ;;  %v5815_v10 = vld [vmem:[%s7268_s16 + $0x20] sm:$0xff]  }
 0x202   :  { %vm923_vm13 = vcmp.ge.f32.partialorder %v893_v9, 0.0  ;;  %v933_v12 = vmul.f32 0.01, %v893_v9  ;;  %v942_v14 = vsel %vm922_vm12, %v890_v5, %v932_v8  ;;  %v5785_v5 = vld [vmem:[%s7268_s16 + $0x50] sm:$0xff]   ;;  %v5803_v8 = vld [vmem:[%s7268_s16 + $0x18] sm:$0xff]  }
 0x204   :  { %v943_v15 = vsel %vm923_vm13, %v893_v9, %v933_v12  ;;  %4144 = vmatpush3.bf16.msra.mxu0 %v5779_v4  ;;  %v5809_v9 = vld [vmem:[%s7268_s16 + $0x60] sm:$0xff]   ;;  %v5821_v12 = vld [vmem:[%s7268_s16 + $0x68] sm:$0xff]  }
 0x205   :  { %v897_v16 = vpop.f32.mrb[40].mxu1  ;;  %v983_v17 = vpack.c.bf16 %v943_v15, %v942_v14  ;;  %4145 = vmatprep.subr.bf16.mxu0 %v5785_v5  ;;  %v5827_v14 = vld [vmem:[%s7268_s16 + $0x28] sm:$0xff]  }
 0x206   :  { %v898_v18 = vadd.f32 %v5673_v46, %v897_v16  ;;  %v4797_v19 = vpop.f32.mrb[41].mxu1  ;;  %v3777_v16 = vld [vmem:[%s7269_s9] ss:$0 sm:$0xff] }
 0x207   :  { %v900_v20 = vpop.f32.mrb[42].mxu1  ;;  %1131 = vmatmul.mubr.bf16.gmra.mrb[28].mxu0 %v983_v17 }
 0x208   :  { %vm924_vm14 = vcmp.ge.f32.partialorder %v898_v18, 0.0  ;;  %v934_v21 = vmul.f32 0.01, %v898_v18  ;;  %v901_v22 = vadd.f32 %v5673_v46, %v900_v20  ;;  %1138 = vmatprep.mubr.bf16.mxu0 %v5533_v27  ;;  %v4798_v23 = vpop.f32.mrb[43].mxu1  ;;  %4146 = vmatpush3.bf16.msra.mxu0 %v5791_v6 }
 0x209   :  { %4147 = vmatprep.subr.bf16.mxu0 %v5797_v7 }
 0x20a   :  { %vm925_vm15 = vcmp.ge.f32.partialorder %v901_v22, 0.0  ;;  %v935_v11 = vmul.f32 0.01, %v901_v22  ;;  %v944_v24 = vsel %vm924_vm14, %v898_v18, %v934_v21 }
 0x20c   :  { %v945_v13 = vsel %vm925_vm15, %v901_v22, %v935_v11  ;;  %4148 = vmatpush3.bf16.msra.mxu0 %v5803_v8 }
 0x20d   :  { %v905_v25 = vpop.f32.mrb[44].mxu1  ;;  %v984_v26 = vpack.c.bf16 %v945_v13, %v944_v24  ;;  %4149 = vmatprep.subr.bf16.mxu0 %v5809_v9 }
 0x20e   :  { %v906_v28 = vadd.f32 %v5673_v46, %v905_v25  ;;  %v4801_v30 = vpop.f32.mrb[45].mxu1 }
 0x20f   :  { %v908_v31 = vpop.f32.mrb[46].mxu1  ;;  %1139 = vmatmul.mubr.bf16.gmra.mrb[32].mxu0 %v984_v26 }
 0x210   :  { %vm926_vm1 = vcmp.ge.f32.partialorder %v906_v28, 0.0  ;;  %v936_v32 = vmul.f32 0.01, %v906_v28  ;;  %v909_v33 = vadd.f32 %v5673_v46, %v908_v31  ;;  %1146 = vmatprep.mubr.bf16.mxu0 %v5550_v37  ;;  %v4802_v34 = vpop.f32.mrb[47].mxu1  ;;  %4150 = vmatpush3.bf16.msra.mxu0 %v5815_v10 }
 0x211   :  { %4151 = vmatprep.subr.bf16.mxu0 %v5821_v12 }
 0x212   :  { %vm927_vm2 = vcmp.ge.f32.partialorder %v909_v33, 0.0  ;;  %v937_v27 = vmul.f32 0.01, %v909_v33  ;;  %v946_v35 = vsel %vm926_vm1, %v906_v28, %v936_v32 }
 0x214   :  { %v947_v36 = vsel %vm927_vm2, %v909_v33, %v937_v27  ;;  %4152 = vmatpush3.bf16.msra.mxu0 %v5827_v14 }
 0x215   :  { %v985_v38 = vpack.c.bf16 %v947_v36, %v946_v35  ;;  %v913_v39 = vpop.f32.mrb[48].mxu1 }
 0x216   :  { %v914_v40 = vadd.f32 %v5673_v46, %v913_v39  ;;  %v4805_v41 = vpop.f32.mrb[49].mxu1 }
 0x217   :  { %1147 = vmatmul.mubr.bf16.gmra.mrb[36].mxu0 %v985_v38  ;;  %v916_v29 = vpop.f32.mrb[50].mxu1 }
 0x218   :  { %1154 = vmatprep.mubr.bf16.mxu0 %v5562_v47  ;;  %vm928_vm3 = vcmp.ge.f32.partialorder %v914_v40, 0.0  ;;  %v938_v42 = vmul.f32 0.01, %v914_v40  ;;  %v917_v43 = vadd.f32 %v5673_v46, %v916_v29  ;;  %v4806_v45 = vpop.f32.mrb[51].mxu1  ;;  %v5707_v47 = vld [vmem:[%s7265_s14 + $0x18] sm:$0xff]   ;;  %v5713_v46 = vld [vmem:[%s7265_s14 + $0x60] sm:$0xff]  }
 0x219   :  { %4114 = vmatpush3.bf16.msra.mxu1 %v5707_v47 }
 0x21a   :  { %vm929_vm4 = vcmp.ge.f32.partialorder %v917_v43, 0.0  ;;  %v939_v37 = vmul.f32 0.01, %v917_v43  ;;  %v948_v44 = vsel %vm928_vm3, %v914_v40, %v938_v42  ;;  %4115 = vmatprep.subr.bf16.mxu1 %v5713_v46 }
 0x21c   :  { %v949_v58 = vsel %vm929_vm4, %v917_v43, %v939_v37 }
 0x21d   :  { %v986_v48 = vpack.c.bf16 %v949_v58, %v948_v44  ;;  %4116 = vmatpush3.bf16.msra.mxu1 %v5718_v50 }
 0x21e   :  { %4117 = vmatprep.subr.bf16.mxu1 %v5725_v51 }
 0x21f   :  { %1155 = vmatmul.mubr.bf16.gmra.mrb[40].mxu0 %v986_v48 }
 0x221   :  { %4118 = vmatpush3.bf16.msra.mxu1 %v5730_v59 }
 0x222   :  { %4119 = vmatprep.subr.bf16.mxu1 %v5737_v60 }
 0x225   :  { %4120 = vmatpush3.bf16.msra.mxu1 %v5742_v61 }
 0x226   :  { %4121 = vmatprep.subr.bf16.mxu1 %v5749_v62 }
 0x229   :  { %4122 = vmatpush3.bf16.msra.mxu1 %v5754_v63 }
 0x22a   :  { %4807 = vmatprep.subr.bf16.mxu1 %v7288_v0 }
 0x2b2   :  { %v4030_v15 = vpop.f32.mrb[12].mxu0 }
 0x2b3   :  { %v4031_v17 = vpop.f32.mrb[13].mxu0 }
 0x2b4   :  { %v4032_v18 = vadd.f32 %v4031_v17, %v4030_v15  ;;  %v4033_v19 = vpop.f32.mrb[14].mxu0 }
 0x2b5   :  { %v4034_v20 = vpop.f32.mrb[15].mxu0 }
 0x2b6   :  { %v725_v21 = vadd.f32 %v4032_v18, %v3777_v16  ;;  %v4035_v22 = vadd.f32 %v4034_v20, %v4033_v19 }
 0x2b8   :  { %v747_v23 = vmul.f32 0.999995, %v725_v21  ;;  %v728_v11 = vadd.f32 %v4035_v22, %v3777_v16 }
 0x2ba   :  { %v759_v24 = vmul.f32 0.01, %v747_v23  ;;  %v748_v13 = vmul.f32 0.999995, %v728_v11  ;;  %v4036_v25 = vpop.f32.mrb[16].mxu0  ;;  %vm753_vm5 = vcmp.ge.f32.partialorder %v747_v23, 0.0 }
 0x2bb   :  { %v4037_v26 = vpop.f32.mrb[17].mxu0 }
 0x2bc   :  { %vm754_vm6 = vcmp.ge.f32.partialorder %v748_v13, 0.0  ;;  %v760_v28 = vmul.f32 0.01, %v748_v13  ;;  %v4038_v30 = vadd.f32 %v4037_v26, %v4036_v25  ;;  %v4039_v31 = vpop.f32.mrb[18].mxu0  ;;  %v5834_v33 = vsel %vm753_vm5, %v747_v23, %v759_v24  ;;  %v5856_v23 = vld [vmem:[%s7268_s16 + $0x80] sm:$0xff]  }
 0x2bd   :  { %v4040_v32 = vpop.f32.mrb[19].mxu0 }
 0x2be   :  { %v5836_v34 = vsel %vm754_vm6, %v748_v13, %v760_v28  ;;  %v733_v27 = vadd.f32 %v4038_v30, %v3777_v16  ;;  %v4041_v35 = vadd.f32 %v4040_v32, %v4039_v31 }
 0x2bf   :  { %v5840_v36 = vpack.c.bf16 %v5836_v34, %v5834_v33 }
 0x2c0   :  { %v749_v38 = vmul.f32 0.999995, %v733_v27  ;;  %v736_v39 = vadd.f32 %v4041_v35, %v3777_v16  ;;  %v5883_v27 = vld [vmem:[%s7268_s16 + $0x90] sm:$0xff]  }
 0x2c1   :  { %1659 = vmatprep.mubr.bf16.mxu0 %v5840_v36 }
 0x2c2   :  { %vm755_vm7 = vcmp.ge.f32.partialorder %v749_v38, 0.0  ;;  %v761_v40 = vmul.f32 0.01, %v749_v38  ;;  %v750_v41 = vmul.f32 0.999995, %v736_v39  ;;  %v4042_v29 = vpop.f32.mrb[20].mxu0 }
 0x2c3   :  { %v4043_v42 = vpop.f32.mrb[21].mxu0 }
 0x2c4   :  { %v5843_v43 = vsel %vm755_vm7, %v749_v38, %v761_v40  ;;  %vm756_vm8 = vcmp.ge.f32.partialorder %v750_v41, 0.0  ;;  %v762_v45 = vmul.f32 0.01, %v750_v41  ;;  %v4044_v37 = vadd.f32 %v4043_v42, %v4042_v29  ;;  %v4045_v44 = vpop.f32.mrb[22].mxu0 }
 0x2c5   :  { %v4046_v58 = vpop.f32.mrb[23].mxu0  ;;  %v1285_v18 = vsub.f32 %v5834_v33, %v5843_v43 }
 0x2c6   :  { %v5845_v48 = vsel %vm756_vm8, %v750_v41, %v762_v45  ;;  %v741_v15 = vadd.f32 %v4044_v37, %v3777_v16  ;;  %v4047_v17 = vadd.f32 %v4046_v58, %v4045_v44  ;;  %v5903_v45 = vld [vmem:[%s7268_s16 + $0x98] sm:$0xff]   ;;  %v5912_v58 = vld [vmem:[%s7268_s16 + $0xa0] sm:$0xff]  }
 0x2c7   :  { %v1286_v19 = vsub.f32 %v5836_v34, %v5845_v48  ;;  %v5890_v38 = vpack.c.bf16 %v5845_v48, %v5843_v43 }
 0x2c8   :  { %v751_v20 = vmul.f32 0.999995, %v741_v15  ;;  %v744_v21 = vadd.f32 %v4047_v17, %v3777_v16  ;;  %v5866_v16 = vld [vmem:[%s7268_s16 + $0x88] sm:$0xff]  }
 0x2c9   :  { %v5851_v22 = vpack.c.bf16 %v1286_v19, %v1285_v18  ;;  %v5922_v18 = vld [vmem:[%s7270_s13] ss:$0 sm:$0xff] }
 0x2ca   :  { %vm757_vm9 = vcmp.ge.f32.partialorder %v751_v20, 0.0  ;;  %v763_v11 = vmul.f32 0.01, %v751_v20  ;;  %v752_v24 = vmul.f32 0.999995, %v744_v21 }
 0x2cb   :  { %1431 = vmatprep.mubr.bf16.mxu1 %v5851_v22 }
 0x2cc   :  { %v5859_v13 = vsel %vm757_vm9, %v751_v20, %v763_v11  ;;  %vm758_vm10 = vcmp.ge.f32.partialorder %v752_v24, 0.0  ;;  %v764_v25 = vmul.f32 0.01, %v752_v24  ;;  %1432 = vmatmul.mubr.bf16.vlgmr.msra.gmra.mrb[52].mxu1 %v5840_v36  ;;  %v5929_v11 = vld [vmem:[%s7268_s16 + $0xa8] sm:$0xff]  }
 0x2cd   :  { %4808 = vmatpush3.bf16.msra.mxu1 %v5856_v23  ;;  %v1287_v28 = vsub.f32 %v5843_v43, %v5859_v13  ;;  %v1289_v35 = vsub.f32 %v5859_v13, %v5834_v33 }
 0x2ce   :  { %v5868_v26 = vsel %vm758_vm10, %v752_v24, %v764_v25  ;;  %4809 = vmatprep.subr.bf16.mxu1 %v7288_v0 }
 0x2cf   :  { %v1288_v30 = vsub.f32 %v5845_v48, %v5868_v26  ;;  %v1290_v31 = vsub.f32 %v5868_v26, %v5836_v34  ;;  %v5917_v15 = vpack.c.bf16 %v5868_v26, %v5859_v13 }
 0x2d1   :  { %4810 = vmatpush3.bf16.msra.mxu1 %v5866_v16  ;;  %v5878_v32 = vpack.c.bf16 %v1288_v30, %v1287_v28  ;;  %v5893_v40 = vpack.c.bf16 %v1290_v31, %v1289_v35  ;;  %v5944_v31 = vld [vmem:[%s7268_s16 + $0xb0] sm:$0xff]  }
 0x2d2   :  { %4811 = vmatprep.subr.bf16.mxu1 %v7288_v0  ;;  %v4077_v39 = vpop.f32.mrb[24].mxu0 }
 0x2d3   :  { %1439 = vmatprep.mubr.bf16.mxu1 %v5878_v32  ;;  %v4078_v41 = vpop.f32.mrb[25].mxu0 }
 0x2d4   :  { %1440 = vmatmul.mubr.bf16.gmra.mrb[56].mxu1 %v5890_v38  ;;  %v5896_v29 = vadd.f32 %v4078_v41, %v4077_v39  ;;  %v4080_v42 = vpop.f32.mrb[26].mxu0 }
 0x2d5   :  { %4812 = vmatpush3.bf16.msra.mxu1 %v5883_v27  ;;  %1447 = vmatprep.mubr.bf16.mxu1 %v5893_v40  ;;  %v4081_v37 = vpop.f32.mrb[27].mxu0 }
 0x2d6   :  { %4813 = vmatprep.subr.bf16.mxu1 %v7288_v0  ;;  %v5906_v44 = vadd.f32 %v4081_v37, %v4080_v42  ;;  %v5951_v37 = vld [vmem:[%s7268_s16 + $0xb8] sm:$0xff]  }
 0x2d9   :  { %4814 = vmatpush3.bf16.msra.mxu1 %v5903_v45 }
 0x2da   :  { %4815 = vmatprep.subr.bf16.mxu1 %v7288_v0  ;;  %v4083_v17 = vpop.f32.mrb[28].mxu0 }
 0x2db   :  { %v4084_v19 = vpop.f32.mrb[29].mxu0 }
 0x2dc   :  { %1448 = vmatmul.mubr.bf16.gmra.mrb[60].mxu1 %v5917_v15  ;;  %v4085_v20 = vadd.f32 %v4084_v19, %v4083_v17  ;;  %v4086_v21 = vpop.f32.mrb[30].mxu0 }
 0x2dd   :  { %4816 = vmatpush3.bf16.msra.mxu1 %v5912_v58  ;;  %4823 = vmatprep.mubr.msk.bf16.mxu1 %vm5201_vm0, %v7288_v0  ;;  %v4087_v24 = vpop.f32.mrb[31].mxu0 }
 0x2de   :  { %4817 = vmatprep.subr.bf16.mxu1 %v7288_v0  ;;  %v5935_v25 = vadd.f32 %v4085_v20, %v5922_v18  ;;  %v4088_v28 = vadd.f32 %v4087_v24, %v4086_v21 }
 0x2e0   :  { %v5938_v30 = vadd.f32 %v4088_v28, %v5922_v18 }
 0x2e1   :  { %4818 = vmatpush3.bf16.msra.mxu1 %v5929_v11 }
 0x2e2   :  { %7357 = vst [vmem:[#allocation2_spill] sm:$0xff] %v5938_v30  ;;  %4819 = vmatprep.subr.bf16.mxu1 %v7288_v0  ;;  %v4089_v35 = vpop.f32.mrb[32].mxu0 }
 0x2e3   :  { %v4090_v39 = vpop.f32.mrb[33].mxu0 }
 0x2e4   :  { %v4091_v41 = vadd.f32 %v4090_v39, %v4089_v35  ;;  %v4092_v42 = vpop.f32.mrb[34].mxu0 }
 0x2e5   :  { %4820 = vmatpush3.bf16.msra.mxu1 %v5944_v31  ;;  %v4093_v17 = vpop.f32.mrb[35].mxu0 }
 0x2e6   :  { %4821 = vmatprep.subr.bf16.mxu1 %v7288_v0  ;;  %v5955_v19 = vadd.f32 %v4091_v41, %v5922_v18  ;;  %v4094_v20 = vadd.f32 %v4093_v17, %v4092_v42 }
 0x2e8   :  { %v5958_v21 = vadd.f32 %v4094_v20, %v5922_v18 }
 0x2e9   :  { %4822 = vmatpush3.bf16.msra.mxu1 %v5951_v37 }
 0x2ea   :  { %v4095_v24 = vpop.f32.mrb[36].mxu0  ;;  %4220 = vmatprep.subr.bf16.mxu1 %v5762_v1 }
 0x2eb   :  { %v4096_v28 = vpop.f32.mrb[37].mxu0 }
 0x2ec   :  { %4824 = vmatmul.mubr.bf16.vlgmr.msra.gmra.mrb[64].mxu1 %v5851_v22  ;;  %v4097_v35 = vadd.f32 %v4096_v28, %v4095_v24  ;;  %v4098_v39 = vpop.f32.mrb[38].mxu0 }
 0x2ed   :  { %4827 = vmatprep.mubr.msk.bf16.mxu1 %vm5201_vm0, %v7288_v0  ;;  %v4099_v30 = vpop.f32.mrb[39].mxu0  ;;  %4221 = vmatpush3.bf16.msra.mxu1 %v5767_v2 }
 0x2ee   :  { %v5967_v41 = vadd.f32 %v4097_v35, %v5922_v18  ;;  %v4100_v42 = vadd.f32 %v4099_v30, %v4098_v39  ;;  %4222 = vmatprep.subr.bf16.mxu1 %v5772_v3 }
 0x2f0   :  { %v5971_v17 = vadd.f32 %v4100_v42, %v5922_v18 }
 0x2f1   :  { %4223 = vmatpush3.bf16.msra.mxu1 %v5779_v4 }
 0x2f2   :  { %v4101_v1 = vpop.f32.mrb[40].mxu0  ;;  %4224 = vmatprep.subr.bf16.mxu1 %v5785_v5  ;;  %v5114_v5 = vld [vmem:[%s7268_s16 + $0x70] sm:$0xff]  }
 0x2f3   :  { %v4102_v22 = vpop.f32.mrb[41].mxu0  ;;  %4153 = vmatprep.subr.bf16.mxu0 %v5114_v5 }
 0x2f4   :  { %4828 = vmatmul.mubr.bf16.gmra.mrb[68].mxu1 %v5878_v32  ;;  %v4103_v20 = vadd.f32 %v4102_v22, %v4101_v1  ;;  %v4104_v24 = vpop.f32.mrb[42].mxu0 }
 0x2f5   :  { %4831 = vmatprep.mubr.msk.bf16.mxu1 %vm5201_vm0, %v7288_v0  ;;  %v4105_v2 = vpop.f32.mrb[43].mxu0  ;;  %4225 = vmatpush3.bf16.msra.mxu1 %v5791_v6  ;;  %v5115_v6 = vld [vmem:[%s7268_s16 + $0x30] sm:$0xff]  }
 0x2f6   :  { %v5980_v3 = vadd.f32 %v4103_v20, %v5922_v18  ;;  %v4106_v30 = vadd.f32 %v4105_v2, %v4104_v24  ;;  %4226 = vmatprep.subr.bf16.mxu1 %v5797_v7  ;;  %4154 = vmatpush3.bf16.msra.mxu0 %v5115_v6  ;;  %v5116_v7 = vld [vmem:[%s7268_s16 + $0x78] sm:$0xff]  }
 0x2f7   :  { %4155 = vmatprep.subr.bf16.mxu0 %v5116_v7 }
 0x2f8   :  { %v5984_v4 = vadd.f32 %v4106_v30, %v5922_v18 }
 0x2f9   :  { %4227 = vmatpush3.bf16.msra.mxu1 %v5803_v8  ;;  %v5117_v8 = vld [vmem:[%s7268_s16 + $0x38] sm:$0xff]  }
 0x2fa   :  { %4228 = vmatprep.subr.bf16.mxu1 %v5809_v9  ;;  %4156 = vmatpush3.bf16.msra.mxu0 %v5117_v8 }
 0x2fb   :  { %4186 = vmatprep.subr.bf16.mxu0 %v5595_v52 }
 0x2fc   :  { %4832 = vmatmul.mubr.bf16.gmra.mrb[72].mxu1 %v5893_v40 }
 0x2fd   :  { %1890 = vmatprep.mubr.bf16.mxu1 %v5840_v36  ;;  %4229 = vmatpush3.bf16.msra.mxu1 %v5815_v10  ;;  %v6009_v10 = vld [vmem:[%s7271_s15] ss:$0 sm:$0xff] }
 0x2fe   :  { %4230 = vmatprep.subr.bf16.mxu1 %v5821_v12 }
 0x301   :  { %4231 = vmatpush3.bf16.msra.mxu1 %v5827_v14 }
 0x302   :  { %4232 = vmatprep.subr.bf16.mxu1 %v5114_v5 }
 0x305   :  { %4233 = vmatpush3.bf16.msra.mxu1 %v5115_v6 }
 0x306   :  { %4234 = vmatprep.subr.bf16.mxu1 %v5116_v7 }
 0x309   :  { %4235 = vmatpush3.bf16.msra.mxu1 %v5117_v8 }
 0x39f   :  { %v4123_v9 = vpop.f32.mrb[52].mxu1 }
 0x3a0   :  { %v4124_v12 = vpop.f32.mrb[53].mxu1 }
 0x3a1   :  { %v4125_v14 = vadd.f32 %v4124_v12, %v4123_v9  ;;  %v4126_v32 = vpop.f32.mrb[54].mxu1 }
 0x3a2   :  { %v4127_v40 = vpop.f32.mrb[55].mxu1 }
 0x3a3   :  { %v1434_v28 = vadd.f32 %v4125_v14, %v6009_v10  ;;  %v4128_v35 = vadd.f32 %v4127_v40, %v4126_v32 }
 0x3a5   :  { %v1462_v39 = vmul.f32 0.01, %v1434_v28  ;;  %v1437_v42 = vadd.f32 %v4128_v35, %v6009_v10  ;;  %vm1456_vm11 = vcmp.ge.f32.partialorder %v1434_v28, 0.0 }
 0x3a7   :  { %vm1457_vm12 = vcmp.ge.f32.partialorder %v1437_v42, 0.0  ;;  %v1463_v1 = vmul.f32 0.01, %v1437_v42  ;;  %v4129_v52 = vpop.f32.mrb[56].mxu1  ;;  %v1468_v20 = vsel %vm1456_vm11, %v1434_v28, %v1462_v39 }
 0x3a8   :  { %v4130_v22 = vpop.f32.mrb[57].mxu1 }
 0x3a9   :  { %v1469_v24 = vsel %vm1457_vm12, %v1437_v42, %v1463_v1  ;;  %v4131_v2 = vadd.f32 %v4130_v22, %v4129_v52  ;;  %v4132_v30 = vpop.f32.mrb[58].mxu1 }
 0x3aa   :  { %v1474_v5 = vpack.c.bf16 %v1469_v24, %v1468_v20  ;;  %v4133_v6 = vpop.f32.mrb[59].mxu1 }
 0x3ab   :  { %v1442_v7 = vadd.f32 %v4131_v2, %v6009_v10  ;;  %v4134_v8 = vadd.f32 %v4133_v6, %v4132_v30  ;;  %v1771_v30 = vsub.f32 %v5834_v33, %v5859_v13 }
 0x3ac   :  { %1660 = vmatmul.mubr.bf16.vlgmr.msra.gmra.mrb[44].mxu0 %v1474_v5 }
 0x3ad   :  { %v1464_v9 = vmul.f32 0.01, %v1442_v7  ;;  %v1445_v12 = vadd.f32 %v4134_v8, %v6009_v10  ;;  %4187 = vmatpush3.bf16.msra.mxu0 %v5600_v53  ;;  %1667 = vmatprep.mubr.bf16.mxu0 %v5890_v38  ;;  %vm1458_vm13 = vcmp.ge.f32.partialorder %v1442_v7, 0.0 }
 0x3ae   :  { %4188 = vmatprep.subr.bf16.mxu0 %v5606_v54 }
 0x3af   :  { %vm1459_vm14 = vcmp.ge.f32.partialorder %v1445_v12, 0.0  ;;  %v1465_v14 = vmul.f32 0.01, %v1445_v12  ;;  %v4135_v32 = vpop.f32.mrb[60].mxu1  ;;  %v1470_v39 = vsel %vm1458_vm13, %v1442_v7, %v1464_v9 }
 0x3b0   :  { %v4136_v40 = vpop.f32.mrb[61].mxu1 }
 0x3b1   :  { %v4137_v28 = vadd.f32 %v4136_v40, %v4135_v32  ;;  %4189 = vmatpush3.bf16.msra.mxu0 %v5612_v55  ;;  %v4138_v35 = vpop.f32.mrb[62].mxu1  ;;  %v1471_v42 = vsel %vm1459_vm14, %v1445_v12, %v1465_v14  ;;  %v1775_v14 = vsub.f32 %v5859_v13, %v5843_v43  ;;  %v6105_v40 = vld [vmem:[%s7274_s17] ss:$0 sm:$0xff] }
 0x3b2   :  { %v4139_v1 = vpop.f32.mrb[63].mxu1  ;;  %4190 = vmatprep.subr.bf16.mxu0 %v5618_v56  ;;  %v1475_v52 = vpack.c.bf16 %v1471_v42, %v1470_v39  ;;  %v1772_v56 = vsub.f32 %v5836_v34, %v5868_v26 }
 0x3b3   :  { %v1450_v53 = vadd.f32 %v4137_v28, %v6009_v10  ;;  %v4140_v22 = vadd.f32 %v4139_v1, %v4138_v35 }
 0x3b4   :  { %1668 = vmatmul.mubr.bf16.gmra.mrb[48].mxu0 %v1475_v52  ;;  %v1777_v5 = vpack.c.bf16 %v1772_v56, %v1771_v30 }
 0x3b5   :  { %v1466_v20 = vmul.f32 0.01, %v1450_v53  ;;  %v1453_v54 = vadd.f32 %v4140_v22, %v6009_v10  ;;  %4191 = vmatpush3.bf16.msra.mxu0 %v5623_v57  ;;  %1675 = vmatprep.mubr.bf16.mxu0 %v5917_v15  ;;  %vm1460_vm15 = vcmp.ge.f32.partialorder %v1450_v53, 0.0 }
 0x3b6   :  { %4192 = vmatprep.subr.bf16.mxu0 %v5701_v49 }
 0x3b7   :  { %vm1461_vm1 = vcmp.ge.f32.partialorder %v1453_v54, 0.0  ;;  %v1467_v55 = vmul.f32 0.01, %v1453_v54  ;;  %v1472_v24 = vsel %vm1460_vm15, %v1450_v53, %v1466_v20 }
 0x3b9   :  { %4193 = vmatpush3.bf16.msra.mxu0 %v5707_v47  ;;  %v1473_v2 = vsel %vm1461_vm1, %v1453_v54, %v1467_v55 }
 0x3ba   :  { %4194 = vmatprep.subr.bf16.mxu0 %v5713_v46  ;;  %v1476_v57 = vpack.c.bf16 %v1473_v2, %v1472_v24 }
 0x3bc   :  { %1676 = vmatmul.mubr.bf16.gmra.mrb[52].mxu0 %v1476_v57 }
 0x3bd   :  { %4195 = vmatpush3.bf16.msra.mxu0 %v5718_v50  ;;  %1812 = vmatprep.mubr.bf16.mxu0 %v1777_v5  ;;  %v1774_v50 = vsub.f32 %v5845_v48, %v5836_v34 }
 0x3be   :  { %4196 = vmatprep.subr.bf16.mxu0 %v5725_v51 }
 0x3bf   :  { %v6033_v49 = vpop.f32.mrb[64].mxu1 }
 0x3c0   :  { %v4825_v6 = vpop.f32.mrb[65].mxu1 }
 0x3c1   :  { %v6035_v7 = vpop.f32.mrb[66].mxu1  ;;  %4197 = vmatpush3.bf16.msra.mxu0 %v5730_v59  ;;  %v1773_v59 = vsub.f32 %v5843_v43, %v5834_v33 }
 0x3c2   :  { %v4826_v47 = vpop.f32.mrb[67].mxu1  ;;  %4198 = vmatprep.subr.bf16.mxu0 %v5737_v60 }
 0x3c3   :  { %v1778_v60 = vpack.c.bf16 %v1774_v50, %v1773_v59 }
 0x3c5   :  { %4199 = vmatpush3.bf16.msra.mxu0 %v5742_v61 }
 0x3c6   :  { %4200 = vmatprep.subr.bf16.mxu0 %v5749_v62  ;;  %v1776_v62 = vsub.f32 %v5868_v26, %v5845_v48 }
 0x3c7   :  { %v6041_v46 = vpop.f32.mrb[68].mxu1 }
 0x3c8   :  { %v4829_v51 = vpop.f32.mrb[69].mxu1 }
 0x3c9   :  { %v6045_v8 = vpop.f32.mrb[70].mxu1  ;;  %4201 = vmatpush3.bf16.msra.mxu0 %v5754_v63 }
 0x3ca   :  { %v4830_v9 = vpop.f32.mrb[71].mxu1  ;;  %4835 = vmatprep.subr.bf16.mxu0 %v7288_v0 }
 0x3cc   :  { %1813 = vmatmul.mubr.bf16.vlgmr.msra.gmra.mrb[56].mxu0 %v5840_v36  ;;  %v1779_v36 = vpack.c.bf16 %v1776_v62, %v1775_v14 }
 0x3cd   :  { %1820 = vmatprep.mubr.bf16.mxu0 %v1778_v60  ;;  %4836 = vmatpush3.bf16.msra.mxu0 %v5856_v23  ;;  %v1125_v23 = vadd.f32 %v5896_v29, %v5922_v18 }
 0x3ce   :  { %4837 = vmatprep.subr.bf16.mxu0 %v7288_v0 }
 0x3cf   :  { %v6054_v61 = vpop.f32.mrb[72].mxu1 }
 0x3d0   :  { %v4833_v63 = vpop.f32.mrb[73].mxu1 }
 0x3d1   :  { %v6058_v12 = vpop.f32.mrb[74].mxu1  ;;  %4838 = vmatpush3.bf16.msra.mxu0 %v5866_v16  ;;  %v1128_v16 = vadd.f32 %v5906_v44, %v5922_v18  ;;  %v6099_v18 = vld [vmem:[%s7272_s18 + $0x40] sm:$0xff]  }
 0x3d2   :  { %v4834_v32 = vpop.f32.mrb[75].mxu1  ;;  %4839 = vmatprep.subr.bf16.mxu0 %v7288_v0  ;;  %4265 = vmatprep.subr.bf16.mxu1 %v6099_v18 }
 0x3d4   :  { %1821 = vmatmul.mubr.bf16.gmra.mrb[60].mxu0 %v5890_v38 }
 0x3d5   :  { %1828 = vmatprep.mubr.bf16.mxu0 %v1779_v36  ;;  %4840 = vmatpush3.bf16.msra.mxu0 %v5883_v27  ;;  %v1163_v27 = vmul.f32 0.999995, %v1125_v23 }
 0x3d6   :  { %4841 = vmatprep.subr.bf16.mxu0 %v7288_v0 }
 0x3d7   :  { %vm1173_vm2 = vcmp.ge.f32.partialorder %v1163_v27, 0.0 }
 0x3d9   :  { %4842 = vmatpush3.bf16.msra.mxu0 %v5903_v45  ;;  %v1164_v45 = vmul.f32 0.999995, %v1128_v16 }
 0x3da   :  { %4843 = vmatprep.subr.bf16.mxu0 %v7288_v0 }
 0x3db   :  { %vm1174_vm3 = vcmp.ge.f32.partialorder %v1164_v45, 0.0 }
 0x3dc   :  { %1829 = vmatmul.mubr.bf16.gmra.mrb[64].mxu0 %v5917_v15 }
 0x3dd   :  { %4844 = vmatpush3.bf16.msra.mxu0 %v5912_v58  ;;  %4851 = vmatprep.mubr.msk.bf16.mxu0 %vm5201_vm0, %v7288_v0  ;;  %v1183_v58 = vmul.f32 0.01, %v1163_v27 }
 0x3de   :  { %4845 = vmatprep.subr.bf16.mxu0 %v7288_v0 }
 0x3e1   :  { %4846 = vmatpush3.bf16.msra.mxu0 %v5929_v11  ;;  %v1184_v11 = vmul.f32 0.01, %v1164_v45 }
 0x3e2   :  { %4847 = vmatprep.subr.bf16.mxu0 %v7288_v0 }
 0x3e3   :  { %v6089_v29 = vsel %vm1174_vm3, %v1164_v45, %v1184_v11 }
 0x3e5   :  { %4848 = vmatpush3.bf16.msra.mxu0 %v5944_v31  ;;  %v6087_v31 = vsel %vm1173_vm2, %v1163_v27, %v1183_v58 }
 0x3e6   :  { %4849 = vmatprep.subr.bf16.mxu0 %v7288_v0  ;;  %v6093_v44 = vpack.c.bf16 %v6089_v29, %v6087_v31 }
 0x3e8   :  { %7358 = vst [vmem:[#allocation3_spill] sm:$0xff] %v6093_v44 }
 0x3e9   :  { %4850 = vmatpush3.bf16.msra.mxu0 %v5951_v37 }
 0x3ec   :  { %4852 = vmatmul.mubr.bf16.vlgmr.msra.gmra.mrb[68].mxu0 %v1777_v5 }
 0x3ed   :  { %4855 = vmatprep.mubr.msk.bf16.mxu0 %vm5201_vm0, %v7288_v0 }
 0x3f4   :  { %4856 = vmatmul.mubr.bf16.gmra.mrb[72].mxu0 %v1778_v60 }
 0x3f5   :  { %4859 = vmatprep.mubr.msk.bf16.mxu0 %vm5201_vm0, %v7288_v0 }
 0x3fc   :  { %4860 = vmatmul.mubr.bf16.gmra.mrb[76].mxu0 %v1779_v36 }
 0x3fd   :  { %2508 = vmatprep.mubr.bf16.mxu0 %v6093_v44 }
 0x47f   :  { %v4157_v37 = vpop.f32.mrb[44].mxu0 }
 0x480   :  { %v4158_v28 = vpop.f32.mrb[45].mxu0 }
 0x481   :  { %v4159_v35 = vadd.f32 %v4158_v28, %v4157_v37  ;;  %v4160_v39 = vpop.f32.mrb[46].mxu0 }
 0x482   :  { %v4161_v42 = vpop.f32.mrb[47].mxu0 }
 0x483   :  { %v1662_v1 = vadd.f32 %v4159_v35, %v6105_v40  ;;  %v4162_v52 = vadd.f32 %v4161_v42, %v4160_v39  ;;  %v6136_v42 = vld [vmem:[%s7272_s18] sm:$0xff]  }
 0x485   :  { %v6109_v53 = vadd.f32 %v6033_v49, %v1662_v1  ;;  %v1665_v22 = vadd.f32 %v4162_v52, %v6105_v40 }
 0x487   :  { %v6113_v20 = vadd.f32 %v6035_v7, %v1665_v22  ;;  %v4163_v54 = vpop.f32.mrb[48].mxu0  ;;  %v6141_v22 = vld [vmem:[%s7272_s18 + $0x48] sm:$0xff]  }
 0x488   :  { %v4164_v55 = vpop.f32.mrb[49].mxu0 }
 0x489   :  { %v4165_v56 = vadd.f32 %v4164_v55, %v4163_v54  ;;  %v4166_v24 = vpop.f32.mrb[50].mxu0 }
 0x48a   :  { %v4167_v2 = vpop.f32.mrb[51].mxu0 }
 0x48b   :  { %v1670_v30 = vadd.f32 %v4165_v56, %v6105_v40  ;;  %v4168_v57 = vadd.f32 %v4167_v2, %v4166_v24  ;;  %v1165_v56 = vmul.f32 0.999995, %v5935_v25  ;;  %v7359_v24 = vld [vmem:[#allocation2_spill] sm:$0xff]  ;;  %v6158_v25 = vld [vmem:[%s7272_s18 + $0x50] sm:$0xff]  }
 0x48c   :  { %v1166_v2 = vmul.f32 0.999995, %v7359_v24  ;;  %v1168_v24 = vmul.f32 0.999995, %v5958_v21 }
 0x48d   :  { %v6117_v5 = vadd.f32 %v6041_v46, %v1670_v30  ;;  %v1673_v6 = vadd.f32 %v4168_v57, %v6105_v40  ;;  %vm1175_vm8 = vcmp.ge.f32.partialorder %v1165_v56, 0.0 }
 0x48e   :  { %vm1176_vm9 = vcmp.ge.f32.partialorder %v1166_v2, 0.0  ;;  %vm1178_vm13 = vcmp.ge.f32.partialorder %v1168_v24, 0.0 }
 0x48f   :  { %v4169_v49 = vpop.f32.mrb[52].mxu0  ;;  %v6121_v47 = vadd.f32 %v6045_v8, %v1673_v6  ;;  %v6152_v6 = vld [vmem:[%s7272_s18 + $0x8] sm:$0xff]  }
 0x490   :  { %v4170_v50 = vpop.f32.mrb[53].mxu0 }
 0x491   :  { %v4171_v7 = vadd.f32 %v4170_v50, %v4169_v49  ;;  %v4172_v51 = vpop.f32.mrb[54].mxu0 }
 0x492   :  { %v4173_v59 = vpop.f32.mrb[55].mxu0 }
 0x493   :  { %v1678_v9 = vadd.f32 %v4171_v7, %v6105_v40  ;;  %v4174_v60 = vadd.f32 %v4173_v59, %v4172_v51  ;;  %v1185_v7 = vmul.f32 0.01, %v1165_v56  ;;  %v1186_v51 = vmul.f32 0.01, %v1166_v2 }
 0x495   :  { %v6125_v62 = vadd.f32 %v6054_v61, %v1678_v9  ;;  %v1681_v63 = vadd.f32 %v4174_v60, %v6105_v40 }
 0x497   :  { %v6129_v46 = vadd.f32 %v6058_v12, %v1681_v63 }
 0x49f   :  { %v4202_v14 = vpop.f32.mrb[56].mxu0 }
 0x4a0   :  { %v4203_v32 = vpop.f32.mrb[57].mxu0 }
 0x4a1   :  { %v4204_v36 = vadd.f32 %v4203_v32, %v4202_v14  ;;  %v4205_v8 = vpop.f32.mrb[58].mxu0  ;;  %v6164_v14 = vld [vmem:[%s7272_s18 + $0x10] sm:$0xff]  }
 0x4a2   :  { %v4206_v23 = vpop.f32.mrb[59].mxu0 }
 0x4a3   :  { %v1815_v16 = vadd.f32 %v4204_v36, %v6009_v10  ;;  %v4207_v27 = vadd.f32 %v4206_v23, %v4205_v8  ;;  %v6170_v8 = vld [vmem:[%s7272_s18 + $0x58] sm:$0xff]  }
 0x4a5   :  { %v1843_v45 = vmul.f32 0.01, %v1815_v16  ;;  %v1818_v58 = vadd.f32 %v4207_v27, %v6009_v10  ;;  %vm1837_vm4 = vcmp.ge.f32.partialorder %v1815_v16, 0.0  ;;  %v6174_v27 = vsel %vm1175_vm8, %v1165_v56, %v1185_v7 }
 0x4a6   :  { %7360 = vst [vmem:[#allocation2_spill] sm:$0xff] %v6174_v27  ;;  %v1167_v56 = vmul.f32 0.999995, %v5955_v19  ;;  %v6233_v19 = vld [vmem:[%s7272_s18 + $0x30] sm:$0xff]  }
 0x4a7   :  { %vm1838_vm5 = vcmp.ge.f32.partialorder %v1818_v58, 0.0  ;;  %v1844_v61 = vmul.f32 0.01, %v1818_v58  ;;  %v4208_v11 = vpop.f32.mrb[60].mxu0  ;;  %v1849_v28 = vsel %vm1837_vm4, %v1815_v16, %v1843_v45  ;;  %v6176_v45 = vsel %vm1176_vm9, %v1166_v2, %v1186_v51  ;;  %v6223_v2 = vld [vmem:[%s7272_s18 + $0x70] sm:$0xff]   ;;  %v6239_v51 = vld [vmem:[%s7272_s18 + $0x78] sm:$0xff]  }
 0x4a8   :  { %v4209_v37 = vpop.f32.mrb[61].mxu0  ;;  %7361 = vst [vmem:[#allocation4_spill] sm:$0xff] %v6176_v45  ;;  %v1187_v21 = vmul.f32 0.01, %v1167_v56  ;;  %vm1177_vm12 = vcmp.ge.f32.partialorder %v1167_v56, 0.0 }
 0x4a9   :  { %v1850_v35 = vsel %vm1838_vm5, %v1818_v58, %v1844_v61  ;;  %v4210_v12 = vadd.f32 %v4209_v37, %v4208_v11  ;;  %v4211_v39 = vpop.f32.mrb[62].mxu0  ;;  %v6184_v11 = vld [vmem:[%s7272_s18 + $0x18] sm:$0xff]   ;;  %v6190_v37 = vld [vmem:[%s7272_s18 + $0x60] sm:$0xff]  }
 0x4aa   :  { %v1855_v1 = vpack.c.bf16 %v1850_v35, %v1849_v28  ;;  %v4212_v52 = vpop.f32.mrb[63].mxu0 }
 0x4ab   :  { %v1823_v54 = vadd.f32 %v4210_v12, %v6009_v10  ;;  %v4213_v55 = vadd.f32 %v4212_v52, %v4211_v39  ;;  %v6200_v39 = vld [vmem:[%s7272_s18 + $0x20] sm:$0xff]   ;;  %v6206_v52 = vld [vmem:[%s7272_s18 + $0x68] sm:$0xff]  }
 0x4ac   :  { %1891 = vmatmul.mubr.bf16.vlgmr.msra.gmra.mrb[76].mxu1 %v1855_v1 }
 0x4ad   :  { %v1845_v30 = vmul.f32 0.01, %v1823_v54  ;;  %v1826_v57 = vadd.f32 %v4213_v55, %v6009_v10  ;;  %4266 = vmatpush3.bf16.msra.mxu1 %v6136_v42  ;;  %1898 = vmatprep.mubr.bf16.mxu1 %v5890_v38  ;;  %vm1839_vm6 = vcmp.ge.f32.partialorder %v1823_v54, 0.0  ;;  %v6215_v55 = vld [vmem:[%s7272_s18 + $0x28] sm:$0xff]  }
 0x4ae   :  { %4267 = vmatprep.subr.bf16.mxu1 %v6141_v22 }
 0x4af   :  { %vm1840_vm7 = vcmp.ge.f32.partialorder %v1826_v57, 0.0  ;;  %v1846_v49 = vmul.f32 0.01, %v1826_v57  ;;  %v4214_v50 = vpop.f32.mrb[64].mxu0  ;;  %v1851_v60 = vsel %vm1839_vm6, %v1823_v54, %v1845_v30 }
 0x4b0   :  { %v4215_v38 = vpop.f32.mrb[65].mxu0 }
 0x4b1   :  { %v4216_v59 = vadd.f32 %v4215_v38, %v4214_v50  ;;  %4268 = vmatpush3.bf16.msra.mxu1 %v6152_v6  ;;  %v4217_v9 = vpop.f32.mrb[66].mxu0  ;;  %v1852_v63 = vsel %vm1840_vm7, %v1826_v57, %v1846_v49  ;;  %v1188_v50 = vmul.f32 0.01, %v1168_v24  ;;  %v6245_v38 = vld [vmem:[%s7272_s18 + $0x38] sm:$0xff]  }
 0x4b2   :  { %v4218_v32 = vpop.f32.mrb[67].mxu0  ;;  %4269 = vmatprep.subr.bf16.mxu1 %v6158_v25  ;;  %v1856_v36 = vpack.c.bf16 %v1852_v63, %v1851_v60  ;;  %v1169_v60 = vmul.f32 0.999995, %v5967_v41  ;;  %v1170_v63 = vmul.f32 0.999995, %v5971_v17  ;;  %v6266_v41 = vld [vmem:[%s7273_s20 + $0x80] sm:$0xff]  }
 0x4b3   :  { %v1831_v23 = vadd.f32 %v4216_v59, %v6009_v10  ;;  %v4219_v16 = vadd.f32 %v4218_v32, %v4217_v9  ;;  %v6247_v59 = vsel %vm1177_vm12, %v1167_v56, %v1187_v21  ;;  %v6249_v9 = vsel %vm1178_vm13, %v1168_v24, %v1188_v50  ;;  %7364 = vst [vmem:[#allocation7_spill] sm:$0xff] %v6266_v41 }
 0x4b4   :  { %1899 = vmatmul.mubr.bf16.gmra.mrb[80].mxu1 %v1856_v36  ;;  %7362 = vst [vmem:[#allocation5_spill] sm:$0xff] %v6247_v59  ;;  %7363 = vst [vmem:[#allocation6_spill] sm:$0xff] %v6249_v9  ;;  %v2098_v36 = vsub.f32 %v6174_v27, %v6247_v59  ;;  %v1189_v17 = vmul.f32 0.01, %v1169_v60  ;;  %vm1179_vm14 = vcmp.ge.f32.partialorder %v1169_v60, 0.0  ;;  %vm1180_vm15 = vcmp.ge.f32.partialorder %v1170_v63, 0.0 }
 0x4b5   :  { %v1847_v58 = vmul.f32 0.01, %v1831_v23  ;;  %v1834_v61 = vadd.f32 %v4219_v16, %v6009_v10  ;;  %4270 = vmatpush3.bf16.msra.mxu1 %v6164_v14  ;;  %1906 = vmatprep.mubr.bf16.mxu1 %v5917_v15  ;;  %vm1841_vm10 = vcmp.ge.f32.partialorder %v1831_v23, 0.0  ;;  %v2096_v10 = vsub.f32 %v6087_v31, %v6174_v27 }
 0x4b6   :  { %4271 = vmatprep.subr.bf16.mxu1 %v6170_v8  ;;  %v2097_v15 = vsub.f32 %v6089_v29, %v6176_v45  ;;  %v1172_v56 = vmul.f32 0.999995, %v5984_v4 }
 0x4b7   :  { %vm1842_vm11 = vcmp.ge.f32.partialorder %v1834_v61, 0.0  ;;  %v1848_v28 = vmul.f32 0.01, %v1834_v61  ;;  %v1853_v35 = vsel %vm1841_vm10, %v1831_v23, %v1847_v58  ;;  %v2099_v23 = vsub.f32 %v6176_v45, %v6249_v9 }
 0x4b8   :  { %v6208_v54 = vpack.c.bf16 %v2097_v15, %v2096_v10  ;;  %v6274_v15 = vld [vmem:[%s7273_s20 + $0x88] sm:$0xff]   ;;  %vm1182_vm2 = vcmp.ge.f32.partialorder %v1172_v56, 0.0 }
 0x4b9   :  { %4272 = vmatpush3.bf16.msra.mxu1 %v6184_v11  ;;  %v1854_v12 = vsel %vm1842_vm11, %v1834_v61, %v1848_v28  ;;  %v1190_v61 = vmul.f32 0.01, %v1170_v63  ;;  %v2109_v10 = vpack.c.bf16 %v2099_v23, %v2098_v36  ;;  %7365 = vst [vmem:[#allocation8_spill] sm:$0xff] %v6274_v15  ;;  %v6299_v36 = vpack.c.bf16 %v6176_v45, %v6174_v27 }
 0x4ba   :  { %4273 = vmatprep.subr.bf16.mxu1 %v6190_v37  ;;  %v1857_v1 = vpack.c.bf16 %v1854_v12, %v1853_v35  ;;  %v6276_v35 = vsel %vm1179_vm14, %v1169_v60, %v1189_v17  ;;  %v1192_v60 = vmul.f32 0.01, %v1172_v56 }
 0x4bb   :  { %7366 = vst [vmem:[#allocation9_spill] sm:$0xff] %v6276_v35  ;;  %v6278_v12 = vsel %vm1180_vm15, %v1170_v63, %v1190_v61 }
 0x4bc   :  { %1907 = vmatmul.mubr.bf16.gmra.mrb[84].mxu1 %v1857_v1  ;;  %7367 = vst [vmem:[#allocation10_spill] sm:$0xff] %v6278_v12  ;;  %v1171_v1 = vmul.f32 0.999995, %v5980_v3  ;;  %v2101_v21 = vsub.f32 %v6249_v9, %v6278_v12  ;;  %v6295_v3 = vld [vmem:[%s7273_s20 + $0x90] sm:$0xff]   ;;  %v6311_v61 = vsel %vm1182_vm2, %v1172_v56, %v1192_v60 }
 0x4bd   :  { %4274 = vmatpush3.bf16.msra.mxu1 %v6200_v39  ;;  %2250 = vmatprep.mubr.bf16.mxu1 %v6208_v54  ;;  %7368 = vst [vmem:[#allocation11_spill] sm:$0xff] %v6295_v3  ;;  %7371 = vst [vmem:[#allocation14_spill] sm:$0xff] %v6311_v61  ;;  %v2105_v60 = vsub.f32 %v6311_v61, %v6089_v29 }
 0x4be   :  { %4275 = vmatprep.subr.bf16.mxu1 %v6206_v52  ;;  %v1191_v4 = vmul.f32 0.01, %v1171_v1  ;;  %vm1181_vm1 = vcmp.ge.f32.partialorder %v1171_v1, 0.0 }
 0x4bf   :  { %v6225_v30 = vpop.f32.mrb[68].mxu0 }
 0x4c0   :  { %v4853_v57 = vpop.f32.mrb[69].mxu0  ;;  %v6309_v17 = vsel %vm1181_vm1, %v1171_v1, %v1191_v4  ;;  %v6326_v1 = vpack.c.bf16 %v6249_v9, %v6247_v59 }
 0x4c1   :  { %4276 = vmatpush3.bf16.msra.mxu1 %v6215_v55  ;;  %v6228_v49 = vpop.f32.mrb[70].mxu0  ;;  %v2100_v57 = vsub.f32 %v6247_v59, %v6276_v35  ;;  %7370 = vst [vmem:[#allocation13_spill] sm:$0xff] %v6309_v17  ;;  %v2104_v4 = vsub.f32 %v6309_v17, %v6087_v31 }
 0x4c2   :  { %v4854_v7 = vpop.f32.mrb[71].mxu0  ;;  %4277 = vmatprep.subr.bf16.mxu1 %v6223_v2 }
 0x4c3   :  { %v2111_v23 = vpack.c.bf16 %v2101_v21, %v2100_v57  ;;  %v2103_v57 = vsub.f32 %v6278_v12, %v6311_v61  ;;  %v6322_v21 = vld [vmem:[%s7273_s20 + $0xa0] sm:$0xff]  }
 0x4c4   :  { %7372 = vst [vmem:[#allocation15_spill] sm:$0xff] %v6322_v21 }
 0x4c5   :  { %4278 = vmatpush3.bf16.msra.mxu1 %v6233_v19 }
 0x4c6   :  { %4279 = vmatprep.subr.bf16.mxu1 %v6239_v51 }
 0x4c7   :  { %v6254_v32 = vpop.f32.mrb[72].mxu0 }
 0x4c8   :  { %v4857_v16 = vpop.f32.mrb[73].mxu0 }
 0x4c9   :  { %4280 = vmatpush3.bf16.msra.mxu1 %v6245_v38  ;;  %v6261_v58 = vpop.f32.mrb[74].mxu0  ;;  %v6307_v16 = vld [vmem:[%s7273_s20 + $0x98] sm:$0xff]  }
 0x4ca   :  { %v4858_v28 = vpop.f32.mrb[75].mxu0  ;;  %4863 = vmatprep.subr.bf16.mxu1 %v7288_v0  ;;  %7369 = vst [vmem:[#allocation12_spill] sm:$0xff] %v6307_v16 }
 0x4cb   :  { %v2102_v28 = vsub.f32 %v6276_v35, %v6309_v17 }
 0x4cc   :  { %2251 = vmatmul.mubr.bf16.vlgmr.msra.gmra.mrb[88].mxu1 %v6093_v44 }
 0x4cd   :  { %2258 = vmatprep.mubr.bf16.mxu1 %v2109_v10  ;;  %4864 = vmatpush3.bf16.msra.mxu1 %v6266_v41  ;;  %v2113_v56 = vpack.c.bf16 %v2103_v57, %v2102_v28  ;;  %v6349_v28 = vpack.c.bf16 %v6278_v12, %v6276_v35  ;;  %v2115_v57 = vpack.c.bf16 %v2105_v60, %v2104_v4  ;;  %v6378_v4 = vld [vmem:[%s7273_s20 + $0x40] sm:$0xff]   ;;  %v6412_v60 = vld [vmem:[%s7273_s20 + $0x10] sm:$0xff]  }
 0x4ce   :  { %4865 = vmatprep.subr.bf16.mxu1 %v7288_v0  ;;  %7376 = vst [vmem:[#allocation19_spill] sm:$0xff] %v6378_v4  ;;  %4311 = vmatprep.subr.bf16.mxu0 %v6378_v4  ;;  %7381 = vst [vmem:[#allocation24_spill] sm:$0xff] %v6412_v60 }
 0x4cf   :  { %v6283_v24 = vpop.f32.mrb[76].mxu0 }
 0x4d0   :  { %v4861_v50 = vpop.f32.mrb[77].mxu0 }
 0x4d1   :  { %v6289_v7 = vpop.f32.mrb[78].mxu0  ;;  %4866 = vmatpush3.bf16.msra.mxu1 %v6274_v15  ;;  %v6334_v50 = vld [vmem:[%s7273_s20 + $0xa8] sm:$0xff]  }
 0x4d2   :  { %v4862_v63 = vpop.f32.mrb[79].mxu0  ;;  %4867 = vmatprep.subr.bf16.mxu1 %v7288_v0  ;;  %7373 = vst [vmem:[#allocation16_spill] sm:$0xff] %v6334_v50 }
 0x4d3   :  { %v6345_v63 = vld [vmem:[%s7273_s20 + $0xb0] sm:$0xff]  }
 0x4d4   :  { %2259 = vmatmul.mubr.bf16.gmra.mrb[92].mxu1 %v6299_v36  ;;  %7374 = vst [vmem:[#allocation17_spill] sm:$0xff] %v6345_v63 }
 0x4d5   :  { %2266 = vmatprep.mubr.bf16.mxu1 %v2111_v23  ;;  %4868 = vmatpush3.bf16.msra.mxu1 %v6295_v3 }
 0x4d6   :  { %4869 = vmatprep.subr.bf16.mxu1 %v7288_v0 }
 0x4d9   :  { %4870 = vmatpush3.bf16.msra.mxu1 %v6307_v16 }
 0x4da   :  { %4871 = vmatprep.subr.bf16.mxu1 %v7288_v0 }
 0x4dc   :  { %2267 = vmatmul.mubr.bf16.gmra.mrb[96].mxu1 %v6326_v1 }
 0x4dd   :  { %2274 = vmatprep.mubr.bf16.mxu1 %v2113_v56  ;;  %4872 = vmatpush3.bf16.msra.mxu1 %v6322_v21  ;;  %v6363_v21 = vpack.c.bf16 %v6311_v61, %v6309_v17 }
 0x4de   :  { %4873 = vmatprep.subr.bf16.mxu1 %v7288_v0 }
 0x4e1   :  { %4874 = vmatpush3.bf16.msra.mxu1 %v6334_v50  ;;  %v6357_v50 = vld [vmem:[%s7273_s20 + $0xb8] sm:$0xff]  }
 0x4e2   :  { %4875 = vmatprep.subr.bf16.mxu1 %v7288_v0  ;;  %7375 = vst [vmem:[#allocation18_spill] sm:$0xff] %v6357_v50 }
 0x4e4   :  { %2275 = vmatmul.mubr.bf16.gmra.mrb[100].mxu1 %v6349_v28 }
 0x4e5   :  { %2282 = vmatprep.mubr.bf16.mxu1 %v2115_v57  ;;  %4876 = vmatpush3.bf16.msra.mxu1 %v6345_v63 }
 0x4e6   :  { %4877 = vmatprep.subr.bf16.mxu1 %v7288_v0 }
 0x4e9   :  { %4878 = vmatpush3.bf16.msra.mxu1 %v6357_v50 }
 0x4ea   :  { %4416 = vmatprep.subr.bf16.mxu1 %v6378_v4  ;;  %v1741_v4 = vmul.f32 0.999995, %v6109_v53 }
 0x4ec   :  { %2283 = vmatmul.mubr.bf16.gmra.mrb[104].mxu1 %v6363_v21  ;;  %v1753_v15 = vmul.f32 0.01, %v1741_v4  ;;  %vm1747_vm3 = vcmp.ge.f32.partialorder %v1741_v4, 0.0 }
 0x4ed   :  { %4879 = vmatprep.mubr.msk.bf16.mxu1 %vm5201_vm0, %v7288_v0 }
 0x4f4   :  { %4880 = vmatmul.mubr.bf16.vlgmr.msra.gmra.mrb[108].mxu1 %v6208_v54  ;;  %v6383_v54 = vld [vmem:[%s7273_s20] sm:$0xff]  }
 0x4f5   :  { %4883 = vmatprep.mubr.msk.bf16.mxu1 %vm5201_vm0, %v7288_v0  ;;  %7377 = vst [vmem:[#allocation20_spill] sm:$0xff] %v6383_v54  ;;  %4312 = vmatpush3.bf16.msra.mxu0 %v6383_v54 }
 0x4f6   :  { %4417 = vmatpush3.bf16.msra.mxu1 %v6383_v54 }
 0x4fc   :  { %4884 = vmatmul.mubr.bf16.gmra.mrb[112].mxu1 %v2109_v10  ;;  %v6392_v10 = vld [vmem:[%s7273_s20 + $0x48] sm:$0xff]  }
 0x4fd   :  { %4887 = vmatprep.mubr.msk.bf16.mxu1 %vm5201_vm0, %v7288_v0  ;;  %7378 = vst [vmem:[#allocation21_spill] sm:$0xff] %v6392_v10  ;;  %4313 = vmatprep.subr.bf16.mxu0 %v6392_v10 }
 0x4fe   :  { %4418 = vmatprep.subr.bf16.mxu1 %v6392_v10  ;;  %v6427_v10 = vld [vmem:[%s7273_s20 + $0x18] sm:$0xff]  }
 0x4ff   :  { %7383 = vst [vmem:[#allocation26_spill] sm:$0xff] %v6427_v10 }
 0x504   :  { %4888 = vmatmul.mubr.bf16.gmra.mrb[116].mxu1 %v2111_v23  ;;  %v6398_v23 = vld [vmem:[%s7273_s20 + $0x8] sm:$0xff]  }
 0x505   :  { %4891 = vmatprep.mubr.msk.bf16.mxu1 %vm5201_vm0, %v7288_v0  ;;  %7379 = vst [vmem:[#allocation22_spill] sm:$0xff] %v6398_v23  ;;  %4314 = vmatpush3.bf16.msra.mxu0 %v6398_v23 }
 0x506   :  { %4419 = vmatpush3.bf16.msra.mxu1 %v6398_v23 }
 0x50c   :  { %4892 = vmatmul.mubr.bf16.gmra.mrb[120].mxu1 %v2113_v56  ;;  %v6407_v56 = vld [vmem:[%s7273_s20 + $0x50] sm:$0xff]  }
 0x50d   :  { %4895 = vmatprep.mubr.msk.bf16.mxu1 %vm5201_vm0, %v7288_v0  ;;  %7380 = vst [vmem:[#allocation23_spill] sm:$0xff] %v6407_v56  ;;  %4315 = vmatprep.subr.bf16.mxu0 %v6407_v56  ;;  %v6421_v0 = vld [vmem:[%s7273_s20 + $0x58] sm:$0xff]  }
 0x50e   :  { %4316 = vmatpush3.bf16.msra.mxu0 %v6412_v60  ;;  %7382 = vst [vmem:[#allocation25_spill] sm:$0xff] %v6421_v0  ;;  %4420 = vmatprep.subr.bf16.mxu1 %v6407_v56  ;;  %v6441_v56 = vld [vmem:[%s7273_s20 + $0x20] sm:$0xff]  }
 0x50f   :  { %4421 = vmatpush3.bf16.msra.mxu1 %v6412_v60  ;;  %4317 = vmatprep.subr.bf16.mxu0 %v6421_v0  ;;  %7385 = vst [vmem:[#allocation28_spill] sm:$0xff] %v6441_v56  ;;  %v6455_v60 = vld [vmem:[%s7273_s20 + $0x28] sm:$0xff]  }
 0x510   :  { %4422 = vmatprep.subr.bf16.mxu1 %v6421_v0  ;;  %v6450_v0 = vld [vmem:[%s7273_s20 + $0x68] sm:$0xff]   ;;  %7387 = vst [vmem:[#allocation30_spill] sm:$0xff] %v6455_v60 }
 0x511   :  { %7386 = vst [vmem:[#allocation29_spill] sm:$0xff] %v6450_v0 }
 0x512   :  { %4318 = vmatpush3.bf16.msra.mxu0 %v6427_v10 }
 0x513   :  { %4423 = vmatpush3.bf16.msra.mxu1 %v6427_v10  ;;  %v6469_v10 = vld [vmem:[%s7273_s20 + $0x30] sm:$0xff]  }
 0x514   :  { %4896 = vmatmul.mubr.bf16.gmra.mrb[124].mxu1 %v2115_v57  ;;  %v6436_v57 = vld [vmem:[%s7273_s20 + $0x60] sm:$0xff]   ;;  %7389 = vst [vmem:[#allocation32_spill] sm:$0xff] %v6469_v10 }
 0x515   :  { %2827 = vmatprep.mubr.bf16.mxu1 %v6093_v44  ;;  %7384 = vst [vmem:[#allocation27_spill] sm:$0xff] %v6436_v57  ;;  %4319 = vmatprep.subr.bf16.mxu0 %v6436_v57 }
 0x516   :  { %4424 = vmatprep.subr.bf16.mxu1 %v6436_v57  ;;  %4320 = vmatpush3.bf16.msra.mxu0 %v6441_v56  ;;  %v6464_v57 = vld [vmem:[%s7273_s20 + $0x70] sm:$0xff]  }
 0x517   :  { %4425 = vmatpush3.bf16.msra.mxu1 %v6441_v56  ;;  %4321 = vmatprep.subr.bf16.mxu0 %v6450_v0  ;;  %7388 = vst [vmem:[#allocation31_spill] sm:$0xff] %v6464_v57  ;;  %v6483_v56 = vld [vmem:[%s7273_s20 + $0x38] sm:$0xff]  }
 0x518   :  { %4426 = vmatprep.subr.bf16.mxu1 %v6450_v0  ;;  %v6478_v0 = vld [vmem:[%s7273_s20 + $0x78] sm:$0xff]   ;;  %7391 = vst [vmem:[#allocation34_spill] sm:$0xff] %v6483_v56 }
 0x519   :  { %7390 = vst [vmem:[#allocation33_spill] sm:$0xff] %v6478_v0 }
 0x51a   :  { %4322 = vmatpush3.bf16.msra.mxu0 %v6455_v60 }
 0x51b   :  { %4427 = vmatpush3.bf16.msra.mxu1 %v6455_v60  ;;  %4323 = vmatprep.subr.bf16.mxu0 %v6464_v57 }
 0x51c   :  { %4428 = vmatprep.subr.bf16.mxu1 %v6464_v57 }
 0x51e   :  { %4324 = vmatpush3.bf16.msra.mxu0 %v6469_v10 }
 0x51f   :  { %4429 = vmatpush3.bf16.msra.mxu1 %v6469_v10  ;;  %4325 = vmatprep.subr.bf16.mxu0 %v6478_v0 }
 0x520   :  { %4430 = vmatprep.subr.bf16.mxu1 %v6478_v0  ;;  %v1742_v0 = vmul.f32 0.999995, %v6113_v20  ;;  %v1743_v20 = vmul.f32 0.999995, %v6117_v5 }
 0x522   :  { %4326 = vmatpush3.bf16.msra.mxu0 %v6483_v56  ;;  %vm1748_vm5 = vcmp.ge.f32.partialorder %v1742_v0, 0.0  ;;  %vm1749_vm7 = vcmp.ge.f32.partialorder %v1743_v20, 0.0 }
 0x523   :  { %4370 = vmatprep.subr.bf16.mxu0 %v6099_v18  ;;  %4431 = vmatpush3.bf16.msra.mxu1 %v6483_v56 }
 0x524   :  { %4475 = vmatprep.subr.bf16.mxu1 %v6099_v18 }
 0x57f   :  { %v4236_v57 = vpop.f32.mrb[76].mxu1 }
 0x580   :  { %v4237_v60 = vpop.f32.mrb[77].mxu1 }
 0x581   :  { %v4238_v23 = vadd.f32 %v4237_v60, %v4236_v57  ;;  %v4239_v54 = vpop.f32.mrb[78].mxu1  ;;  %v1754_v60 = vmul.f32 0.01, %v1742_v0 }
 0x582   :  { %v4240_v50 = vpop.f32.mrb[79].mxu1 }
 0x583   :  { %v1893_v10 = vadd.f32 %v4238_v23, %v6105_v40  ;;  %v4241_v63 = vadd.f32 %v4240_v50, %v4239_v54  ;;  %v1759_v50 = vsel %vm1747_vm3, %v1741_v4, %v1753_v15  ;;  %v1760_v44 = vsel %vm1748_vm5, %v1742_v0, %v1754_v60 }
 0x584   :  { %v1755_v4 = vmul.f32 0.01, %v1743_v20 }
 0x585   :  { %v1950_v16 = vadd.f32 %v6225_v30, %v1893_v10  ;;  %v1896_v3 = vadd.f32 %v4241_v63, %v6105_v40 }
 0x587   :  { %v1972_v56 = vmul.f32 0.999995, %v1950_v16  ;;  %v1953_v18 = vadd.f32 %v6228_v49, %v1896_v3  ;;  %v4242_v61 = vpop.f32.mrb[80].mxu1  ;;  %v1744_v49 = vmul.f32 0.999995, %v6121_v47 }
 0x588   :  { %v4243_v57 = vpop.f32.mrb[81].mxu1 }
 0x589   :  { %vm1978_vm4 = vcmp.ge.f32.partialorder %v1972_v56, 0.0  ;;  %v1984_v53 = vmul.f32 0.01, %v1972_v56  ;;  %v1973_v17 = vmul.f32 0.999995, %v1953_v18  ;;  %v4244_v41 = vadd.f32 %v4243_v57, %v4242_v61  ;;  %v4245_v23 = vpop.f32.mrb[82].mxu1 }
 0x58a   :  { %v4246_v30 = vpop.f32.mrb[83].mxu1  ;;  %vm1750_vm8 = vcmp.ge.f32.partialorder %v1744_v49, 0.0  ;;  %v1756_v47 = vmul.f32 0.01, %v1744_v49 }
 0x58b   :  { %v1990_v54 = vsel %vm1978_vm4, %v1972_v56, %v1984_v53  ;;  %vm1979_vm6 = vcmp.ge.f32.partialorder %v1973_v17, 0.0  ;;  %v1985_v63 = vmul.f32 0.01, %v1973_v17  ;;  %v1901_v16 = vadd.f32 %v4244_v41, %v6105_v40 }
 0x58c   :  { %v1996_v3 = vadd.f32 %v1990_v54, %v1759_v50  ;;  %v4247_v10 = vadd.f32 %v4246_v30, %v4245_v23  ;;  %v1761_v30 = vsel %vm1749_vm7, %v1743_v20, %v1755_v4 }
 0x58d   :  { %v1991_v45 = vsel %vm1979_vm6, %v1973_v17, %v1985_v63  ;;  %v1958_v18 = vadd.f32 %v6254_v32, %v1901_v16  ;;  %v1745_v32 = vmul.f32 0.999995, %v6125_v62 }
 0x58e   :  { %v2002_v61 = vmul.f32 0.33333334, %v1996_v3  ;;  %v1997_v57 = vadd.f32 %v1991_v45, %v1760_v44  ;;  %v1904_v15 = vadd.f32 %v4247_v10, %v6105_v40 }
 0x58f   :  { %v1974_v5 = vmul.f32 0.999995, %v1958_v18  ;;  %v4248_v12 = vpop.f32.mrb[84].mxu1  ;;  %vm1751_vm11 = vcmp.ge.f32.partialorder %v1745_v32, 0.0 }
 0x590   :  { %v2003_v56 = vmul.f32 0.33333334, %v1997_v57  ;;  %v1961_v41 = vadd.f32 %v6261_v58, %v1904_v15  ;;  %v4249_v53 = vpop.f32.mrb[85].mxu1  ;;  %v2008_v44 = vadd.f32 %v2002_v61, %v5834_v33  ;;  %v1757_v33 = vmul.f32 0.01, %v1745_v32 }
 0x591   :  { %vm1980_vm9 = vcmp.ge.f32.partialorder %v1974_v5, 0.0  ;;  %v1986_v23 = vmul.f32 0.01, %v1974_v5  ;;  %v4250_v0 = vadd.f32 %v4249_v53, %v4248_v12  ;;  %v4251_v17 = vpop.f32.mrb[86].mxu1  ;;  %v1762_v12 = vsel %vm1750_vm8, %v1744_v49, %v1756_v47 }
 0x592   :  { %v2009_v45 = vadd.f32 %v2003_v56, %v5836_v34  ;;  %v1975_v60 = vmul.f32 0.999995, %v1961_v41  ;;  %v4252_v50 = vpop.f32.mrb[87].mxu1  ;;  %v1746_v34 = vmul.f32 0.999995, %v6129_v46 }
 0x593   :  { %v1992_v54 = vsel %vm1980_vm9, %v1974_v5, %v1986_v23  ;;  %v1909_v63 = vadd.f32 %v4250_v0, %v6105_v40  ;;  %v4253_v16 = vadd.f32 %v4252_v50, %v4251_v17 }
 0x594   :  { %v3939_v58 = vpack.c.bf16 %v2009_v45, %v2008_v44  ;;  %v1998_v3 = vadd.f32 %v1992_v54, %v1761_v30  ;;  %vm1981_vm10 = vcmp.ge.f32.partialorder %v1975_v60, 0.0  ;;  %v1987_v10 = vmul.f32 0.01, %v1975_v60 }
 0x595   :  { %v1966_v18 = vadd.f32 %v6283_v24, %v1909_v63  ;;  %v1912_v62 = vadd.f32 %v4253_v16, %v6105_v40  ;;  %v1763_v24 = vsel %vm1751_vm11, %v1745_v32, %v1757_v33  ;;  %v1758_v56 = vmul.f32 0.01, %v1746_v34 }
 0x596   :  { %3940 = vst [vmem:[%s7275_s22] sm:$0xff] %v3939_v58   ;;  %v1993_v20 = vsel %vm1981_vm10, %v1975_v60, %v1987_v10  ;;  %v2004_v61 = vmul.f32 0.33333334, %v1998_v3  ;;  %vm1752_vm13 = vcmp.ge.f32.partialorder %v1746_v34, 0.0 }
 0x597   :  { %v1999_v57 = vadd.f32 %v1993_v20, %v1762_v12  ;;  %v1976_v15 = vmul.f32 0.999995, %v1966_v18  ;;  %v1969_v4 = vadd.f32 %v6289_v7, %v1912_v62  ;;  %v1764_v17 = vsel %vm1752_vm13, %v1746_v34, %v1758_v56 }
 0x598   :  { %v2010_v41 = vadd.f32 %v2004_v61, %v5843_v43  ;;  %v6524_v43 = vld [vmem:[%s7276_s19] ss:$0 sm:$0xff] }
 0x599   :  { %v2005_v5 = vmul.f32 0.33333334, %v1999_v57  ;;  %vm1982_vm12 = vcmp.ge.f32.partialorder %v1976_v15, 0.0  ;;  %v1988_v49 = vmul.f32 0.01, %v1976_v15 }
 0x59a   :  { %v1977_v40 = vmul.f32 0.999995, %v1969_v4 }
 0x59b   :  { %v2011_v46 = vadd.f32 %v2005_v5, %v5845_v48  ;;  %v1994_v53 = vsel %vm1982_vm12, %v1976_v15, %v1988_v49 }
 0x59c   :  { %v2000_v47 = vadd.f32 %v1994_v53, %v1763_v24  ;;  %vm1983_vm14 = vcmp.ge.f32.partialorder %v1977_v40, 0.0  ;;  %v1989_v23 = vmul.f32 0.01, %v1977_v40 }
 0x59d   :  { %v3944_v0 = vpack.c.bf16 %v2011_v46, %v2010_v41 }
 0x59e   :  { %v1995_v44 = vsel %vm1983_vm14, %v1977_v40, %v1989_v23  ;;  %v2006_v7 = vmul.f32 0.33333334, %v2000_v47 }
 0x59f   :  { %3976 = vst [vmem:[%s7275_s22 + $0x8] sm:$0xff] %v3944_v0   ;;  %v2001_v32 = vadd.f32 %v1995_v44, %v1764_v17  ;;  %v4281_v45 = vpop.f32.mrb[88].mxu1 }
 0x5a0   :  { %v4282_v48 = vpop.f32.mrb[89].mxu1  ;;  %v2012_v63 = vadd.f32 %v2006_v7, %v5859_v13 }
 0x5a1   :  { %v2007_v60 = vmul.f32 0.33333334, %v2001_v32  ;;  %v4283_v50 = vadd.f32 %v4282_v48, %v4281_v45  ;;  %v4284_v30 = vpop.f32.mrb[90].mxu1 }
 0x5a2   :  { %v4285_v54 = vpop.f32.mrb[91].mxu1 }
 0x5a3   :  { %v2013_v16 = vadd.f32 %v2007_v60, %v5868_v26  ;;  %v2253_v58 = vadd.f32 %v4283_v50, %v6524_v43  ;;  %v4286_v3 = vadd.f32 %v4285_v54, %v4284_v30 }
 0x5a5   :  { %v3949_v10 = vpack.c.bf16 %v2013_v16, %v2012_v63  ;;  %v2301_v12 = vmul.f32 0.01, %v2253_v58  ;;  %v2256_v18 = vadd.f32 %v4286_v3, %v6524_v43  ;;  %vm2291_vm15 = vcmp.ge.f32.partialorder %v2253_v58, 0.0 }
 0x5a7   :  { %3977 = vst [vmem:[%s7275_s22 + $0x10] sm:$0xff] %v3949_v10   ;;  %vm2292_vm1 = vcmp.ge.f32.partialorder %v2256_v18, 0.0  ;;  %v2302_v62 = vmul.f32 0.01, %v2256_v18  ;;  %v4287_v33 = vpop.f32.mrb[92].mxu1  ;;  %v2311_v20 = vsel %vm2291_vm15, %v2253_v58, %v2301_v12 }
 0x5a8   :  { %v4288_v34 = vpop.f32.mrb[93].mxu1 }
 0x5a9   :  { %v2312_v13 = vsel %vm2292_vm1, %v2256_v18, %v2302_v62  ;;  %v4289_v61 = vadd.f32 %v4288_v34, %v4287_v33  ;;  %v4290_v26 = vpop.f32.mrb[94].mxu1 }
 0x5aa   :  { %v2321_v57 = vpack.c.bf16 %v2312_v13, %v2311_v20  ;;  %v4291_v15 = vpop.f32.mrb[95].mxu1 }
 0x5ab   :  { %v2261_v4 = vadd.f32 %v4289_v61, %v6524_v43  ;;  %v4292_v5 = vadd.f32 %v4291_v15, %v4290_v26  ;;  %v2673_v61 = vsub.f32 %v6089_v29, %v6249_v9 }
 0x5ac   :  { %2509 = vmatmul.mubr.bf16.vlgmr.msra.gmra.mrb[80].mxu0 %v2321_v57 }
 0x5ad   :  { %v2303_v49 = vmul.f32 0.01, %v2261_v4  ;;  %v2264_v24 = vadd.f32 %v4292_v5, %v6524_v43  ;;  %4371 = vmatpush3.bf16.msra.mxu0 %v6136_v42  ;;  %2516 = vmatprep.mubr.bf16.mxu0 %v6299_v36  ;;  %vm2293_vm2 = vcmp.ge.f32.partialorder %v2261_v4, 0.0 }
 0x5ae   :  { %4372 = vmatprep.subr.bf16.mxu0 %v6141_v22 }
 0x5af   :  { %vm2294_vm3 = vcmp.ge.f32.partialorder %v2264_v24, 0.0  ;;  %v2304_v56 = vmul.f32 0.01, %v2264_v24  ;;  %v4293_v40 = vpop.f32.mrb[96].mxu1  ;;  %v2313_v47 = vsel %vm2293_vm2, %v2261_v4, %v2303_v49 }
 0x5b0   :  { %v4294_v41 = vpop.f32.mrb[97].mxu1 }
 0x5b1   :  { %v4295_v46 = vadd.f32 %v4294_v41, %v4293_v40  ;;  %v4296_v53 = vpop.f32.mrb[98].mxu1  ;;  %4373 = vmatpush3.bf16.msra.mxu0 %v6152_v6  ;;  %v2314_v23 = vsel %vm2294_vm3, %v2264_v24, %v2304_v56  ;;  %v2674_v56 = vsub.f32 %v6174_v27, %v6276_v35  ;;  %v7393_v40 = vld [vmem:[#allocation10_spill] sm:$0xff]  ;;  %v7394_v41 = vld [vmem:[#allocation4_spill] sm:$0xff] }
 0x5b2   :  { %v4297_v0 = vpop.f32.mrb[99].mxu1  ;;  %v2322_v17 = vpack.c.bf16 %v2314_v23, %v2313_v47  ;;  %4374 = vmatprep.subr.bf16.mxu0 %v6158_v25 }
 0x5b3   :  { %v2269_v42 = vadd.f32 %v4295_v46, %v6524_v43  ;;  %v4298_v44 = vadd.f32 %v4297_v0, %v4296_v53  ;;  %v2675_v46 = vsub.f32 %v7394_v41, %v7393_v40  ;;  %v7395_v0 = vld [vmem:[#allocation3_spill] sm:$0xff] }
 0x5b4   :  { %2517 = vmatmul.mubr.bf16.gmra.mrb[84].mxu0 %v2322_v17  ;;  %v7396_v17 = vld [vmem:[#allocation7_spill] sm:$0xff] }
 0x5b5   :  { %v2305_v7 = vmul.f32 0.01, %v2269_v42  ;;  %v2272_v22 = vadd.f32 %v4298_v44, %v6524_v43  ;;  %2524 = vmatprep.mubr.bf16.mxu0 %v6326_v1  ;;  %4375 = vmatpush3.bf16.msra.mxu0 %v6164_v14  ;;  %vm2295_vm4 = vcmp.ge.f32.partialorder %v2269_v42, 0.0  ;;  %v7397_v44 = vld [vmem:[#allocation13_spill] sm:$0xff] }
 0x5b6   :  { %4376 = vmatprep.subr.bf16.mxu0 %v6170_v8 }
 0x5b7   :  { %vm2296_vm5 = vcmp.ge.f32.partialorder %v2272_v22, 0.0  ;;  %v2306_v6 = vmul.f32 0.01, %v2272_v22  ;;  %v4299_v32 = vpop.f32.mrb[100].mxu1  ;;  %v2315_v60 = vsel %vm2295_vm4, %v2269_v42, %v2305_v7  ;;  %v2676_v7 = vsub.f32 %v6247_v59, %v7397_v44 }
 0x5b8   :  { %v4300_v45 = vpop.f32.mrb[101].mxu1 }
 0x5b9   :  { %v4301_v48 = vadd.f32 %v4300_v45, %v4299_v32  ;;  %v4302_v25 = vpop.f32.mrb[102].mxu1  ;;  %4377 = vmatpush3.bf16.msra.mxu0 %v6184_v11  ;;  %v2316_v50 = vsel %vm2296_vm5, %v2272_v22, %v2306_v6  ;;  %v7398_v22 = vld [vmem:[#allocation14_spill] sm:$0xff] }
 0x5ba   :  { %v4303_v30 = vpop.f32.mrb[103].mxu1  ;;  %v2323_v54 = vpack.c.bf16 %v2316_v50, %v2315_v60  ;;  %4378 = vmatprep.subr.bf16.mxu0 %v6190_v37  ;;  %v2677_v6 = vsub.f32 %v6249_v9, %v7398_v22  ;;  %v7400_v50 = vld [vmem:[#allocation11_spill] sm:$0xff] }
 0x5bb   :  { %v2277_v63 = vadd.f32 %v4301_v48, %v6524_v43  ;;  %v4304_v14 = vadd.f32 %v4303_v30, %v4302_v25  ;;  %v7399_v48 = vld [vmem:[#allocation8_spill] sm:$0xff] }
 0x5bc   :  { %2525 = vmatmul.mubr.bf16.gmra.mrb[88].mxu0 %v2323_v54  ;;  %v2684_v60 = vpack.c.bf16 %v2677_v6, %v2676_v7  ;;  %v2678_v54 = vsub.f32 %v6276_v35, %v6087_v31  ;;  %v7421_v7 = vld [vmem:[#allocation34_spill] sm:$0xff] }
 0x5bd   :  { %v2307_v16 = vmul.f32 0.01, %v2277_v63  ;;  %v2280_v8 = vadd.f32 %v4304_v14, %v6524_v43  ;;  %2532 = vmatprep.mubr.bf16.mxu0 %v6349_v28  ;;  %4379 = vmatpush3.bf16.msra.mxu0 %v6200_v39  ;;  %vm2297_vm6 = vcmp.ge.f32.partialorder %v2277_v63, 0.0  ;;  %v5158_v6 = vld [vmem:[%s7272_s18 + $0x40] sm:$0xff]  }
 0x5be   :  { %4380 = vmatprep.subr.bf16.mxu0 %v6206_v52 }
 0x5bf   :  { %vm2298_vm7 = vcmp.ge.f32.partialorder %v2280_v8, 0.0  ;;  %v2308_v11 = vmul.f32 0.01, %v2280_v8  ;;  %v4305_v58 = vpop.f32.mrb[104].mxu1  ;;  %v2317_v12 = vsel %vm2297_vm6, %v2277_v63, %v2307_v16  ;;  %v2679_v63 = vsub.f32 %v7393_v40, %v6089_v29 }
 0x5c0   :  { %v4306_v3 = vpop.f32.mrb[105].mxu1 }
 0x5c1   :  { %v4307_v10 = vadd.f32 %v4306_v3, %v4305_v58  ;;  %v4308_v37 = vpop.f32.mrb[106].mxu1  ;;  %v2318_v18 = vsel %vm2298_vm7, %v2280_v8, %v2308_v11  ;;  %4381 = vmatpush3.bf16.msra.mxu0 %v6215_v55  ;;  %v7401_v8 = vld [vmem:[#allocation12_spill] sm:$0xff]  ;;  %v2685_v58 = vpack.c.bf16 %v2679_v63, %v2678_v54  ;;  %v7402_v3 = vld [vmem:[#allocation15_spill] sm:$0xff] }
 0x5c2   :  { %v4309_v62 = vpop.f32.mrb[107].mxu1  ;;  %v2324_v33 = vpack.c.bf16 %v2318_v18, %v2317_v12  ;;  %4382 = vmatprep.subr.bf16.mxu0 %v6223_v2  ;;  %v2672_v2 = vsub.f32 %v6087_v31, %v6247_v59  ;;  %v2681_v12 = vsub.f32 %v7398_v22, %v7394_v41 }
 0x5c3   :  { %v2285_v34 = vadd.f32 %v4307_v10, %v6524_v43  ;;  %v4310_v39 = vadd.f32 %v4309_v62, %v4308_v37  ;;  %v2680_v37 = vsub.f32 %v7397_v44, %v6174_v27 }
 0x5c4   :  { %2533 = vmatmul.mubr.bf16.gmra.mrb[92].mxu0 %v2324_v33  ;;  %v2682_v49 = vpack.c.bf16 %v2673_v61, %v2672_v2  ;;  %v7403_v33 = vld [vmem:[#allocation16_spill] sm:$0xff]  ;;  %v7408_v61 = vld [vmem:[#allocation21_spill] sm:$0xff] }
 0x5c5   :  { %v2309_v20 = vmul.f32 0.01, %v2285_v34  ;;  %v2288_v52 = vadd.f32 %v4310_v39, %v6524_v43  ;;  %2540 = vmatprep.mubr.bf16.mxu0 %v6363_v21  ;;  %4383 = vmatpush3.bf16.msra.mxu0 %v6233_v19  ;;  %vm2299_vm8 = vcmp.ge.f32.partialorder %v2285_v34, 0.0  ;;  %v2686_v39 = vpack.c.bf16 %v2681_v12, %v2680_v37  ;;  %v7407_v2 = vld [vmem:[#allocation20_spill] sm:$0xff] }
 0x5c6   :  { %4384 = vmatprep.subr.bf16.mxu0 %v6239_v51  ;;  %v7392_v51 = vmov 0.0  }
 0x5c7   :  { %vm2300_vm9 = vcmp.ge.f32.partialorder %v2288_v52, 0.0  ;;  %v2310_v55 = vmul.f32 0.01, %v2288_v52  ;;  %v6559_v13 = vpop.f32.mrb[108].mxu1  ;;  %v2319_v15 = vsel %vm2299_vm8, %v2285_v34, %v2309_v20  ;;  %v7404_v20 = vld [vmem:[#allocation17_spill] sm:$0xff] }
 0x5c8   :  { %v4881_v26 = vpop.f32.mrb[109].mxu1 }
 0x5c9   :  { %v6565_v57 = vpop.f32.mrb[110].mxu1  ;;  %v2320_v4 = vsel %vm2300_vm9, %v2288_v52, %v2310_v55  ;;  %4385 = vmatpush3.bf16.msra.mxu0 %v6245_v38  ;;  %v2683_v38 = vpack.c.bf16 %v2675_v46, %v2674_v56  ;;  %v7405_v52 = vld [vmem:[#allocation18_spill] sm:$0xff]  ;;  %v7406_v55 = vld [vmem:[#allocation19_spill] sm:$0xff]  ;;  %v7415_v56 = vld [vmem:[#allocation28_spill] sm:$0xff] }
 0x5ca   :  { %v4882_v19 = vpop.f32.mrb[111].mxu1  ;;  %v2325_v5 = vpack.c.bf16 %v2320_v4, %v2319_v15  ;;  %4899 = vmatprep.subr.bf16.mxu0 %v7392_v51  ;;  %v7409_v26 = vld [vmem:[#allocation22_spill] sm:$0xff]  ;;  %v7410_v15 = vld [vmem:[#allocation23_spill] sm:$0xff]  ;;  %v7411_v4 = vld [vmem:[#allocation24_spill] sm:$0xff] }
 0x5cb   :  { %v7412_v19 = vld [vmem:[#allocation25_spill] sm:$0xff] }
 0x5cc   :  { %2541 = vmatmul.mubr.bf16.gmra.mrb[96].mxu0 %v2325_v5  ;;  %v7413_v5 = vld [vmem:[#allocation26_spill] sm:$0xff]  ;;  %v7416_v46 = vld [vmem:[#allocation29_spill] sm:$0xff] }
 0x5cd   :  { %2719 = vmatprep.mubr.bf16.mxu0 %v2682_v49 }
 0x5cf   :  { %v6569_v24 = vpop.f32.mrb[112].mxu1 }
 0x5d0   :  { %v4885_v53 = vpop.f32.mrb[113].mxu1 }
 0x5d1   :  { %v6575_v47 = vpop.f32.mrb[114].mxu1  ;;  %v7417_v53 = vld [vmem:[#allocation30_spill] sm:$0xff] }
 0x5d2   :  { %v4886_v23 = vpop.f32.mrb[115].mxu1 }
 0x5d3   :  { %v7418_v23 = vld [vmem:[#allocation31_spill] sm:$0xff] }
 0x5d4   :  { %2720 = vmatmul.mubr.bf16.vlgmr.msra.gmra.mrb[100].mxu0 %v7395_v0 }
 0x5d5   :  { %2727 = vmatprep.mubr.bf16.mxu0 %v2683_v38  ;;  %4900 = vmatpush3.bf16.msra.mxu0 %v7396_v17  ;;  %v7420_v17 = vld [vmem:[#allocation33_spill] sm:$0xff] }
 0x5d6   :  { %4901 = vmatprep.subr.bf16.mxu0 %v7392_v51 }
 0x5d7   :  { %v6580_v42 = vpop.f32.mrb[116].mxu1 }
 0x5d8   :  { %v4889_v32 = vpop.f32.mrb[117].mxu1 }
 0x5d9   :  { %v6586_v45 = vpop.f32.mrb[118].mxu1  ;;  %4902 = vmatpush3.bf16.msra.mxu0 %v7399_v48  ;;  %v6654_v48 = vld [vmem:[%s7277_s21] ss:$0 sm:$0xff] }
 0x5da   :  { %v4890_v25 = vpop.f32.mrb[119].mxu1  ;;  %4903 = vmatprep.subr.bf16.mxu0 %v7392_v51 }
 0x5dc   :  { %2728 = vmatmul.mubr.bf16.gmra.mrb[104].mxu0 %v6299_v36 }
 0x5dd   :  { %2735 = vmatprep.mubr.bf16.mxu0 %v2684_v60  ;;  %4904 = vmatpush3.bf16.msra.mxu0 %v7400_v50 }
 0x5de   :  { %4905 = vmatprep.subr.bf16.mxu0 %v7392_v51 }
 0x5df   :  { %v6593_v30 = vpop.f32.mrb[120].mxu1 }
 0x5e0   :  { %v4893_v14 = vpop.f32.mrb[121].mxu1 }
 0x5e1   :  { %v6599_v16 = vpop.f32.mrb[122].mxu1  ;;  %4906 = vmatpush3.bf16.msra.mxu0 %v7401_v8 }
 0x5e2   :  { %v4894_v11 = vpop.f32.mrb[123].mxu1  ;;  %4907 = vmatprep.subr.bf16.mxu0 %v7392_v51 }
 0x5e4   :  { %2736 = vmatmul.mubr.bf16.gmra.mrb[108].mxu0 %v6326_v1 }
 0x5e5   :  { %2743 = vmatprep.mubr.bf16.mxu0 %v2685_v58  ;;  %4908 = vmatpush3.bf16.msra.mxu0 %v7402_v3 }
 0x5e6   :  { %4909 = vmatprep.subr.bf16.mxu0 %v7392_v51 }
 0x5e7   :  { %v6606_v10 = vpop.f32.mrb[124].mxu1 }
 0x5e8   :  { %v4897_v18 = vpop.f32.mrb[125].mxu1 }
 0x5e9   :  { %v6612_v62 = vpop.f32.mrb[126].mxu1  ;;  %4910 = vmatpush3.bf16.msra.mxu0 %v7403_v33 }
 0x5ea   :  { %v4898_v34 = vpop.f32.mrb[127].mxu1  ;;  %4911 = vmatprep.subr.bf16.mxu0 %v7392_v51 }
 0x5ec   :  { %2744 = vmatmul.mubr.bf16.gmra.mrb[112].mxu0 %v6349_v28 }
 0x5ed   :  { %2751 = vmatprep.mubr.bf16.mxu0 %v2686_v39  ;;  %4912 = vmatpush3.bf16.msra.mxu0 %v7404_v20 }
 0x5ee   :  { %4913 = vmatprep.subr.bf16.mxu0 %v7392_v51 }
 0x5f1   :  { %4914 = vmatpush3.bf16.msra.mxu0 %v7405_v52 }
 0x5f2   :  { %4521 = vmatprep.subr.bf16.mxu0 %v7406_v55 }
 0x5f4   :  { %2752 = vmatmul.mubr.bf16.gmra.mrb[116].mxu0 %v6363_v21 }
 0x5f5   :  { %4915 = vmatprep.mubr.msk.bf16.mxu0 %vm5201_vm0, %v7392_v51 }
 0x5fc   :  { %4916 = vmatmul.mubr.bf16.vlgmr.msra.gmra.mrb[120].mxu0 %v2682_v49  ;;  %v7414_v49 = vld [vmem:[#allocation27_spill] sm:$0xff] }
 0x5fd   :  { %4919 = vmatprep.mubr.msk.bf16.mxu0 %vm5201_vm0, %v7392_v51  ;;  %4522 = vmatpush3.bf16.msra.mxu0 %v7407_v2 }
 0x5fe   :  { %4523 = vmatprep.subr.bf16.mxu0 %v7408_v61 }
 0x601   :  { %4524 = vmatpush3.bf16.msra.mxu0 %v7409_v26 }
 0x602   :  { %4525 = vmatprep.subr.bf16.mxu0 %v7410_v15 }
 0x604   :  { %4920 = vmatmul.mubr.bf16.gmra.mrb[124].mxu0 %v2683_v38  ;;  %v7419_v38 = vld [vmem:[#allocation32_spill] sm:$0xff] }
 0x605   :  { %4923 = vmatprep.mubr.msk.bf16.mxu0 %vm5201_vm0, %v7392_v51  ;;  %4526 = vmatpush3.bf16.msra.mxu0 %v7411_v4 }
 0x606   :  { %4527 = vmatprep.subr.bf16.mxu0 %v7412_v19 }
 0x609   :  { %4528 = vmatpush3.bf16.msra.mxu0 %v7413_v5 }
 0x60a   :  { %4529 = vmatprep.subr.bf16.mxu0 %v7414_v49 }
 0x60c   :  { %4924 = vmatmul.mubr.bf16.gmra.mrb[128].mxu0 %v2684_v60 }
 0x60d   :  { %4927 = vmatprep.mubr.msk.bf16.mxu0 %vm5201_vm0, %v7392_v51  ;;  %4530 = vmatpush3.bf16.msra.mxu0 %v7415_v56 }
 0x60e   :  { %4531 = vmatprep.subr.bf16.mxu0 %v7416_v46 }
 0x611   :  { %4532 = vmatpush3.bf16.msra.mxu0 %v7417_v53 }
 0x612   :  { %4533 = vmatprep.subr.bf16.mxu0 %v7418_v23 }
 0x614   :  { %4928 = vmatmul.mubr.bf16.gmra.mrb[132].mxu0 %v2685_v58 }
 0x615   :  { %4931 = vmatprep.mubr.msk.bf16.mxu0 %vm5201_vm0, %v7392_v51  ;;  %4534 = vmatpush3.bf16.msra.mxu0 %v7419_v38 }
 0x616   :  { %4535 = vmatprep.subr.bf16.mxu0 %v7420_v17 }
 0x619   :  { %4536 = vmatpush3.bf16.msra.mxu0 %v7421_v7 }
 0x61a   :  { %4580 = vmatprep.subr.bf16.mxu0 %v5158_v6 }
 0x61c   :  { %4932 = vmatmul.mubr.bf16.gmra.mrb[136].mxu0 %v2686_v39 }
 0x61d   :  { %3146 = vmatprep.mubr.bf16.mxu0 %v7395_v0 }
 0x67f   :  { %v4327_v32 = vpop.f32.mrb[80].mxu0 }
 0x680   :  { %v4328_v25 = vpop.f32.mrb[81].mxu0 }
 0x681   :  { %v4329_v60 = vadd.f32 %v4328_v25, %v4327_v32  ;;  %v4330_v50 = vpop.f32.mrb[82].mxu0 }
 0x682   :  { %v4331_v54 = vpop.f32.mrb[83].mxu0 }
 0x683   :  { %v2511_v63 = vadd.f32 %v4329_v60, %v6654_v48  ;;  %v4332_v14 = vadd.f32 %v4331_v54, %v4330_v50 }
 0x685   :  { %v6658_v8 = vadd.f32 %v6559_v13, %v2511_v63  ;;  %v2514_v11 = vadd.f32 %v4332_v14, %v6654_v48 }
 0x687   :  { %v6662_v58 = vadd.f32 %v6565_v57, %v2514_v11  ;;  %v4333_v3 = vpop.f32.mrb[84].mxu0 }
 0x688   :  { %v4334_v37 = vpop.f32.mrb[85].mxu0 }
 0x689   :  { %v4335_v12 = vadd.f32 %v4334_v37, %v4333_v3  ;;  %v4336_v18 = vpop.f32.mrb[86].mxu0 }
 0x68a   :  { %v4337_v33 = vpop.f32.mrb[87].mxu0 }
 0x68b   :  { %v2519_v34 = vadd.f32 %v4335_v12, %v6654_v48  ;;  %v4338_v39 = vadd.f32 %v4337_v33, %v4336_v18 }
 0x68d   :  { %v6666_v20 = vadd.f32 %v6569_v24, %v2519_v34  ;;  %v2522_v52 = vadd.f32 %v4338_v39, %v6654_v48 }
 0x68f   :  { %v4339_v13 = vpop.f32.mrb[88].mxu0  ;;  %v6670_v55 = vadd.f32 %v6575_v47, %v2522_v52 }
 0x690   :  { %v4340_v2 = vpop.f32.mrb[89].mxu0 }
 0x691   :  { %v4341_v57 = vadd.f32 %v4340_v2, %v4339_v13  ;;  %v4342_v61 = vpop.f32.mrb[90].mxu0 }
 0x692   :  { %v4343_v26 = vpop.f32.mrb[91].mxu0 }
 0x693   :  { %v2527_v15 = vadd.f32 %v4341_v57, %v6654_v48  ;;  %v4344_v4 = vadd.f32 %v4343_v26, %v4342_v61 }
 0x695   :  { %v6674_v19 = vadd.f32 %v6580_v42, %v2527_v15  ;;  %v2530_v5 = vadd.f32 %v4344_v4, %v6654_v48 }
 0x697   :  { %v6678_v24 = vadd.f32 %v6586_v45, %v2530_v5  ;;  %v4345_v49 = vpop.f32.mrb[92].mxu0 }
 0x698   :  { %v4346_v56 = vpop.f32.mrb[93].mxu0 }
 0x699   :  { %v4347_v46 = vadd.f32 %v4346_v56, %v4345_v49  ;;  %v4348_v47 = vpop.f32.mrb[94].mxu0 }
 0x69a   :  { %v4349_v53 = vpop.f32.mrb[95].mxu0 }
 0x69b   :  { %v2535_v23 = vadd.f32 %v4347_v46, %v6654_v48  ;;  %v4350_v38 = vadd.f32 %v4349_v53, %v4348_v47  ;;  %v6703_v46 = vld [vmem:[%s7272_s18] sm:$0xff]  }
 0x69d   :  { %v6682_v17 = vadd.f32 %v6593_v30, %v2535_v23  ;;  %v2538_v7 = vadd.f32 %v4350_v38, %v6654_v48  ;;  %v6710_v23 = vld [vmem:[%s7272_s18 + $0x48] sm:$0xff]  }
 0x69f   :  { %v4351_v42 = vpop.f32.mrb[96].mxu0  ;;  %v6686_v6 = vadd.f32 %v6599_v16, %v2538_v7 }
 0x6a0   :  { %v4352_v32 = vpop.f32.mrb[97].mxu0 }
 0x6a1   :  { %v4353_v45 = vadd.f32 %v4352_v32, %v4351_v42  ;;  %v4354_v25 = vpop.f32.mrb[98].mxu0 }
 0x6a2   :  { %v4355_v60 = vpop.f32.mrb[99].mxu0 }
 0x6a3   :  { %v2543_v50 = vadd.f32 %v4353_v45, %v6654_v48  ;;  %v4356_v54 = vadd.f32 %v4355_v60, %v4354_v25  ;;  %v6716_v25 = vld [vmem:[%s7272_s18 + $0x8] sm:$0xff]  }
 0x6a5   :  { %v6690_v63 = vadd.f32 %v6606_v10, %v2543_v50  ;;  %v2546_v14 = vadd.f32 %v4356_v54, %v6654_v48 }
 0x6a7   :  { %v6694_v30 = vadd.f32 %v6612_v62, %v2546_v14  ;;  %v4386_v11 = vpop.f32.mrb[100].mxu0 }
 0x6a8   :  { %v4387_v3 = vpop.f32.mrb[101].mxu0 }
 0x6a9   :  { %v4388_v37 = vadd.f32 %v4387_v3, %v4386_v11  ;;  %v4389_v16 = vpop.f32.mrb[102].mxu0  ;;  %v6723_v11 = vld [vmem:[%s7272_s18 + $0x50] sm:$0xff]  }
 0x6aa   :  { %v4390_v12 = vpop.f32.mrb[103].mxu0 }
 0x6ab   :  { %v2722_v18 = vadd.f32 %v4388_v37, %v6524_v43  ;;  %v4391_v33 = vadd.f32 %v4390_v12, %v4389_v16  ;;  %v6731_v16 = vld [vmem:[%s7272_s18 + $0x10] sm:$0xff]  }
 0x6ad   :  { %v2770_v34 = vmul.f32 0.01, %v2722_v18  ;;  %v2725_v39 = vadd.f32 %v4391_v33, %v6524_v43  ;;  %vm2760_vm10 = vcmp.ge.f32.partialorder %v2722_v18, 0.0  ;;  %v6737_v33 = vld [vmem:[%s7272_s18 + $0x58] sm:$0xff]  }
 0x6af   :  { %v4392_v52 = vpop.f32.mrb[104].mxu0  ;;  %vm2761_vm11 = vcmp.ge.f32.partialorder %v2725_v39, 0.0  ;;  %v2771_v10 = vmul.f32 0.01, %v2725_v39  ;;  %v2780_v62 = vsel %vm2760_vm10, %v2722_v18, %v2770_v34 }
 0x6b0   :  { %v4393_v13 = vpop.f32.mrb[105].mxu0 }
 0x6b1   :  { %v4394_v2 = vadd.f32 %v4393_v13, %v4392_v52  ;;  %v4395_v57 = vpop.f32.mrb[106].mxu0  ;;  %v2781_v61 = vsel %vm2761_vm11, %v2725_v39, %v2771_v10 }
 0x6b2   :  { %v4396_v26 = vpop.f32.mrb[107].mxu0  ;;  %v2790_v15 = vpack.c.bf16 %v2781_v61, %v2780_v62 }
 0x6b3   :  { %v2730_v4 = vadd.f32 %v4394_v2, %v6524_v43  ;;  %v4397_v5 = vadd.f32 %v4396_v26, %v4395_v57  ;;  %v6743_v57 = vld [vmem:[%s7272_s18 + $0x18] sm:$0xff]  }
 0x6b4   :  { %2828 = vmatmul.mubr.bf16.vlgmr.msra.gmra.mrb[128].mxu1 %v2790_v15  ;;  %v6750_v15 = vld [vmem:[%s7272_s18 + $0x60] sm:$0xff]  }
 0x6b5   :  { %v2772_v49 = vmul.f32 0.01, %v2730_v4  ;;  %v2733_v56 = vadd.f32 %v4397_v5, %v6524_v43  ;;  %vm2762_vm12 = vcmp.ge.f32.partialorder %v2730_v4, 0.0  ;;  %4476 = vmatpush3.bf16.msra.mxu1 %v6703_v46  ;;  %2835 = vmatprep.mubr.bf16.mxu1 %v6299_v36 }
 0x6b6   :  { %4477 = vmatprep.subr.bf16.mxu1 %v6710_v23 }
 0x6b7   :  { %vm2763_vm13 = vcmp.ge.f32.partialorder %v2733_v56, 0.0  ;;  %v2773_v47 = vmul.f32 0.01, %v2733_v56  ;;  %v4398_v53 = vpop.f32.mrb[108].mxu0  ;;  %v2782_v32 = vsel %vm2762_vm12, %v2730_v4, %v2772_v49  ;;  %v6758_v49 = vld [vmem:[%s7272_s18 + $0x20] sm:$0xff]  }
 0x6b8   :  { %v4399_v38 = vpop.f32.mrb[109].mxu0 }
 0x6b9   :  { %v4400_v7 = vadd.f32 %v4399_v38, %v4398_v53  ;;  %v4401_v42 = vpop.f32.mrb[110].mxu0  ;;  %v2783_v45 = vsel %vm2763_vm13, %v2733_v56, %v2773_v47  ;;  %4478 = vmatpush3.bf16.msra.mxu1 %v6716_v25  ;;  %v6764_v53 = vld [vmem:[%s7272_s18 + $0x68] sm:$0xff]  }
 0x6ba   :  { %v4402_v60 = vpop.f32.mrb[111].mxu0  ;;  %v2791_v50 = vpack.c.bf16 %v2783_v45, %v2782_v32  ;;  %4479 = vmatprep.subr.bf16.mxu1 %v6723_v11 }
 0x6bb   :  { %v2738_v54 = vadd.f32 %v4400_v7, %v6524_v43  ;;  %v4403_v14 = vadd.f32 %v4402_v60, %v4401_v42 }
 0x6bc   :  { %2836 = vmatmul.mubr.bf16.gmra.mrb[132].mxu1 %v2791_v50 }
 0x6bd   :  { %v2774_v3 = vmul.f32 0.01, %v2738_v54  ;;  %v2741_v37 = vadd.f32 %v4403_v14, %v6524_v43  ;;  %vm2764_vm14 = vcmp.ge.f32.partialorder %v2738_v54, 0.0  ;;  %2843 = vmatprep.mubr.bf16.mxu1 %v6326_v1  ;;  %4480 = vmatpush3.bf16.msra.mxu1 %v6731_v16 }
 0x6be   :  { %4481 = vmatprep.subr.bf16.mxu1 %v6737_v33 }
 0x6bf   :  { %vm2765_vm15 = vcmp.ge.f32.partialorder %v2741_v37, 0.0  ;;  %v2775_v12 = vmul.f32 0.01, %v2741_v37  ;;  %v4404_v18 = vpop.f32.mrb[112].mxu0  ;;  %v2784_v10 = vsel %vm2764_vm14, %v2738_v54, %v2774_v3  ;;  %v6770_v54 = vld [vmem:[%s7272_s18 + $0x28] sm:$0xff]  }
 0x6c0   :  { %v4405_v34 = vpop.f32.mrb[113].mxu0 }
 0x6c1   :  { %v4406_v39 = vadd.f32 %v4405_v34, %v4404_v18  ;;  %v4407_v52 = vpop.f32.mrb[114].mxu0  ;;  %v2785_v13 = vsel %vm2765_vm15, %v2741_v37, %v2775_v12  ;;  %4482 = vmatpush3.bf16.msra.mxu1 %v6743_v57  ;;  %v6777_v37 = vld [vmem:[%s7272_s18 + $0x70] sm:$0xff]  }
 0x6c2   :  { %v4408_v2 = vpop.f32.mrb[115].mxu0  ;;  %v2792_v62 = vpack.c.bf16 %v2785_v13, %v2784_v10  ;;  %4483 = vmatprep.subr.bf16.mxu1 %v6750_v15  ;;  %v6785_v34 = vld [vmem:[%s7272_s18 + $0x30] sm:$0xff]   ;;  %v6793_v10 = vld [vmem:[%s7272_s18 + $0x78] sm:$0xff]   ;;  %v2991_v13 = vsub.f32 %v6087_v31, %v6276_v35 }
 0x6c3   :  { %v2746_v61 = vadd.f32 %v4406_v39, %v6524_v43  ;;  %v4409_v26 = vadd.f32 %v4408_v2, %v4407_v52  ;;  %v2992_v2 = vsub.f32 %v6089_v29, %v7393_v40 }
 0x6c4   :  { %2844 = vmatmul.mubr.bf16.gmra.mrb[136].mxu1 %v2792_v62 }
 0x6c5   :  { %v2776_v4 = vmul.f32 0.01, %v2746_v61  ;;  %v2749_v5 = vadd.f32 %v4409_v26, %v6524_v43  ;;  %vm2766_vm1 = vcmp.ge.f32.partialorder %v2746_v61, 0.0  ;;  %2851 = vmatprep.mubr.bf16.mxu1 %v6349_v28  ;;  %4484 = vmatpush3.bf16.msra.mxu1 %v6758_v49 }
 0x6c6   :  { %4485 = vmatprep.subr.bf16.mxu1 %v6764_v53 }
 0x6c7   :  { %vm2767_vm2 = vcmp.ge.f32.partialorder %v2749_v5, 0.0  ;;  %v2777_v56 = vmul.f32 0.01, %v2749_v5  ;;  %v4410_v47 = vpop.f32.mrb[116].mxu0  ;;  %v2786_v32 = vsel %vm2766_vm1, %v2746_v61, %v2776_v4 }
 0x6c8   :  { %v4411_v38 = vpop.f32.mrb[117].mxu0 }
 0x6c9   :  { %v4412_v7 = vadd.f32 %v4411_v38, %v4410_v47  ;;  %v4413_v42 = vpop.f32.mrb[118].mxu0  ;;  %v2787_v45 = vsel %vm2767_vm2, %v2749_v5, %v2777_v56  ;;  %4486 = vmatpush3.bf16.msra.mxu1 %v6770_v54  ;;  %v6805_v56 = vld [vmem:[%s7272_s18 + $0x38] sm:$0xff]   ;;  %v6809_v47 = vpack.c.bf16 %v2992_v2, %v2991_v13  ;;  %v6842_v2 = vld [vmem:[%s7273_s20 + $0x88] sm:$0xff]  }
 0x6ca   :  { %v4414_v60 = vpop.f32.mrb[119].mxu0  ;;  %v2793_v50 = vpack.c.bf16 %v2787_v45, %v2786_v32  ;;  %4487 = vmatprep.subr.bf16.mxu1 %v6777_v37  ;;  %v2994_v32 = vsub.f32 %v7394_v41, %v7398_v22  ;;  %7423 = vst [vmem:[#allocation13_spill] sm:$0xff] %v6842_v2 }
 0x6cb   :  { %v2754_v14 = vadd.f32 %v4412_v7, %v6524_v43  ;;  %v4415_v3 = vadd.f32 %v4414_v60, %v4413_v42  ;;  %v2993_v42 = vsub.f32 %v6174_v27, %v7397_v44 }
 0x6cc   :  { %2852 = vmatmul.mubr.bf16.gmra.mrb[140].mxu1 %v2793_v50 }
 0x6cd   :  { %v2778_v12 = vmul.f32 0.01, %v2754_v14  ;;  %v2757_v18 = vadd.f32 %v4415_v3, %v6524_v43  ;;  %vm2768_vm3 = vcmp.ge.f32.partialorder %v2754_v14, 0.0  ;;  %2859 = vmatprep.mubr.bf16.mxu1 %v6363_v21  ;;  %4488 = vmatpush3.bf16.msra.mxu1 %v6785_v34  ;;  %v6820_v50 = vpack.c.bf16 %v2994_v32, %v2993_v42 }
 0x6ce   :  { %4489 = vmatprep.subr.bf16.mxu1 %v6793_v10  ;;  %v2998_v42 = vsub.f32 %v7393_v40, %v7394_v41  ;;  %v6888_v40 = vld [vmem:[%s7273_s20 + $0xa8] sm:$0xff]   ;;  %v2625_v41 = vmul.f32 0.999995, %v6670_v55 }
 0x6cf   :  { %vm2769_vm4 = vcmp.ge.f32.partialorder %v2757_v18, 0.0  ;;  %v2779_v39 = vmul.f32 0.01, %v2757_v18  ;;  %v6788_v52 = vpop.f32.mrb[120].mxu0  ;;  %v2788_v61 = vsel %vm2768_vm3, %v2754_v14, %v2778_v12  ;;  %v6827_v14 = vld [vmem:[%s7273_s20 + $0x80] sm:$0xff]   ;;  %7427 = vst [vmem:[#allocation12_spill] sm:$0xff] %v6888_v40 }
 0x6d0   :  { %v4917_v43 = vpop.f32.mrb[121].mxu0  ;;  %7422 = vst [vmem:[#allocation7_spill] sm:$0xff] %v6827_v14  ;;  %vm2635_vm11 = vcmp.ge.f32.partialorder %v2625_v41, 0.0 }
 0x6d1   :  { %v6800_v62 = vpop.f32.mrb[122].mxu0  ;;  %v2789_v26 = vsel %vm2769_vm4, %v2757_v18, %v2779_v39  ;;  %4490 = vmatpush3.bf16.msra.mxu1 %v6805_v56  ;;  %v2995_v18 = vsub.f32 %v6247_v59, %v6087_v31  ;;  %v2996_v39 = vsub.f32 %v6249_v9, %v6089_v29 }
 0x6d2   :  { %v4918_v4 = vpop.f32.mrb[123].mxu0  ;;  %v2794_v5 = vpack.c.bf16 %v2789_v26, %v2788_v61  ;;  %4935 = vmatprep.subr.bf16.mxu1 %v7392_v51  ;;  %v6850_v26 = vld [vmem:[%s7273_s20 + $0x90] sm:$0xff]  }
 0x6d3   :  { %v3003_v61 = vpack.c.bf16 %v2996_v39, %v2995_v18  ;;  %7424 = vst [vmem:[#allocation14_spill] sm:$0xff] %v6850_v26  ;;  %v6873_v39 = vld [vmem:[%s7273_s20 + $0xa0] sm:$0xff]  }
 0x6d4   :  { %2860 = vmatmul.mubr.bf16.gmra.mrb[144].mxu1 %v2794_v5  ;;  %7426 = vst [vmem:[#allocation11_spill] sm:$0xff] %v6873_v39 }
 0x6d5   :  { %3038 = vmatprep.mubr.bf16.mxu1 %v6809_v47 }
 0x6d7   :  { %v6812_v38 = vpop.f32.mrb[124].mxu0 }
 0x6d8   :  { %v4921_v7 = vpop.f32.mrb[125].mxu0 }
 0x6d9   :  { %v6818_v45 = vpop.f32.mrb[126].mxu0  ;;  %v2997_v7 = vsub.f32 %v6276_v35, %v6174_v27 }
 0x6da   :  { %v4922_v60 = vpop.f32.mrb[127].mxu0 }
 0x6db   :  { %v3004_v18 = vpack.c.bf16 %v2998_v42, %v2997_v7  ;;  %v3000_v7 = vsub.f32 %v7398_v22, %v6249_v9 }
 0x6dc   :  { %3039 = vmatmul.mubr.bf16.vlgmr.msra.gmra.mrb[148].mxu1 %v7395_v0 }
 0x6dd   :  { %3046 = vmatprep.mubr.bf16.mxu1 %v6820_v50  ;;  %4936 = vmatpush3.bf16.msra.mxu1 %v6827_v14 }
 0x6de   :  { %4937 = vmatprep.subr.bf16.mxu1 %v7392_v51 }
 0x6df   :  { %v6830_v3 = vpop.f32.mrb[128].mxu0 }
 0x6e0   :  { %v4925_v12 = vpop.f32.mrb[129].mxu0 }
 0x6e1   :  { %v6837_v43 = vpop.f32.mrb[130].mxu0  ;;  %4938 = vmatpush3.bf16.msra.mxu1 %v6842_v2  ;;  %v6865_v12 = vld [vmem:[%s7273_s20 + $0x98] sm:$0xff]  }
 0x6e2   :  { %v4926_v13 = vpop.f32.mrb[131].mxu0  ;;  %4939 = vmatprep.subr.bf16.mxu1 %v7392_v51  ;;  %7425 = vst [vmem:[#allocation8_spill] sm:$0xff] %v6865_v12 }
 0x6e4   :  { %3047 = vmatmul.mubr.bf16.gmra.mrb[152].mxu1 %v6299_v36 }
 0x6e5   :  { %3054 = vmatprep.mubr.bf16.mxu1 %v3003_v61  ;;  %4940 = vmatpush3.bf16.msra.mxu1 %v6850_v26 }
 0x6e6   :  { %4941 = vmatprep.subr.bf16.mxu1 %v7392_v51 }
 0x6e7   :  { %v6853_v4 = vpop.f32.mrb[132].mxu0 }
 0x6e8   :  { %v4929_v5 = vpop.f32.mrb[133].mxu0 }
 0x6e9   :  { %v6860_v32 = vpop.f32.mrb[134].mxu0  ;;  %4942 = vmatpush3.bf16.msra.mxu1 %v6865_v12 }
 0x6ea   :  { %v4930_v60 = vpop.f32.mrb[135].mxu0  ;;  %4943 = vmatprep.subr.bf16.mxu1 %v7392_v51 }
 0x6eb   :  { %v2999_v60 = vsub.f32 %v7397_v44, %v6247_v59 }
 0x6ec   :  { %3055 = vmatmul.mubr.bf16.gmra.mrb[156].mxu1 %v6326_v1 }
 0x6ed   :  { %3062 = vmatprep.mubr.bf16.mxu1 %v3004_v18  ;;  %4944 = vmatpush3.bf16.msra.mxu1 %v6873_v39  ;;  %v3005_v39 = vpack.c.bf16 %v3000_v7, %v2999_v60  ;;  %v5182_v60 = vld [vmem:[%s7273_s20 + $0x40] sm:$0xff]  }
 0x6ee   :  { %4945 = vmatprep.subr.bf16.mxu1 %v7392_v51  ;;  %v5183_v7 = vld [vmem:[%s7273_s20] sm:$0xff]  }
 0x6ef   :  { %v6876_v13 = vpop.f32.mrb[136].mxu0 }
 0x6f0   :  { %v4933_v5 = vpop.f32.mrb[137].mxu0 }
 0x6f1   :  { %v6883_v42 = vpop.f32.mrb[138].mxu0  ;;  %4946 = vmatpush3.bf16.msra.mxu1 %v6888_v40  ;;  %v6896_v5 = vld [vmem:[%s7273_s20 + $0xb0] sm:$0xff]  }
 0x6f2   :  { %v4934_v12 = vpop.f32.mrb[139].mxu0  ;;  %4947 = vmatprep.subr.bf16.mxu1 %v7392_v51  ;;  %7428 = vst [vmem:[#allocation15_spill] sm:$0xff] %v6896_v5 }
 0x6f3   :  { %v6903_v12 = vld [vmem:[%s7273_s20 + $0xb8] sm:$0xff]  }
 0x6f4   :  { %3063 = vmatmul.mubr.bf16.gmra.mrb[160].mxu1 %v6349_v28  ;;  %7429 = vst [vmem:[#allocation16_spill] sm:$0xff] %v6903_v12 }
 0x6f5   :  { %3070 = vmatprep.mubr.bf16.mxu1 %v3005_v39  ;;  %4948 = vmatpush3.bf16.msra.mxu1 %v6896_v5  ;;  %v2622_v5 = vmul.f32 0.999995, %v6658_v8 }
 0x6f6   :  { %4949 = vmatprep.subr.bf16.mxu1 %v7392_v51 }
 0x6f7   :  { %vm2632_vm5 = vcmp.ge.f32.partialorder %v2622_v5, 0.0 }
 0x6f9   :  { %4950 = vmatpush3.bf16.msra.mxu1 %v6903_v12  ;;  %v5184_v12 = vld [vmem:[%s7273_s20 + $0x48] sm:$0xff]  }
 0x6fa   :  { %4626 = vmatprep.subr.bf16.mxu1 %v5182_v60  ;;  %v5185_v60 = vld [vmem:[%s7273_s20 + $0x8] sm:$0xff]  }
 0x6fc   :  { %3071 = vmatmul.mubr.bf16.gmra.mrb[164].mxu1 %v6363_v21 }
 0x6fd   :  { %4951 = vmatprep.mubr.msk.bf16.mxu1 %vm5201_vm0, %v7392_v51 }
 0x704   :  { %4952 = vmatmul.mubr.bf16.vlgmr.msra.gmra.mrb[168].mxu1 %v6809_v47  ;;  %v5186_v47 = vld [vmem:[%s7273_s20 + $0x50] sm:$0xff]  }
 0x705   :  { %4955 = vmatprep.mubr.msk.bf16.mxu1 %vm5201_vm0, %v7392_v51  ;;  %4627 = vmatpush3.bf16.msra.mxu1 %v5183_v7  ;;  %v5187_v7 = vld [vmem:[%s7273_s20 + $0x10] sm:$0xff]  }
 0x706   :  { %4628 = vmatprep.subr.bf16.mxu1 %v5184_v12  ;;  %v5188_v12 = vld [vmem:[%s7273_s20 + $0x58] sm:$0xff]  }
 0x709   :  { %4629 = vmatpush3.bf16.msra.mxu1 %v5185_v60  ;;  %v5189_v60 = vld [vmem:[%s7273_s20 + $0x18] sm:$0xff]  }
 0x70a   :  { %4630 = vmatprep.subr.bf16.mxu1 %v5186_v47  ;;  %v5191_v47 = vld [vmem:[%s7273_s20 + $0x20] sm:$0xff]  }
 0x70c   :  { %4956 = vmatmul.mubr.bf16.gmra.mrb[172].mxu1 %v6820_v50  ;;  %v5190_v50 = vld [vmem:[%s7273_s20 + $0x60] sm:$0xff]  }
 0x70d   :  { %4959 = vmatprep.mubr.msk.bf16.mxu1 %vm5201_vm0, %v7392_v51  ;;  %4631 = vmatpush3.bf16.msra.mxu1 %v5187_v7  ;;  %v5192_v7 = vld [vmem:[%s7273_s20 + $0x68] sm:$0xff]  }
 0x70e   :  { %4632 = vmatprep.subr.bf16.mxu1 %v5188_v12  ;;  %v5193_v12 = vld [vmem:[%s7273_s20 + $0x28] sm:$0xff]  }
 0x711   :  { %4633 = vmatpush3.bf16.msra.mxu1 %v5189_v60  ;;  %v5195_v60 = vld [vmem:[%s7273_s20 + $0x30] sm:$0xff]  }
 0x712   :  { %4634 = vmatprep.subr.bf16.mxu1 %v5190_v50  ;;  %v5196_v50 = vld [vmem:[%s7273_s20 + $0x78] sm:$0xff]  }
 0x714   :  { %4960 = vmatmul.mubr.bf16.gmra.mrb[176].mxu1 %v3003_v61  ;;  %v5194_v61 = vld [vmem:[%s7273_s20 + $0x70] sm:$0xff]  }
 0x715   :  { %4963 = vmatprep.mubr.msk.bf16.mxu1 %vm5201_vm0, %v7392_v51  ;;  %4635 = vmatpush3.bf16.msra.mxu1 %v5191_v47  ;;  %v5197_v47 = vld [vmem:[%s7273_s20 + $0x38] sm:$0xff]  }
 0x716   :  { %4636 = vmatprep.subr.bf16.mxu1 %v5192_v7 }
 0x719   :  { %4637 = vmatpush3.bf16.msra.mxu1 %v5193_v12 }
 0x71a   :  { %4638 = vmatprep.subr.bf16.mxu1 %v5194_v61 }
 0x71c   :  { %4964 = vmatmul.mubr.bf16.gmra.mrb[180].mxu1 %v3004_v18 }
 0x71d   :  { %4967 = vmatprep.mubr.msk.bf16.mxu1 %vm5201_vm0, %v7392_v51  ;;  %4639 = vmatpush3.bf16.msra.mxu1 %v5195_v60 }
 0x71e   :  { %4640 = vmatprep.subr.bf16.mxu1 %v5196_v50  ;;  %v2623_v50 = vmul.f32 0.999995, %v6662_v58  ;;  %v2624_v58 = vmul.f32 0.999995, %v6666_v20 }
 0x720   :  { %vm2633_vm7 = vcmp.ge.f32.partialorder %v2623_v50, 0.0  ;;  %vm2634_vm9 = vcmp.ge.f32.partialorder %v2624_v58, 0.0 }
 0x721   :  { %4641 = vmatpush3.bf16.msra.mxu1 %v5197_v47  ;;  %v2642_v47 = vmul.f32 0.01, %v2622_v5 }
 0x724   :  { %4968 = vmatmul.mubr.bf16.gmra.mrb[184].mxu1 %v3005_v39 }
 0x725   :  { %3465 = vmatprep.mubr.bf16.mxu1 %v7395_v0 }
 0x787   :  { %v4432_v18 = vpop.f32.mrb[128].mxu1 }
 0x788   :  { %v4433_v7 = vpop.f32.mrb[129].mxu1 }
 0x789   :  { %v4434_v12 = vadd.f32 %v4433_v7, %v4432_v18  ;;  %v4435_v61 = vpop.f32.mrb[130].mxu1  ;;  %v2643_v18 = vmul.f32 0.01, %v2623_v50 }
 0x78a   :  { %v4436_v60 = vpop.f32.mrb[131].mxu1 }
 0x78b   :  { %v2830_v40 = vadd.f32 %v4434_v12, %v6654_v48  ;;  %v4437_v35 = vadd.f32 %v4436_v60, %v4435_v61  ;;  %v2652_v61 = vsel %vm2632_vm5, %v2622_v5, %v2642_v47 }
 0x78d   :  { %v2903_v26 = vadd.f32 %v6788_v52, %v2830_v40  ;;  %v2833_v2 = vadd.f32 %v4437_v35, %v6654_v48 }
 0x78f   :  { %v2941_v39 = vmul.f32 0.999995, %v2903_v26  ;;  %v2906_v9 = vadd.f32 %v6800_v62, %v2833_v2  ;;  %v4438_v59 = vpop.f32.mrb[132].mxu1  ;;  %v2653_v2 = vsel %vm2633_vm7, %v2623_v50, %v2643_v18 }
 0x790   :  { %v4439_v7 = vpop.f32.mrb[133].mxu1 }
 0x791   :  { %vm2951_vm6 = vcmp.ge.f32.partialorder %v2941_v39, 0.0  ;;  %v2961_v8 = vmul.f32 0.01, %v2941_v39  ;;  %v2942_v14 = vmul.f32 0.999995, %v2906_v9  ;;  %v4440_v0 = vadd.f32 %v4439_v7, %v4438_v59  ;;  %v4441_v12 = vpop.f32.mrb[134].mxu1 }
 0x792   :  { %v4442_v40 = vpop.f32.mrb[135].mxu1  ;;  %v2644_v9 = vmul.f32 0.01, %v2624_v58 }
 0x793   :  { %v2971_v52 = vsel %vm2951_vm6, %v2941_v39, %v2961_v8  ;;  %vm2952_vm8 = vcmp.ge.f32.partialorder %v2942_v14, 0.0  ;;  %v2962_v35 = vmul.f32 0.01, %v2942_v14  ;;  %v2838_v26 = vadd.f32 %v4440_v0, %v6654_v48 }
 0x794   :  { %v6976_v60 = vadd.f32 %v2971_v52, %v2652_v61  ;;  %v4443_v62 = vadd.f32 %v4442_v40, %v4441_v12  ;;  %v2645_v8 = vmul.f32 0.01, %v2625_v41  ;;  %v2654_v55 = vsel %vm2634_vm9, %v2624_v58, %v2644_v9 }
 0x795   :  { %v2972_v27 = vsel %vm2952_vm8, %v2942_v14, %v2962_v35  ;;  %v2911_v59 = vadd.f32 %v6812_v38, %v2838_v26  ;;  %v2626_v14 = vmul.f32 0.999995, %v6674_v19  ;;  %v2627_v35 = vmul.f32 0.999995, %v6678_v24 }
 0x796   :  { %v6980_v5 = vadd.f32 %v2972_v27, %v2653_v2  ;;  %v2841_v20 = vadd.f32 %v4443_v62, %v6654_v48  ;;  %v2655_v58 = vsel %vm2635_vm11, %v2625_v41, %v2645_v8  ;;  %v2628_v41 = vmul.f32 0.999995, %v6682_v17 }
 0x797   :  { %v2943_v47 = vmul.f32 0.999995, %v2911_v59  ;;  %v4444_v39 = vpop.f32.mrb[136].mxu1  ;;  %v2646_v59 = vmul.f32 0.01, %v2626_v14  ;;  %vm2636_vm13 = vcmp.ge.f32.partialorder %v2626_v14, 0.0 }
 0x798   :  { %v2914_v7 = vadd.f32 %v6818_v45, %v2841_v20  ;;  %v4445_v0 = vpop.f32.mrb[137].mxu1  ;;  %vm2637_vm15 = vcmp.ge.f32.partialorder %v2627_v35, 0.0  ;;  %vm2638_vm2 = vcmp.ge.f32.partialorder %v2628_v41, 0.0 }
 0x799   :  { %vm2953_vm10 = vcmp.ge.f32.partialorder %v2943_v47, 0.0  ;;  %v2963_v12 = vmul.f32 0.01, %v2943_v47  ;;  %v4446_v50 = vadd.f32 %v4445_v0, %v4444_v39  ;;  %v4447_v18 = vpop.f32.mrb[138].mxu1 }
 0x79a   :  { %v2944_v38 = vmul.f32 0.999995, %v2914_v7  ;;  %v4448_v61 = vpop.f32.mrb[139].mxu1  ;;  %v2647_v7 = vmul.f32 0.01, %v2627_v35 }
 0x79b   :  { %v2973_v27 = vsel %vm2953_vm10, %v2943_v47, %v2963_v12  ;;  %v2846_v40 = vadd.f32 %v4446_v50, %v6654_v48  ;;  %v4449_v52 = vadd.f32 %v4448_v61, %v4447_v18 }
 0x79c   :  { %v6987_v26 = vadd.f32 %v2973_v27, %v2654_v55  ;;  %vm2954_vm12 = vcmp.ge.f32.partialorder %v2944_v38, 0.0  ;;  %v2964_v45 = vmul.f32 0.01, %v2944_v38 }
 0x79d   :  { %v2919_v62 = vadd.f32 %v6830_v3, %v2846_v40  ;;  %v2849_v2 = vadd.f32 %v4449_v52, %v6654_v48  ;;  %v2656_v3 = vsel %vm2636_vm13, %v2626_v14, %v2646_v59  ;;  %v2657_v40 = vsel %vm2637_vm15, %v2627_v35, %v2647_v7 }
 0x79e   :  { %v2974_v19 = vsel %vm2954_vm12, %v2944_v38, %v2964_v45  ;;  %v2629_v52 = vmul.f32 0.999995, %v6686_v6 }
 0x79f   :  { %v6991_v9 = vadd.f32 %v2974_v19, %v2655_v58  ;;  %v2945_v20 = vmul.f32 0.999995, %v2919_v62  ;;  %v2922_v47 = vadd.f32 %v6837_v43, %v2849_v2  ;;  %v4450_v39 = vpop.f32.mrb[140].mxu1  ;;  %v2648_v2 = vmul.f32 0.01, %v2628_v41 }
 0x7a0   :  { %v4451_v24 = vpop.f32.mrb[141].mxu1  ;;  %vm2639_vm4 = vcmp.ge.f32.partialorder %v2629_v52, 0.0 }
 0x7a1   :  { %vm2955_vm14 = vcmp.ge.f32.partialorder %v2945_v20, 0.0  ;;  %v2965_v0 = vmul.f32 0.01, %v2945_v20  ;;  %v2946_v12 = vmul.f32 0.999995, %v2922_v47  ;;  %v4452_v50 = vadd.f32 %v4451_v24, %v4450_v39  ;;  %v4453_v18 = vpop.f32.mrb[142].mxu1 }
 0x7a2   :  { %v4454_v8 = vpop.f32.mrb[143].mxu1  ;;  %v2649_v47 = vmul.f32 0.01, %v2629_v52  ;;  %v2658_v6 = vsel %vm2638_vm2, %v2628_v41, %v2648_v2  ;;  %v2630_v24 = vmul.f32 0.999995, %v6690_v63 }
 0x7a3   :  { %v2975_v55 = vsel %vm2955_vm14, %v2945_v20, %v2965_v0  ;;  %vm2956_vm1 = vcmp.ge.f32.partialorder %v2946_v12, 0.0  ;;  %v2966_v38 = vmul.f32 0.01, %v2946_v12  ;;  %v2854_v61 = vadd.f32 %v4452_v50, %v6654_v48 }
 0x7a4   :  { %v6996_v27 = vadd.f32 %v2975_v55, %v2656_v3  ;;  %v4455_v43 = vadd.f32 %v4454_v8, %v4453_v18  ;;  %v2631_v3 = vmul.f32 0.999995, %v6694_v30  ;;  %v2659_v41 = vsel %vm2639_vm4, %v2629_v52, %v2649_v47  ;;  %v7017_v47 = vld [vmem:[%s7276_s19] ss:$0 sm:$0xff] }
 0x7a5   :  { %v2976_v45 = vsel %vm2956_vm1, %v2946_v12, %v2966_v38  ;;  %v2927_v62 = vadd.f32 %v6853_v4, %v2854_v61  ;;  %v2650_v61 = vmul.f32 0.01, %v2630_v24  ;;  %vm2640_vm6 = vcmp.ge.f32.partialorder %v2630_v24, 0.0 }
 0x7a6   :  { %v7000_v14 = vadd.f32 %v2976_v45, %v2657_v40  ;;  %v2857_v17 = vadd.f32 %v4455_v43, %v6654_v48  ;;  %v2651_v2 = vmul.f32 0.01, %v2631_v3  ;;  %vm2641_vm8 = vcmp.ge.f32.partialorder %v2631_v3, 0.0 }
 0x7a7   :  { %v2947_v58 = vmul.f32 0.999995, %v2927_v62  ;;  %v4456_v59 = vpop.f32.mrb[144].mxu1 }
 0x7a8   :  { %v2930_v19 = vadd.f32 %v6860_v32, %v2857_v17  ;;  %v4457_v20 = vpop.f32.mrb[145].mxu1 }
 0x7a9   :  { %vm2957_vm3 = vcmp.ge.f32.partialorder %v2947_v58, 0.0  ;;  %v2967_v39 = vmul.f32 0.01, %v2947_v58  ;;  %v4458_v35 = vadd.f32 %v4457_v20, %v4456_v59  ;;  %v4459_v7 = vpop.f32.mrb[146].mxu1 }
 0x7aa   :  { %v2948_v4 = vmul.f32 0.999995, %v2930_v19  ;;  %v4460_v0 = vpop.f32.mrb[147].mxu1 }
 0x7ab   :  { %v2977_v12 = vsel %vm2957_vm3, %v2947_v58, %v2967_v39  ;;  %v2862_v50 = vadd.f32 %v4458_v35, %v6654_v48  ;;  %v4461_v18 = vadd.f32 %v4460_v0, %v4459_v7  ;;  %v2661_v7 = vsel %vm2641_vm8, %v2631_v3, %v2651_v2 }
 0x7ac   :  { %v7007_v8 = vadd.f32 %v2977_v12, %v2658_v6  ;;  %vm2958_vm5 = vcmp.ge.f32.partialorder %v2948_v4, 0.0  ;;  %v2968_v32 = vmul.f32 0.01, %v2948_v4 }
 0x7ad   :  { %v2935_v55 = vadd.f32 %v6876_v13, %v2862_v50  ;;  %v2865_v38 = vadd.f32 %v4461_v18, %v6654_v48  ;;  %v2660_v13 = vsel %vm2640_vm6, %v2630_v24, %v2650_v61 }
 0x7ae   :  { %v2978_v63 = vsel %vm2958_vm5, %v2948_v4, %v2968_v32 }
 0x7af   :  { %v7011_v43 = vadd.f32 %v2978_v63, %v2659_v41  ;;  %v2949_v40 = vmul.f32 0.999995, %v2935_v55  ;;  %v2938_v45 = vadd.f32 %v6883_v42, %v2865_v38  ;;  %v4491_v62 = vpop.f32.mrb[148].mxu1 }
 0x7b0   :  { %v4492_v30 = vpop.f32.mrb[149].mxu1 }
 0x7b1   :  { %vm2959_vm7 = vcmp.ge.f32.partialorder %v2949_v40, 0.0  ;;  %v2969_v17 = vmul.f32 0.01, %v2949_v40  ;;  %v2950_v58 = vmul.f32 0.999995, %v2938_v45  ;;  %v4493_v59 = vadd.f32 %v4492_v30, %v4491_v62  ;;  %v4494_v19 = vpop.f32.mrb[150].mxu1 }
 0x7b2   :  { %v4495_v48 = vpop.f32.mrb[151].mxu1 }
 0x7b3   :  { %v2979_v52 = vsel %vm2959_vm7, %v2949_v40, %v2969_v17  ;;  %vm2960_vm9 = vcmp.ge.f32.partialorder %v2950_v58, 0.0  ;;  %v2970_v20 = vmul.f32 0.01, %v2950_v58  ;;  %v3041_v42 = vadd.f32 %v7017_v47, %v4493_v59 }
 0x7b4   :  { %v7020_v39 = vadd.f32 %v2979_v52, %v2660_v13  ;;  %v4496_v35 = vadd.f32 %v4495_v48, %v4494_v19 }
 0x7b5   :  { %v2980_v6 = vsel %vm2960_vm9, %v2950_v58, %v2970_v20  ;;  %v3089_v24 = vmul.f32 0.01, %v3041_v42  ;;  %vm3079_vm10 = vcmp.ge.f32.partialorder %v3041_v42, 0.0 }
 0x7b6   :  { %v7022_v4 = vadd.f32 %v2980_v6, %v2661_v7  ;;  %v3044_v0 = vadd.f32 %v7017_v47, %v4496_v35 }
 0x7b7   :  { %v4497_v12 = vpop.f32.mrb[152].mxu1  ;;  %v3099_v38 = vsel %vm3079_vm10, %v3041_v42, %v3089_v24 }
 0x7b8   :  { %vm3080_vm11 = vcmp.ge.f32.partialorder %v3044_v0, 0.0  ;;  %v3090_v50 = vmul.f32 0.01, %v3044_v0  ;;  %v4498_v18 = vpop.f32.mrb[153].mxu1 }
 0x7b9   :  { %v4499_v32 = vadd.f32 %v4498_v18, %v4497_v12  ;;  %v4500_v55 = vpop.f32.mrb[154].mxu1 }
 0x7ba   :  { %v3100_v41 = vsel %vm3080_vm11, %v3044_v0, %v3090_v50  ;;  %v4501_v61 = vpop.f32.mrb[155].mxu1 }
 0x7bb   :  { %v3109_v63 = vpack.c.bf16 %v3100_v41, %v3099_v38  ;;  %v3049_v40 = vadd.f32 %v7017_v47, %v4499_v32  ;;  %v4502_v3 = vadd.f32 %v4501_v61, %v4500_v55 }
 0x7bd   :  { %v3091_v45 = vmul.f32 0.01, %v3049_v40  ;;  %v3052_v62 = vadd.f32 %v7017_v47, %v4502_v3  ;;  %3147 = vmatmul.mubr.bf16.vlgmr.msra.gmra.mrb[140].mxu0 %v3109_v63  ;;  %vm3081_vm12 = vcmp.ge.f32.partialorder %v3049_v40, 0.0 }
 0x7be   :  { %4581 = vmatpush3.bf16.msra.mxu0 %v6703_v46  ;;  %3154 = vmatprep.mubr.bf16.mxu0 %v6299_v36 }
 0x7bf   :  { %vm3082_vm13 = vcmp.ge.f32.partialorder %v3052_v62, 0.0  ;;  %v3092_v2 = vmul.f32 0.01, %v3052_v62  ;;  %v4503_v30 = vpop.f32.mrb[156].mxu1  ;;  %4582 = vmatprep.subr.bf16.mxu0 %v6710_v23  ;;  %v3101_v19 = vsel %vm3081_vm12, %v3049_v40, %v3091_v45 }
 0x7c0   :  { %v4504_v17 = vpop.f32.mrb[157].mxu1 }
 0x7c1   :  { %v4505_v58 = vadd.f32 %v4504_v17, %v4503_v30  ;;  %v4506_v59 = vpop.f32.mrb[158].mxu1  ;;  %v3102_v13 = vsel %vm3082_vm13, %v3052_v62, %v3092_v2  ;;  %v3310_v17 = vsub.f32 %v6087_v31, %v7397_v44 }
 0x7c2   :  { %4583 = vmatpush3.bf16.msra.mxu0 %v6716_v25  ;;  %v4507_v48 = vpop.f32.mrb[159].mxu1  ;;  %v3110_v52 = vpack.c.bf16 %v3102_v13, %v3101_v19 }
 0x7c3   :  { %v3057_v20 = vadd.f32 %v7017_v47, %v4505_v58  ;;  %v4508_v42 = vadd.f32 %v4507_v48, %v4506_v59  ;;  %4584 = vmatprep.subr.bf16.mxu0 %v6723_v11 }
 0x7c5   :  { %v3093_v46 = vmul.f32 0.01, %v3057_v20  ;;  %v3060_v35 = vadd.f32 %v7017_v47, %v4508_v42  ;;  %3155 = vmatmul.mubr.bf16.gmra.mrb[144].mxu0 %v3110_v52  ;;  %vm3083_vm14 = vcmp.ge.f32.partialorder %v3057_v20, 0.0 }
 0x7c6   :  { %3162 = vmatprep.mubr.bf16.mxu0 %v6326_v1  ;;  %4585 = vmatpush3.bf16.msra.mxu0 %v6731_v16 }
 0x7c7   :  { %vm3084_vm15 = vcmp.ge.f32.partialorder %v3060_v35, 0.0  ;;  %v3094_v23 = vmul.f32 0.01, %v3060_v35  ;;  %v4509_v7 = vpop.f32.mrb[160].mxu1  ;;  %4586 = vmatprep.subr.bf16.mxu0 %v6737_v33  ;;  %v3103_v0 = vsel %vm3083_vm14, %v3057_v20, %v3093_v46  ;;  %v7430_v20 = vld [vmem:[#allocation2_spill] sm:$0xff]  ;;  %v7431_v46 = vld [vmem:[#allocation4_spill] sm:$0xff] }
 0x7c8   :  { %v4510_v25 = vpop.f32.mrb[161].mxu1  ;;  %v3312_v42 = vsub.f32 %v7430_v20, %v6087_v31 }
 0x7c9   :  { %v4511_v6 = vadd.f32 %v4510_v25, %v4509_v7  ;;  %v4512_v24 = vpop.f32.mrb[162].mxu1  ;;  %v3104_v12 = vsel %vm3084_vm15, %v3060_v35, %v3094_v23  ;;  %v3313_v35 = vsub.f32 %v7431_v46, %v6089_v29 }
 0x7ca   :  { %v4513_v11 = vpop.f32.mrb[163].mxu1  ;;  %4587 = vmatpush3.bf16.msra.mxu0 %v6743_v57  ;;  %v3111_v50 = vpack.c.bf16 %v3104_v12, %v3103_v0  ;;  %v7434_v12 = vld [vmem:[#allocation5_spill] sm:$0xff] }
 0x7cb   :  { %v3065_v18 = vadd.f32 %v7017_v47, %v4511_v6  ;;  %v4514_v32 = vadd.f32 %v4513_v11, %v4512_v24  ;;  %4588 = vmatprep.subr.bf16.mxu0 %v6750_v15  ;;  %v3321_v25 = vpack.c.bf16 %v3313_v35, %v3312_v42  ;;  %v7432_v6 = vld [vmem:[#allocation3_spill] sm:$0xff]  ;;  %v3314_v11 = vsub.f32 %v7434_v12, %v7430_v20  ;;  %v7444_v42 = vld [vmem:[#allocation16_spill] sm:$0xff] }
 0x7cd   :  { %v3095_v16 = vmul.f32 0.01, %v3065_v18  ;;  %v3068_v55 = vadd.f32 %v7017_v47, %v4514_v32  ;;  %3163 = vmatmul.mubr.bf16.gmra.mrb[148].mxu0 %v3111_v50  ;;  %vm3085_vm1 = vcmp.ge.f32.partialorder %v3065_v18, 0.0  ;;  %v7435_v50 = vld [vmem:[#allocation6_spill] sm:$0xff] }
 0x7ce   :  { %3170 = vmatprep.mubr.bf16.mxu0 %v6349_v28  ;;  %4589 = vmatpush3.bf16.msra.mxu0 %v6758_v49 }
 0x7cf   :  { %vm3086_vm2 = vcmp.ge.f32.partialorder %v3068_v55, 0.0  ;;  %v3096_v33 = vmul.f32 0.01, %v3068_v55  ;;  %v4515_v38 = vpop.f32.mrb[164].mxu1  ;;  %4590 = vmatprep.subr.bf16.mxu0 %v6764_v53  ;;  %v3105_v63 = vsel %vm3085_vm1, %v3065_v18, %v3095_v16  ;;  %v3315_v18 = vsub.f32 %v7435_v50, %v7431_v46 }
 0x7d0   :  { %v4516_v57 = vpop.f32.mrb[165].mxu1 }
 0x7d1   :  { %v4517_v41 = vadd.f32 %v4516_v57, %v4515_v38  ;;  %v4518_v61 = vpop.f32.mrb[166].mxu1  ;;  %v3106_v40 = vsel %vm3086_vm2, %v3068_v55, %v3096_v33  ;;  %v7436_v55 = vld [vmem:[#allocation13_spill] sm:$0xff]  ;;  %v3322_v33 = vpack.c.bf16 %v3315_v18, %v3314_v11  ;;  %v7437_v38 = vld [vmem:[#allocation14_spill] sm:$0xff] }
 0x7d2   :  { %v4519_v15 = vpop.f32.mrb[167].mxu1  ;;  %v3112_v3 = vpack.c.bf16 %v3106_v40, %v3105_v63  ;;  %4591 = vmatpush3.bf16.msra.mxu0 %v6770_v54  ;;  %v7439_v40 = vld [vmem:[#allocation10_spill] sm:$0xff] }
 0x7d3   :  { %v3073_v45 = vadd.f32 %v7017_v47, %v4517_v41  ;;  %v4520_v62 = vadd.f32 %v4519_v15, %v4518_v61  ;;  %4592 = vmatprep.subr.bf16.mxu0 %v6777_v37  ;;  %v3311_v37 = vsub.f32 %v6089_v29, %v7398_v22  ;;  %v7438_v61 = vld [vmem:[#allocation9_spill] sm:$0xff]  ;;  %v3317_v15 = vsub.f32 %v7439_v40, %v7435_v50 }
 0x7d4   :  { %v3316_v63 = vsub.f32 %v7438_v61, %v7434_v12 }
 0x7d5   :  { %v3097_v49 = vmul.f32 0.01, %v3073_v45  ;;  %v3076_v2 = vadd.f32 %v7017_v47, %v4520_v62  ;;  %3171 = vmatmul.mubr.bf16.gmra.mrb[152].mxu0 %v3112_v3  ;;  %vm3087_vm3 = vcmp.ge.f32.partialorder %v3073_v45, 0.0  ;;  %v7440_v62 = vld [vmem:[#allocation8_spill] sm:$0xff] }
 0x7d6   :  { %3178 = vmatprep.mubr.bf16.mxu0 %v6363_v21  ;;  %4593 = vmatpush3.bf16.msra.mxu0 %v6785_v34  ;;  %v3320_v34 = vpack.c.bf16 %v3311_v37, %v3310_v17  ;;  %v3318_v17 = vsub.f32 %v7397_v44, %v7438_v61  ;;  %v3319_v37 = vsub.f32 %v7398_v22, %v7439_v40 }
 0x7d7   :  { %vm3088_vm4 = vcmp.ge.f32.partialorder %v3076_v2, 0.0  ;;  %v3098_v53 = vmul.f32 0.01, %v3076_v2  ;;  %v7050_v30 = vpop.f32.mrb[168].mxu1  ;;  %4594 = vmatprep.subr.bf16.mxu0 %v6793_v10  ;;  %v3107_v59 = vsel %vm3087_vm3, %v3073_v45, %v3097_v49  ;;  %v3323_v49 = vpack.c.bf16 %v3317_v15, %v3316_v63 }
 0x7d8   :  { %v4953_v54 = vpop.f32.mrb[169].mxu1 }
 0x7d9   :  { %v7057_v58 = vpop.f32.mrb[170].mxu1  ;;  %v3108_v19 = vsel %vm3088_vm4, %v3076_v2, %v3098_v53  ;;  %v7441_v2 = vld [vmem:[#allocation11_spill] sm:$0xff] }
 0x7da   :  { %v4954_v13 = vpop.f32.mrb[171].mxu1  ;;  %v3113_v48 = vpack.c.bf16 %v3108_v19, %v3107_v59  ;;  %4595 = vmatpush3.bf16.msra.mxu0 %v6805_v56  ;;  %v7433_v56 = vld [vmem:[#allocation7_spill] sm:$0xff] }
 0x7db   :  { %4971 = vmatprep.subr.bf16.mxu0 %v7392_v51  ;;  %v7442_v13 = vld [vmem:[#allocation12_spill] sm:$0xff] }
 0x7dd   :  { %3179 = vmatmul.mubr.bf16.gmra.mrb[156].mxu0 %v3113_v48  ;;  %v3324_v48 = vpack.c.bf16 %v3319_v37, %v3318_v17 }
 0x7de   :  { %3357 = vmatprep.mubr.bf16.mxu0 %v3320_v34 }
 0x7df   :  { %v7061_v10 = vpop.f32.mrb[172].mxu1 }
 0x7e0   :  { %v4957_v52 = vpop.f32.mrb[173].mxu1 }
 0x7e1   :  { %v7067_v23 = vpop.f32.mrb[174].mxu1  ;;  %v7443_v52 = vld [vmem:[#allocation15_spill] sm:$0xff] }
 0x7e2   :  { %v4958_v7 = vpop.f32.mrb[175].mxu1 }
 0x7e5   :  { %3358 = vmatmul.mubr.bf16.vlgmr.msra.gmra.mrb[160].mxu0 %v7432_v6 }
 0x7e6   :  { %3365 = vmatprep.mubr.bf16.mxu0 %v3321_v25  ;;  %4972 = vmatpush3.bf16.msra.mxu0 %v7433_v56 }
 0x7e7   :  { %v7071_v24 = vpop.f32.mrb[176].mxu1  ;;  %4973 = vmatprep.subr.bf16.mxu0 %v7392_v51 }
 0x7e8   :  { %v4961_v0 = vpop.f32.mrb[177].mxu1 }
 0x7e9   :  { %v7078_v32 = vpop.f32.mrb[178].mxu1 }
 0x7ea   :  { %v4962_v16 = vpop.f32.mrb[179].mxu1  ;;  %4974 = vmatpush3.bf16.msra.mxu0 %v7436_v55 }
 0x7eb   :  { %4975 = vmatprep.subr.bf16.mxu0 %v7392_v51 }
 0x7ed   :  { %3366 = vmatmul.mubr.bf16.gmra.mrb[164].mxu0 %v6299_v36 }
 0x7ee   :  { %3373 = vmatprep.mubr.bf16.mxu0 %v3322_v33  ;;  %4976 = vmatpush3.bf16.msra.mxu0 %v7437_v38 }
 0x7ef   :  { %v7084_v57 = vpop.f32.mrb[180].mxu1  ;;  %4977 = vmatprep.subr.bf16.mxu0 %v7392_v51 }
 0x7f0   :  { %v4965_v41 = vpop.f32.mrb[181].mxu1 }
 0x7f1   :  { %v7091_v3 = vpop.f32.mrb[182].mxu1 }
 0x7f2   :  { %v4966_v45 = vpop.f32.mrb[183].mxu1  ;;  %4978 = vmatpush3.bf16.msra.mxu0 %v7440_v62 }
 0x7f3   :  { %4979 = vmatprep.subr.bf16.mxu0 %v7392_v51 }
 0x7f5   :  { %3374 = vmatmul.mubr.bf16.gmra.mrb[168].mxu0 %v6326_v1 }
 0x7f6   :  { %3381 = vmatprep.mubr.bf16.mxu0 %v3323_v49  ;;  %4980 = vmatpush3.bf16.msra.mxu0 %v7441_v2 }
 0x7f7   :  { %v7097_v53 = vpop.f32.mrb[184].mxu1  ;;  %4981 = vmatprep.subr.bf16.mxu0 %v7392_v51 }
 0x7f8   :  { %v4969_v54 = vpop.f32.mrb[185].mxu1 }
 0x7f9   :  { %v7104_v59 = vpop.f32.mrb[186].mxu1 }
 0x7fa   :  { %v4970_v19 = vpop.f32.mrb[187].mxu1  ;;  %4982 = vmatpush3.bf16.msra.mxu0 %v7442_v13 }
 0x7fb   :  { %4983 = vmatprep.subr.bf16.mxu0 %v7392_v51 }
 0x7fd   :  { %3382 = vmatmul.mubr.bf16.gmra.mrb[172].mxu0 %v6349_v28 }
 0x7fe   :  { %3389 = vmatprep.mubr.bf16.mxu0 %v3324_v48  ;;  %4984 = vmatpush3.bf16.msra.mxu0 %v7443_v52 }
 0x7ff   :  { %4985 = vmatprep.subr.bf16.mxu0 %v7392_v51 }
 0x802   :  { %4986 = vmatpush3.bf16.msra.mxu0 %v7444_v42 }
 0x805   :  { %3390 = vmatmul.mubr.bf16.gmra.mrb[176].mxu0 %v6363_v21 }
 0x806   :  { %4987 = vmatprep.mubr.msk.bf16.mxu0 %vm5201_vm0, %v7392_v51 }
 0x80d   :  { %4988 = vmatmul.mubr.bf16.vlgmr.msra.gmra.mrb[180].mxu0 %v3320_v34 }
 0x80e   :  { %4991 = vmatprep.mubr.msk.bf16.mxu0 %vm5201_vm0, %v7392_v51 }
 0x815   :  { %4992 = vmatmul.mubr.bf16.gmra.mrb[184].mxu0 %v3321_v25  ;;  %v7126_v25 = vld [vmem:[%s7277_s21] ss:$0 sm:$0xff] }
 0x816   :  { %4995 = vmatprep.mubr.msk.bf16.mxu0 %vm5201_vm0, %v7392_v51 }
 0x81d   :  { %4996 = vmatmul.mubr.bf16.gmra.mrb[188].mxu0 %v3322_v33 }
 0x81e   :  { %4999 = vmatprep.mubr.msk.bf16.mxu0 %vm5201_vm0, %v7392_v51 }
 0x825   :  { %5000 = vmatmul.mubr.bf16.gmra.mrb[192].mxu0 %v3323_v49 }
 0x826   :  { %5003 = vmatprep.mubr.msk.bf16.mxu0 %vm5201_vm0, %v7392_v51 }
 0x82d   :  { %5004 = vmatmul.mubr.bf16.gmra.mrb[196].mxu0 %v3324_v48 }
 0x890   :  { %v4537_v35 = vpop.f32.mrb[140].mxu0 }
 0x891   :  { %v4538_v7 = vpop.f32.mrb[141].mxu0 }
 0x892   :  { %v4539_v6 = vadd.f32 %v4538_v7, %v4537_v35  ;;  %v4540_v34 = vpop.f32.mrb[142].mxu0 }
 0x893   :  { %v4541_v56 = vpop.f32.mrb[143].mxu0 }
 0x894   :  { %v3149_v0 = vadd.f32 %v7126_v25, %v4539_v6  ;;  %v4542_v11 = vadd.f32 %v4541_v56, %v4540_v34 }
 0x896   :  { %v3222_v18 = vadd.f32 %v7050_v30, %v3149_v0  ;;  %v3152_v16 = vadd.f32 %v7126_v25, %v4542_v11 }
 0x898   :  { %v3260_v55 = vmul.f32 0.999995, %v3222_v18  ;;  %v3225_v51 = vadd.f32 %v7057_v58, %v3152_v16  ;;  %v4543_v33 = vpop.f32.mrb[144].mxu0 }
 0x899   :  { %v4544_v38 = vpop.f32.mrb[145].mxu0 }
 0x89a   :  { %vm3270_vm0 = vcmp.ge.f32.partialorder %v3260_v55, 0.0  ;;  %v3280_v41 = vmul.f32 0.01, %v3260_v55  ;;  %v3261_v63 = vmul.f32 0.999995, %v3225_v51  ;;  %v4545_v15 = vadd.f32 %v4544_v38, %v4543_v33  ;;  %v4546_v45 = vpop.f32.mrb[146].mxu0 }
 0x89b   :  { %v4547_v62 = vpop.f32.mrb[147].mxu0 }
 0x89c   :  { %v3290_v49 = vsel %vm3270_vm0, %v3260_v55, %v3280_v41  ;;  %vm3271_vm5 = vcmp.ge.f32.partialorder %v3261_v63, 0.0  ;;  %v3281_v2 = vmul.f32 0.01, %v3261_v63  ;;  %v3157_v54 = vadd.f32 %v7126_v25, %v4545_v15 }
 0x89d   :  { %v7134_v30 = vadd.f32 %v3290_v49, %v6976_v60  ;;  %v4548_v17 = vadd.f32 %v4547_v62, %v4546_v45 }
 0x89e   :  { %v3291_v37 = vsel %vm3271_vm5, %v3261_v63, %v3281_v2  ;;  %v3230_v58 = vadd.f32 %v7061_v10, %v3157_v54 }
 0x89f   :  { %v7138_v19 = vadd.f32 %v3291_v37, %v6980_v5  ;;  %v3160_v13 = vadd.f32 %v7126_v25, %v4548_v17 }
 0x8a0   :  { %v3262_v48 = vmul.f32 0.999995, %v3230_v58  ;;  %v4549_v52 = vpop.f32.mrb[148].mxu0 }
 0x8a1   :  { %v3233_v42 = vadd.f32 %v7067_v23, %v3160_v13  ;;  %v4550_v35 = vpop.f32.mrb[149].mxu0 }
 0x8a2   :  { %vm3272_vm6 = vcmp.ge.f32.partialorder %v3262_v48, 0.0  ;;  %v3282_v7 = vmul.f32 0.01, %v3262_v48  ;;  %v4551_v6 = vadd.f32 %v4550_v35, %v4549_v52  ;;  %v4552_v34 = vpop.f32.mrb[150].mxu0 }
 0x8a3   :  { %v3263_v60 = vmul.f32 0.999995, %v3233_v42  ;;  %v4553_v56 = vpop.f32.mrb[151].mxu0 }
 0x8a4   :  { %v3292_v0 = vsel %vm3272_vm6, %v3262_v48, %v3282_v7  ;;  %v3165_v11 = vadd.f32 %v7126_v25, %v4551_v6  ;;  %v4554_v10 = vadd.f32 %v4553_v56, %v4552_v34 }
 0x8a5   :  { %v7144_v5 = vadd.f32 %v3292_v0, %v6987_v26  ;;  %vm3273_vm7 = vcmp.ge.f32.partialorder %v3263_v60, 0.0  ;;  %v3283_v18 = vmul.f32 0.01, %v3263_v60 }
 0x8a6   :  { %v3238_v16 = vadd.f32 %v7071_v24, %v3165_v11  ;;  %v3168_v23 = vadd.f32 %v7126_v25, %v4554_v10 }
 0x8a7   :  { %v3293_v55 = vsel %vm3273_vm7, %v3263_v60, %v3283_v18 }
 0x8a8   :  { %v7149_v51 = vadd.f32 %v3293_v55, %v6991_v9  ;;  %v3264_v33 = vmul.f32 0.999995, %v3238_v16  ;;  %v3241_v38 = vadd.f32 %v7078_v32, %v3168_v23  ;;  %v4555_v41 = vpop.f32.mrb[152].mxu0 }
 0x8a9   :  { %v4556_v63 = vpop.f32.mrb[153].mxu0 }
 0x8aa   :  { %vm3274_vm8 = vcmp.ge.f32.partialorder %v3264_v33, 0.0  ;;  %v3284_v15 = vmul.f32 0.01, %v3264_v33  ;;  %v3265_v45 = vmul.f32 0.999995, %v3241_v38  ;;  %v4557_v26 = vadd.f32 %v4556_v63, %v4555_v41  ;;  %v4558_v62 = vpop.f32.mrb[154].mxu0 }
 0x8ab   :  { %v4559_v49 = vpop.f32.mrb[155].mxu0 }
 0x8ac   :  { %v3294_v2 = vsel %vm3274_vm8, %v3264_v33, %v3284_v15  ;;  %vm3275_vm9 = vcmp.ge.f32.partialorder %v3265_v45, 0.0  ;;  %v3285_v24 = vmul.f32 0.01, %v3265_v45  ;;  %v3173_v54 = vadd.f32 %v7126_v25, %v4557_v26 }
 0x8ad   :  { %v7154_v17 = vadd.f32 %v3294_v2, %v6996_v27  ;;  %v4560_v9 = vadd.f32 %v4559_v49, %v4558_v62 }
 0x8ae   :  { %v3295_v37 = vsel %vm3275_vm9, %v3265_v45, %v3285_v24  ;;  %v3246_v32 = vadd.f32 %v7084_v57, %v3173_v54 }
 0x8af   :  { %v7158_v58 = vadd.f32 %v3295_v37, %v7000_v14  ;;  %v3176_v13 = vadd.f32 %v7126_v25, %v4560_v9 }
 0x8b0   :  { %v3266_v48 = vmul.f32 0.999995, %v3246_v32  ;;  %v4561_v52 = vpop.f32.mrb[156].mxu0 }
 0x8b1   :  { %v3249_v42 = vadd.f32 %v7091_v3, %v3176_v13  ;;  %v4562_v35 = vpop.f32.mrb[157].mxu0 }
 0x8b2   :  { %vm3276_vm10 = vcmp.ge.f32.partialorder %v3266_v48, 0.0  ;;  %v3286_v7 = vmul.f32 0.01, %v3266_v48  ;;  %v4563_v6 = vadd.f32 %v4562_v35, %v4561_v52  ;;  %v4564_v34 = vpop.f32.mrb[158].mxu0 }
 0x8b3   :  { %v3267_v27 = vmul.f32 0.999995, %v3249_v42  ;;  %v4565_v60 = vpop.f32.mrb[159].mxu0 }
 0x8b4   :  { %v3296_v56 = vsel %vm3276_vm10, %v3266_v48, %v3286_v7  ;;  %v3181_v0 = vadd.f32 %v7126_v25, %v4563_v6  ;;  %v4566_v57 = vadd.f32 %v4565_v60, %v4564_v34 }
 0x8b5   :  { %v7164_v14 = vadd.f32 %v3296_v56, %v7007_v8  ;;  %vm3277_vm11 = vcmp.ge.f32.partialorder %v3267_v27, 0.0  ;;  %v3287_v11 = vmul.f32 0.01, %v3267_v27 }
 0x8b6   :  { %v3254_v10 = vadd.f32 %v7097_v53, %v3181_v0  ;;  %v3184_v3 = vadd.f32 %v7126_v25, %v4566_v57 }
 0x8b7   :  { %v3297_v18 = vsel %vm3277_vm11, %v3267_v27, %v3287_v11 }
 0x8b8   :  { %v7169_v16 = vadd.f32 %v3297_v18, %v7011_v43  ;;  %v3268_v23 = vmul.f32 0.999995, %v3254_v10  ;;  %v3257_v55 = vadd.f32 %v7104_v59, %v3184_v3  ;;  %v4596_v33 = vpop.f32.mrb[160].mxu0 }
 0x8b9   :  { %v4597_v38 = vpop.f32.mrb[161].mxu0 }
 0x8ba   :  { %vm3278_vm12 = vcmp.ge.f32.partialorder %v3268_v23, 0.0  ;;  %v3288_v41 = vmul.f32 0.01, %v3268_v23  ;;  %v3269_v63 = vmul.f32 0.999995, %v3257_v55  ;;  %v4598_v8 = vadd.f32 %v4597_v38, %v4596_v33  ;;  %v4599_v15 = vpop.f32.mrb[162].mxu0 }
 0x8bb   :  { %v4600_v45 = vpop.f32.mrb[163].mxu0 }
 0x8bc   :  { %v3298_v26 = vsel %vm3278_vm12, %v3268_v23, %v3288_v41  ;;  %vm3279_vm13 = vcmp.ge.f32.partialorder %v3269_v63, 0.0  ;;  %v3289_v53 = vmul.f32 0.01, %v3269_v63  ;;  %v3360_v62 = vadd.f32 %v7017_v47, %v4598_v8 }
 0x8bd   :  { %v7174_v49 = vadd.f32 %v3298_v26, %v7020_v39  ;;  %v4601_v43 = vadd.f32 %v4600_v45, %v4599_v15 }
 0x8be   :  { %v3299_v2 = vsel %vm3279_vm13, %v3269_v63, %v3289_v53  ;;  %v3408_v24 = vmul.f32 0.01, %v3360_v62  ;;  %vm3398_vm14 = vcmp.ge.f32.partialorder %v3360_v62, 0.0 }
 0x8bf   :  { %v7177_v59 = vadd.f32 %v3299_v2, %v7022_v4  ;;  %v3363_v54 = vadd.f32 %v7017_v47, %v4601_v43 }
 0x8c0   :  { %v4602_v9 = vpop.f32.mrb[164].mxu0  ;;  %v3418_v52 = vsel %vm3398_vm14, %v3360_v62, %v3408_v24 }
 0x8c1   :  { %vm3399_vm15 = vcmp.ge.f32.partialorder %v3363_v54, 0.0  ;;  %v3409_v37 = vmul.f32 0.01, %v3363_v54  ;;  %v4603_v32 = vpop.f32.mrb[165].mxu0 }
 0x8c2   :  { %v4604_v13 = vadd.f32 %v4603_v32, %v4602_v9  ;;  %v4605_v48 = vpop.f32.mrb[166].mxu0 }
 0x8c3   :  { %v3419_v42 = vsel %vm3399_vm15, %v3363_v54, %v3409_v37  ;;  %v4606_v35 = vpop.f32.mrb[167].mxu0 }
 0x8c4   :  { %v3428_v39 = vpack.c.bf16 %v3419_v42, %v3418_v52  ;;  %v3368_v7 = vadd.f32 %v7017_v47, %v4604_v13  ;;  %v4607_v6 = vadd.f32 %v4606_v35, %v4605_v48 }
 0x8c6   :  { %v3410_v34 = vmul.f32 0.01, %v3368_v7  ;;  %v3371_v4 = vadd.f32 %v7017_v47, %v4607_v6  ;;  %3466 = vmatmul.mubr.bf16.vlgmr.msra.gmra.mrb[188].mxu1 %v3428_v39  ;;  %vm3400_vm1 = vcmp.ge.f32.partialorder %v3368_v7, 0.0 }
 0x8c7   :  { %3473 = vmatprep.mubr.bf16.mxu1 %v6299_v36 }
 0x8c8   :  { %vm3401_vm2 = vcmp.ge.f32.partialorder %v3371_v4, 0.0  ;;  %v3411_v27 = vmul.f32 0.01, %v3371_v4  ;;  %v4608_v60 = vpop.f32.mrb[168].mxu0  ;;  %v3420_v11 = vsel %vm3400_vm1, %v3368_v7, %v3410_v34 }
 0x8c9   :  { %v4609_v56 = vpop.f32.mrb[169].mxu0 }
 0x8ca   :  { %v4610_v0 = vadd.f32 %v4609_v56, %v4608_v60  ;;  %v4611_v57 = vpop.f32.mrb[170].mxu0  ;;  %v3421_v10 = vsel %vm3401_vm2, %v3371_v4, %v3411_v27 }
 0x8cb   :  { %v4612_v3 = vpop.f32.mrb[171].mxu0  ;;  %v3429_v18 = vpack.c.bf16 %v3421_v10, %v3420_v11 }
 0x8cc   :  { %v3376_v23 = vadd.f32 %v7017_v47, %v4610_v0  ;;  %v4613_v55 = vadd.f32 %v4612_v3, %v4611_v57 }
 0x8ce   :  { %v3412_v33 = vmul.f32 0.01, %v3376_v23  ;;  %v3379_v38 = vadd.f32 %v7017_v47, %v4613_v55  ;;  %3474 = vmatmul.mubr.bf16.gmra.mrb[192].mxu1 %v3429_v18  ;;  %vm3402_vm3 = vcmp.ge.f32.partialorder %v3376_v23, 0.0 }
 0x8cf   :  { %3481 = vmatprep.mubr.bf16.mxu1 %v6326_v1 }
 0x8d0   :  { %vm3403_vm4 = vcmp.ge.f32.partialorder %v3379_v38, 0.0  ;;  %v3413_v36 = vmul.f32 0.01, %v3379_v38  ;;  %v4614_v41 = vpop.f32.mrb[172].mxu0  ;;  %v3422_v45 = vsel %vm3402_vm3, %v3376_v23, %v3412_v33 }
 0x8d1   :  { %v4615_v63 = vpop.f32.mrb[173].mxu0 }
 0x8d2   :  { %v4616_v8 = vadd.f32 %v4615_v63, %v4614_v41  ;;  %v4617_v15 = vpop.f32.mrb[174].mxu0  ;;  %v3423_v26 = vsel %vm3403_vm4, %v3379_v38, %v3413_v36 }
 0x8d3   :  { %v4618_v53 = vpop.f32.mrb[175].mxu0  ;;  %v3430_v62 = vpack.c.bf16 %v3423_v26, %v3422_v45 }
 0x8d4   :  { %v3384_v43 = vadd.f32 %v7017_v47, %v4616_v8  ;;  %v4619_v2 = vadd.f32 %v4618_v53, %v4617_v15 }
 0x8d6   :  { %v3414_v24 = vmul.f32 0.01, %v3384_v43  ;;  %v3387_v54 = vadd.f32 %v7017_v47, %v4619_v2  ;;  %3482 = vmatmul.mubr.bf16.gmra.mrb[196].mxu1 %v3430_v62  ;;  %vm3404_vm0 = vcmp.ge.f32.partialorder %v3384_v43, 0.0 }
 0x8d7   :  { %3489 = vmatprep.mubr.bf16.mxu1 %v6349_v28 }
 0x8d8   :  { %vm3405_vm5 = vcmp.ge.f32.partialorder %v3387_v54, 0.0  ;;  %v3415_v1 = vmul.f32 0.01, %v3387_v54  ;;  %v4620_v9 = vpop.f32.mrb[176].mxu0  ;;  %v3424_v48 = vsel %vm3404_vm0, %v3384_v43, %v3414_v24 }
 0x8d9   :  { %v4621_v37 = vpop.f32.mrb[177].mxu0 }
 0x8da   :  { %v4622_v32 = vadd.f32 %v4621_v37, %v4620_v9  ;;  %v4623_v13 = vpop.f32.mrb[178].mxu0  ;;  %v3425_v52 = vsel %vm3405_vm5, %v3387_v54, %v3415_v1 }
 0x8db   :  { %v4624_v42 = vpop.f32.mrb[179].mxu0  ;;  %v3431_v35 = vpack.c.bf16 %v3425_v52, %v3424_v48 }
 0x8dc   :  { %v3392_v39 = vadd.f32 %v7017_v47, %v4622_v32  ;;  %v4625_v7 = vadd.f32 %v4624_v42, %v4623_v13 }
 0x8de   :  { %v3416_v6 = vmul.f32 0.01, %v3392_v39  ;;  %v3395_v34 = vadd.f32 %v7017_v47, %v4625_v7  ;;  %3490 = vmatmul.mubr.bf16.gmra.mrb[200].mxu1 %v3431_v35  ;;  %vm3406_vm6 = vcmp.ge.f32.partialorder %v3392_v39, 0.0 }
 0x8df   :  { %3497 = vmatprep.mubr.bf16.mxu1 %v6363_v21 }
 0x8e0   :  { %vm3407_vm7 = vcmp.ge.f32.partialorder %v3395_v34, 0.0  ;;  %v3417_v28 = vmul.f32 0.01, %v3395_v34  ;;  %v3540_v4 = vpop.f32.mrb[180].mxu0  ;;  %v3426_v56 = vsel %vm3406_vm6, %v3392_v39, %v3416_v6 }
 0x8e1   :  { %v4989_v27 = vpop.f32.mrb[181].mxu0 }
 0x8e2   :  { %v3543_v60 = vpop.f32.mrb[182].mxu0  ;;  %v3427_v0 = vsel %vm3407_vm7, %v3395_v34, %v3417_v28 }
 0x8e3   :  { %v4990_v57 = vpop.f32.mrb[183].mxu0  ;;  %v3432_v11 = vpack.c.bf16 %v3427_v0, %v3426_v56 }
 0x8e6   :  { %3498 = vmatmul.mubr.bf16.gmra.mrb[204].mxu1 %v3432_v11 }
 0x8e8   :  { %v3548_v10 = vpop.f32.mrb[184].mxu0 }
 0x8e9   :  { %v4993_v3 = vpop.f32.mrb[185].mxu0 }
 0x8ea   :  { %v3551_v18 = vpop.f32.mrb[186].mxu0 }
 0x8eb   :  { %v4994_v23 = vpop.f32.mrb[187].mxu0 }
 0x8f0   :  { %v7192_v55 = vpop.f32.mrb[188].mxu0 }
 0x8f1   :  { %v4997_v47 = vpop.f32.mrb[189].mxu0 }
 0x8f2   :  { %v7194_v33 = vpop.f32.mrb[190].mxu0 }
 0x8f3   :  { %v4998_v21 = vpop.f32.mrb[191].mxu0 }
 0x8f8   :  { %v7196_v38 = vpop.f32.mrb[192].mxu0 }
 0x8f9   :  { %v5001_v36 = vpop.f32.mrb[193].mxu0 }
 0x8fa   :  { %v7198_v41 = vpop.f32.mrb[194].mxu0 }
 0x8fb   :  { %v5002_v63 = vpop.f32.mrb[195].mxu0 }
 0x900   :  { %v7200_v8 = vpop.f32.mrb[196].mxu0 }
 0x901   :  { %v5005_v15 = vpop.f32.mrb[197].mxu0 }
 0x902   :  { %v7202_v45 = vpop.f32.mrb[198].mxu0 }
 0x903   :  { %v5006_v26 = vpop.f32.mrb[199].mxu0 }
 0x999   :  { %v4642_v53 = vpop.f32.mrb[188].mxu1 }
 0x99a   :  { %v4643_v62 = vpop.f32.mrb[189].mxu1 }
 0x99b   :  { %v4644_v43 = vadd.f32 %v4643_v62, %v4642_v53  ;;  %v4645_v2 = vpop.f32.mrb[190].mxu1 }
 0x99c   :  { %v4646_v24 = vpop.f32.mrb[191].mxu1 }
 0x99d   :  { %v3468_v54 = vadd.f32 %v7126_v25, %v4644_v43  ;;  %v4647_v1 = vadd.f32 %v4646_v24, %v4645_v2 }
 0x99f   :  { %v3541_v9 = vadd.f32 %v3540_v4, %v3468_v54  ;;  %v3471_v37 = vadd.f32 %v7126_v25, %v4647_v1 }
 0x9a1   :  { %v3579_v32 = vmul.f32 0.999995, %v3541_v9  ;;  %v3544_v13 = vadd.f32 %v3543_v60, %v3471_v37  ;;  %v4648_v48 = vpop.f32.mrb[192].mxu1 }
 0x9a2   :  { %v4649_v52 = vpop.f32.mrb[193].mxu1 }
 0x9a3   :  { %vm3589_vm8 = vcmp.ge.f32.partialorder %v3579_v32, 0.0  ;;  %v3599_v42 = vmul.f32 0.01, %v3579_v32  ;;  %v3580_v35 = vmul.f32 0.999995, %v3544_v13  ;;  %v4650_v39 = vadd.f32 %v4649_v52, %v4648_v48  ;;  %v4651_v7 = vpop.f32.mrb[194].mxu1 }
 0x9a4   :  { %v4652_v6 = vpop.f32.mrb[195].mxu1 }
 0x9a5   :  { %v3609_v34 = vsel %vm3589_vm8, %v3579_v32, %v3599_v42  ;;  %vm3590_vm9 = vcmp.ge.f32.partialorder %v3580_v35, 0.0  ;;  %v3600_v28 = vmul.f32 0.01, %v3580_v35  ;;  %v3476_v27 = vadd.f32 %v7126_v25, %v4650_v39 }
 0x9a6   :  { %v3619_v56 = vadd.f32 %v3609_v34, %v7134_v30  ;;  %v4653_v4 = vadd.f32 %v4652_v6, %v4651_v7 }
 0x9a7   :  { %v3610_v0 = vsel %vm3590_vm9, %v3580_v35, %v3600_v28  ;;  %v3549_v57 = vadd.f32 %v3548_v10, %v3476_v27 }
 0x9a8   :  { %v3629_v11 = vmul.f32 0.2, %v3619_v56  ;;  %v3620_v60 = vadd.f32 %v3610_v0, %v7138_v19  ;;  %v3479_v3 = vadd.f32 %v7126_v25, %v4653_v4 }
 0x9a9   :  { %v3581_v23 = vmul.f32 0.999995, %v3549_v57  ;;  %v4654_v47 = vpop.f32.mrb[196].mxu1 }
 0x9aa   :  { %v3630_v21 = vmul.f32 0.2, %v3620_v60  ;;  %v3552_v36 = vadd.f32 %v3551_v18, %v3479_v3  ;;  %v4655_v63 = vpop.f32.mrb[197].mxu1  ;;  %v3639_v62 = vadd.f32 %v3629_v11, %v6087_v31 }
 0x9ab   :  { %vm3591_vm10 = vcmp.ge.f32.partialorder %v3581_v23, 0.0  ;;  %v3601_v15 = vmul.f32 0.01, %v3581_v23  ;;  %v4656_v26 = vadd.f32 %v4655_v63, %v4654_v47  ;;  %v4657_v53 = vpop.f32.mrb[198].mxu1 }
 0x9ac   :  { %v3640_v30 = vadd.f32 %v3630_v21, %v6089_v29  ;;  %v3582_v43 = vmul.f32 0.999995, %v3552_v36  ;;  %v4658_v10 = vpop.f32.mrb[199].mxu1 }
 0x9ad   :  { %v3611_v2 = vsel %vm3591_vm10, %v3581_v23, %v3601_v15  ;;  %v3484_v19 = vadd.f32 %v7126_v25, %v4656_v26  ;;  %v4659_v24 = vadd.f32 %v4658_v10, %v4657_v53 }
 0x9ae   :  { %v3954_v54 = vpack.c.bf16 %v3640_v30, %v3639_v62  ;;  %v3621_v1 = vadd.f32 %v3611_v2, %v7144_v5  ;;  %vm3592_vm11 = vcmp.ge.f32.partialorder %v3582_v43, 0.0  ;;  %v3602_v18 = vmul.f32 0.01, %v3582_v43 }
 0x9af   :  { %v3557_v9 = vadd.f32 %v7192_v55, %v3484_v19  ;;  %v3487_v37 = vadd.f32 %v7126_v25, %v4659_v24 }
 0x9b0   :  { %3955 = vst [vmem:[%s7278_s23] sm:$0xff] %v3954_v54   ;;  %v3631_v31 = vmul.f32 0.2, %v3621_v1  ;;  %v3612_v29 = vsel %vm3592_vm11, %v3582_v43, %v3602_v18 }
 0x9b1   :  { %v3622_v32 = vadd.f32 %v3612_v29, %v7149_v51  ;;  %v3583_v13 = vmul.f32 0.999995, %v3557_v9  ;;  %v3560_v48 = vadd.f32 %v7194_v33, %v3487_v37  ;;  %v4660_v52 = vpop.f32.mrb[200].mxu1 }
 0x9b2   :  { %v4661_v42 = vpop.f32.mrb[201].mxu1  ;;  %v3641_v7 = vadd.f32 %v3631_v31, %v7430_v20 }
 0x9b3   :  { %v3632_v5 = vmul.f32 0.2, %v3622_v32  ;;  %vm3593_vm12 = vcmp.ge.f32.partialorder %v3583_v13, 0.0  ;;  %v3603_v35 = vmul.f32 0.01, %v3583_v13  ;;  %v4662_v39 = vadd.f32 %v4661_v42, %v4660_v52  ;;  %v4663_v55 = vpop.f32.mrb[202].mxu1 }
 0x9b4   :  { %v3584_v6 = vmul.f32 0.999995, %v3560_v48  ;;  %v4664_v34 = vpop.f32.mrb[203].mxu1 }
 0x9b5   :  { %v3642_v28 = vadd.f32 %v3632_v5, %v7431_v46  ;;  %v3613_v27 = vsel %vm3593_vm12, %v3583_v13, %v3603_v35  ;;  %v3492_v56 = vadd.f32 %v7126_v25, %v4662_v39  ;;  %v4665_v51 = vadd.f32 %v4664_v34, %v4663_v55 }
 0x9b6   :  { %v3623_v4 = vadd.f32 %v3613_v27, %v7154_v17  ;;  %vm3594_vm13 = vcmp.ge.f32.partialorder %v3584_v6, 0.0  ;;  %v3604_v33 = vmul.f32 0.01, %v3584_v6 }
 0x9b7   :  { %v3959_v0 = vpack.c.bf16 %v3642_v28, %v3641_v7  ;;  %v3565_v57 = vadd.f32 %v7196_v38, %v3492_v56  ;;  %v3495_v11 = vadd.f32 %v7126_v25, %v4665_v51 }
 0x9b8   :  { %v3633_v60 = vmul.f32 0.2, %v3623_v4  ;;  %v3614_v3 = vsel %vm3594_vm13, %v3584_v6, %v3604_v33 }
 0x9b9   :  { %3978 = vst [vmem:[%s7278_s23 + $0x8] sm:$0xff] %v3959_v0   ;;  %v3624_v20 = vadd.f32 %v3614_v3, %v7158_v58  ;;  %v3585_v46 = vmul.f32 0.999995, %v3565_v57  ;;  %v3568_v23 = vadd.f32 %v7198_v41, %v3495_v11  ;;  %v4666_v47 = vpop.f32.mrb[204].mxu1 }
 0x9ba   :  { %v4667_v17 = vpop.f32.mrb[205].mxu1  ;;  %v3643_v15 = vadd.f32 %v3633_v60, %v7434_v12 }
 0x9bb   :  { %v3634_v21 = vmul.f32 0.2, %v3624_v20  ;;  %vm3595_vm14 = vcmp.ge.f32.partialorder %v3585_v46, 0.0  ;;  %v3605_v36 = vmul.f32 0.01, %v3585_v46  ;;  %v4668_v63 = vadd.f32 %v4667_v17, %v4666_v47  ;;  %v4669_v38 = vpop.f32.mrb[206].mxu1 }
 0x9bc   :  { %v3586_v26 = vmul.f32 0.999995, %v3568_v23  ;;  %v4670_v53 = vpop.f32.mrb[207].mxu1 }
 0x9bd   :  { %v3644_v62 = vadd.f32 %v3634_v21, %v7435_v50  ;;  %v3615_v30 = vsel %vm3595_vm14, %v3585_v46, %v3605_v36  ;;  %v3500_v43 = vadd.f32 %v7126_v25, %v4668_v63  ;;  %v4671_v58 = vadd.f32 %v4670_v53, %v4669_v38 }
 0x9be   :  { %v3625_v10 = vadd.f32 %v3615_v30, %v7164_v14  ;;  %vm3596_vm15 = vcmp.ge.f32.partialorder %v3586_v26, 0.0  ;;  %v3606_v41 = vmul.f32 0.01, %v3586_v26 }
 0x9bf   :  { %v3964_v2 = vpack.c.bf16 %v3644_v62, %v3643_v15  ;;  %v3573_v19 = vadd.f32 %v7200_v8, %v3500_v43  ;;  %v3503_v24 = vadd.f32 %v7126_v25, %v4671_v58 }
 0x9c0   :  { %v3616_v54 = vsel %vm3596_vm15, %v3586_v26, %v3606_v41  ;;  %v3635_v12 = vmul.f32 0.2, %v3625_v10 }
 0x9c1   :  { %3979 = vst [vmem:[%s7278_s23 + $0x10] sm:$0xff] %v3964_v2   ;;  %v3626_v50 = vadd.f32 %v3616_v54, %v7169_v16  ;;  %v3587_v1 = vmul.f32 0.999995, %v3573_v19  ;;  %v3576_v18 = vadd.f32 %v7202_v45, %v3503_v24 }
 0x9c2   :  { %v3645_v31 = vadd.f32 %v3635_v12, %v7438_v61 }
 0x9c3   :  { %v3636_v9 = vmul.f32 0.2, %v3626_v50  ;;  %vm3597_vm1 = vcmp.ge.f32.partialorder %v3587_v1, 0.0  ;;  %v3607_v14 = vmul.f32 0.01, %v3587_v1 }
 0x9c4   :  { %v3588_v37 = vmul.f32 0.999995, %v3576_v18 }
 0x9c5   :  { %v3646_v8 = vadd.f32 %v3636_v9, %v7439_v40  ;;  %v3617_v25 = vsel %vm3597_vm1, %v3587_v1, %v3607_v14 }
 0x9c6   :  { %v3627_v29 = vadd.f32 %v3617_v25, %v7174_v49  ;;  %vm3598_vm2 = vcmp.ge.f32.partialorder %v3588_v37, 0.0  ;;  %v3608_v32 = vmul.f32 0.01, %v3588_v37 }
 0x9c7   :  { %v3969_v13 = vpack.c.bf16 %v3646_v8, %v3645_v31 }
 0x9c8   :  { %v3618_v48 = vsel %vm3598_vm2, %v3588_v37, %v3608_v32  ;;  %v3637_v16 = vmul.f32 0.2, %v3627_v29 }
 0x9c9   :  { %3980 = vst [vmem:[%s7278_s23 + $0x18] sm:$0xff] %v3969_v13   ;;  %v3628_v45 = vadd.f32 %v3618_v48, %v7177_v59 }
 0x9ca   :  { %v3647_v42 = vadd.f32 %v3637_v16, %v7397_v44 }
 0x9cb   :  { %v3638_v52 = vmul.f32 0.2, %v3628_v45 }
 0x9cd   :  { %v3648_v61 = vadd.f32 %v3638_v52, %v7398_v22 }
 0x9cf   :  { %v3974_v40 = vpack.c.bf16 %v3648_v61, %v3647_v42 }
 0x9d1   :  { %3981 = vst [vmem:[%s7278_s23 + $0x20] sm:$0xff] %v3974_v40  }

</bundles_post_ra>
